<compile_context>
chip_gen: v6e
topology: v6e:2x2x1
jax: 0.10.0
libtpu: 0.0.40
codegen_flags: <defaults>
</compile_context>

<pallas_src>
import jax
import jax.numpy as jnp
from jax.experimental import pallas as pl
from jax.experimental.pallas import tpu as pltpu

T_SEQ = 249        # HuBERT frames (linear1 in_features)
H_DIM = 1024       # HuBERT hidden size (linear2 in_features)
MID = 100          # linear1 out_features
NUM_CLASSES = 28   # len(uniques) — synthetic vocabulary size

# Padded, tile-aligned sizes.
T_PAD = 256        # 249 -> 256 (contraction dim, zero-padded)
MID_PAD = 128      # 100 -> 128 (sublane / MXU M dim)
CHUNK = 32         # MID rows processed per inner step (bounds live intermediate)


def asr_head_kernel(x_ref, w1_ref, b1_ref, w2t_ref, b2_ref, o_ref):
    # x_ref  : (T_PAD, H_DIM)    bf16  — one (squeezed) batch element
    # w1_ref : (MID_PAD, T_PAD)  bf16  — linear1 weight, zero-padded
    # b1_ref : (MID_PAD, 1)      f32   — linear1 bias (column for row-broadcast)
    # w2t_ref: (H_DIM, C_PAD)    bf16  — linear2 weight, pre-transposed + padded
    # b2_ref : (1, C_PAD)        f32   — linear2 bias
    # o_ref  : (MID_PAD, C_PAD)  f32
    x = x_ref[...]                                                    # bf16 (T_PAD, H_DIM)
    n_chunks = MID_PAD // CHUNK
    for c in range(n_chunks):                                         # fully unrolled, static
        rows = pl.ds(c * CHUNK, CHUNK)
        # linear1 chunk: (CHUNK, T_PAD) @ (T_PAD, H_DIM) -> f32 acc
        a = jnp.dot(w1_ref[rows, :], x, preferred_element_type=jnp.float32)
        a = jnp.maximum(a + b1_ref[rows, :], 0.0)                     # bias + ReLU in f32
        a = a.astype(jnp.bfloat16)                                    # back to bf16 for MXU
        # linear2 chunk: (CHUNK, H_DIM) @ (H_DIM, C_PAD) -> f32 acc
        out = jnp.dot(a, w2t_ref[...], preferred_element_type=jnp.float32)
        o_ref[rows, :] = (out + b2_ref[...]).astype(o_ref.dtype)


def asr_head(hidden_states, w1, b1, w2, b2):
    """hidden_states: (B, T_SEQ, H_DIM) f32 -> (B, MID, C) f32."""
    B, T, H = hidden_states.shape
    assert T == T_SEQ and H == H_DIM
    C = w2.shape[0]
    C_PAD = 128 * pl.cdiv(C, 128)

    # Wrapper-side glue: zero-pad to tile-aligned shapes, cast matmul operands
    # to bf16 once, pre-transpose W2. Zero padding keeps the math exact; padded
    # output rows/cols are sliced away below.
    x_p = jnp.pad(hidden_states.astype(jnp.bfloat16),
                  ((0, 0), (0, T_PAD - T_SEQ), (0, 0)))               # (B, T_PAD, H)
    w1_p = jnp.pad(w1.astype(jnp.bfloat16),
                   ((0, MID_PAD - MID), (0, T_PAD - T_SEQ)))          # (MID_PAD, T_PAD)
    b1_p = jnp.pad(b1.astype(jnp.float32),
                   (0, MID_PAD - MID)).reshape(MID_PAD, 1)            # (MID_PAD, 1)
    w2t_p = jnp.pad(w2.T.astype(jnp.bfloat16),
                    ((0, 0), (0, C_PAD - C)))                         # (H, C_PAD)
    b2_p = jnp.pad(b2.astype(jnp.float32),
                   (0, C_PAD - C)).reshape(1, C_PAD)                  # (1, C_PAD)

    out_pad = pl.pallas_call(
        asr_head_kernel,
        out_shape=jax.ShapeDtypeStruct((B, MID_PAD, C_PAD), jnp.float32),
        grid_spec=pltpu.PrefetchScalarGridSpec(
            num_scalar_prefetch=0,
            grid=(B,),
            in_specs=[
                pl.BlockSpec((None, T_PAD, H_DIM), lambda b: (b, 0, 0)),   # x (squeezed batch)
                pl.BlockSpec((MID_PAD, T_PAD), lambda b: (0, 0)),          # w1
                pl.BlockSpec((MID_PAD, 1), lambda b: (0, 0)),              # b1
                pl.BlockSpec((H_DIM, C_PAD), lambda b: (0, 0)),            # w2^T
                pl.BlockSpec((1, C_PAD), lambda b: (0, 0)),                # b2
            ],
            out_specs=pl.BlockSpec((None, MID_PAD, C_PAD), lambda b: (b, 0, 0)),
        ),
        compiler_params=pltpu.CompilerParams(
            dimension_semantics=("parallel",),
        ),
    )(x_p, w1_p, b1_p, w2t_p, b2_p)

    # Slice the zero/bias-only padding back off.
    return out_pad[:, :MID, :C]


def reference_head(hidden_states, w1, b1, w2, b2):
    # Pure-JAX (f32) replica of the PyTorch forward (post-HuBERT part).
    h = jnp.transpose(hidden_states, (0, 2, 1))                 # (B, H, T)
    a = jax.nn.relu(jnp.einsum("bht,mt->bhm", h, w1) + b1)      # (B, H, MID)
    a = jnp.transpose(a, (0, 2, 1))                             # (B, MID, H)
    out = jnp.einsum("bmh,ch->bmc", a, w2) + b2                 # (B, MID, C)
    return out


if __name__ == "__main__":
    key = jax.random.PRNGKey(0)
    k_x, k_w1, k_b1, k_w2, k_b2 = jax.random.split(key, 5)

    B = 2
    # Synthetic stand-in for hubert(...).last_hidden_state.
    hidden_states = jax.random.normal(k_x, (B, T_SEQ, H_DIM), dtype=jnp.float32)

    # Deterministic parameter init (uniform in +/- 1/sqrt(fan_in), like nn.Linear).
    bound1 = 1.0 / jnp.sqrt(jnp.float32(T_SEQ))
    bound2 = 1.0 / jnp.sqrt(jnp.float32(H_DIM))
    w1 = jax.random.uniform(k_w1, (MID, T_SEQ), jnp.float32, -bound1, bound1)
    b1 = jax.random.uniform(k_b1, (MID,), jnp.float32, -bound1, bound1)
    w2 = jax.random.uniform(k_w2, (NUM_CLASSES, H_DIM), jnp.float32, -bound2, bound2)
    b2 = jax.random.uniform(k_b2, (NUM_CLASSES,), jnp.float32, -bound2, bound2)

    out = jax.jit(asr_head)(hidden_states, w1, b1, w2, b2)
    out = jax.block_until_ready(out)

    ref = reference_head(hidden_states, w1, b1, w2, b2)
    assert out.shape == (B, MID, NUM_CLASSES), out.shape
    # bf16 matmul operands with f32 accumulation -> looser tolerance than pure f32.
    assert jnp.allclose(out, ref, atol=3e-2, rtol=3e-2), "mismatch vs reference"

    print("KERNEL_OK")
</pallas_src>

<mosaic_0001>
module attributes {stable_mosaic.version = 11 : i64} {
  func.func @asr_head_kernel(%arg0: i32, %arg1: memref<1x256x1024xbf16, #tpu.memory_space<vmem>>, %arg2: memref<128x256xbf16, #tpu.memory_space<vmem>>, %arg3: memref<128x1xf32, #tpu.memory_space<vmem>>, %arg4: memref<1024x128xbf16, #tpu.memory_space<vmem>>, %arg5: memref<1x128xf32, #tpu.memory_space<vmem>>, %arg6: memref<1x128x128xf32, #tpu.memory_space<vmem>>) attributes {dimension_semantics = [#tpu.dimension_semantics<parallel>], iteration_bounds = array<i64: 2>, scalar_prefetch = 0 : i64, scratch_operands = 0 : i64, tpu.core_type = #tpu.core_type<tc>, window_params = [{transform_indices = @transform_0, window_bounds = array<i64: 1, 256, 1024>}, {pipeline_mode = #tpu.pipeline_mode<synchronous>, transform_indices = @transform_1, window_bounds = array<i64: 128, 256>}, {pipeline_mode = #tpu.pipeline_mode<synchronous>, transform_indices = @transform_2, window_bounds = array<i64: 128, 1>}, {pipeline_mode = #tpu.pipeline_mode<synchronous>, transform_indices = @transform_3, window_bounds = array<i64: 1024, 128>}, {pipeline_mode = #tpu.pipeline_mode<synchronous>, transform_indices = @transform_4, window_bounds = array<i64: 1, 128>}, {transform_indices = @transform_5, window_bounds = array<i64: 1, 128, 128>}]} {
    %c0 = arith.constant 0 : index
    %c0_0 = arith.constant 0 : index
    %c0_1 = arith.constant 0 : index
    %0 = vector.load %arg1[%c0, %c0_0, %c0_1] : memref<1x256x1024xbf16, #tpu.memory_space<vmem>>, vector<1x256x1024xbf16>
    %1 = vector.shape_cast %0 : vector<1x256x1024xbf16> to vector<256x1024xbf16>
    %c0_2 = arith.constant 0 : index
    %c0_3 = arith.constant 0 : index
    %2 = vector.load %arg2[%c0_2, %c0_3] : memref<128x256xbf16, #tpu.memory_space<vmem>>, vector<32x256xbf16>
    %cst = arith.constant dense<0.000000e+00> : vector<32x1024xf32>
    %3 = tpu.matmul %2, %1, %cst {dimension_numbers = #tpu.dot_dimension_numbers<[1], [0], [0], [1], [0, 0, 1, 1], [], []>} : vector<32x256xbf16>, vector<256x1024xbf16>, vector<32x1024xf32> -> vector<32x1024xf32>
    %c0_4 = arith.constant 0 : index
    %c0_5 = arith.constant 0 : index
    %4 = vector.load %arg3[%c0_4, %c0_5] : memref<128x1xf32, #tpu.memory_space<vmem>>, vector<32x1xf32>
    %5 = vector.broadcast %4 : vector<32x1xf32> to vector<32x1024xf32>
    %6 = arith.addf %3, %5 : vector<32x1024xf32>
    %cst_6 = arith.constant 0.000000e+00 : f32
    %7 = vector.broadcast %cst_6 : f32 to vector<32x1024xf32>
    %8 = arith.maximumf %6, %7 : vector<32x1024xf32>
    %9 = arith.truncf %8 : vector<32x1024xf32> to vector<32x1024xbf16>
    %c0_7 = arith.constant 0 : index
    %c0_8 = arith.constant 0 : index
    %10 = vector.load %arg4[%c0_7, %c0_8] : memref<1024x128xbf16, #tpu.memory_space<vmem>>, vector<1024x128xbf16>
    %cst_9 = arith.constant dense<0.000000e+00> : vector<32x128xf32>
    %11 = tpu.matmul %9, %10, %cst_9 {dimension_numbers = #tpu.dot_dimension_numbers<[1], [0], [0], [1], [0, 0, 1, 1], [], []>} : vector<32x1024xbf16>, vector<1024x128xbf16>, vector<32x128xf32> -> vector<32x128xf32>
    %c0_10 = arith.constant 0 : index
    %c0_11 = arith.constant 0 : index
    %12 = vector.load %arg5[%c0_10, %c0_11] : memref<1x128xf32, #tpu.memory_space<vmem>>, vector<1x128xf32>
    %13 = vector.broadcast %12 : vector<1x128xf32> to vector<32x128xf32>
    %14 = arith.addf %11, %13 : vector<32x128xf32>
    %c0_12 = arith.constant 0 : index
    %c0_13 = arith.constant 0 : index
    %c0_14 = arith.constant 0 : index
    %15 = vector.load %arg6[%c0_12, %c0_13, %c0_14] : memref<1x128x128xf32, #tpu.memory_space<vmem>>, vector<1x32x128xf32>
    %16 = vector.shape_cast %15 : vector<1x32x128xf32> to vector<32x128xf32>
    %17 = vector.shape_cast %14 : vector<32x128xf32> to vector<1x32x128xf32>
    tpu.vector_store %arg6[%c0_12, %c0_13, %c0_14], %17 {strides = array<i32>} : memref<1x128x128xf32, #tpu.memory_space<vmem>>, vector<1x32x128xf32>,
    %c32 = arith.constant 32 : index
    %c0_15 = arith.constant 0 : index
    %18 = vector.load %arg2[%c32, %c0_15] : memref<128x256xbf16, #tpu.memory_space<vmem>>, vector<32x256xbf16>
    %cst_16 = arith.constant dense<0.000000e+00> : vector<32x1024xf32>
    %19 = tpu.matmul %18, %1, %cst_16 {dimension_numbers = #tpu.dot_dimension_numbers<[1], [0], [0], [1], [0, 0, 1, 1], [], []>} : vector<32x256xbf16>, vector<256x1024xbf16>, vector<32x1024xf32> -> vector<32x1024xf32>
    %c32_17 = arith.constant 32 : index
    %c0_18 = arith.constant 0 : index
    %20 = vector.load %arg3[%c32_17, %c0_18] : memref<128x1xf32, #tpu.memory_space<vmem>>, vector<32x1xf32>
    %21 = vector.broadcast %20 : vector<32x1xf32> to vector<32x1024xf32>
    %22 = arith.addf %19, %21 : vector<32x1024xf32>
    %cst_19 = arith.constant 0.000000e+00 : f32
    %23 = vector.broadcast %cst_19 : f32 to vector<32x1024xf32>
    %24 = arith.maximumf %22, %23 : vector<32x1024xf32>
    %25 = arith.truncf %24 : vector<32x1024xf32> to vector<32x1024xbf16>
    %c0_20 = arith.constant 0 : index
    %c0_21 = arith.constant 0 : index
    %26 = vector.load %arg4[%c0_20, %c0_21] : memref<1024x128xbf16, #tpu.memory_space<vmem>>, vector<1024x128xbf16>
    %cst_22 = arith.constant dense<0.000000e+00> : vector<32x128xf32>
    %27 = tpu.matmul %25, %26, %cst_22 {dimension_numbers = #tpu.dot_dimension_numbers<[1], [0], [0], [1], [0, 0, 1, 1], [], []>} : vector<32x1024xbf16>, vector<1024x128xbf16>, vector<32x128xf32> -> vector<32x128xf32>
    %c0_23 = arith.constant 0 : index
    %c0_24 = arith.constant 0 : index
    %28 = vector.load %arg5[%c0_23, %c0_24] : memref<1x128xf32, #tpu.memory_space<vmem>>, vector<1x128xf32>
    %29 = vector.broadcast %28 : vector<1x128xf32> to vector<32x128xf32>
    %30 = arith.addf %27, %29 : vector<32x128xf32>
    %c0_25 = arith.constant 0 : index
    %c32_26 = arith.constant 32 : index
    %c0_27 = arith.constant 0 : index
    %31 = vector.load %arg6[%c0_25, %c32_26, %c0_27] : memref<1x128x128xf32, #tpu.memory_space<vmem>>, vector<1x32x128xf32>
    %32 = vector.shape_cast %31 : vector<1x32x128xf32> to vector<32x128xf32>
    %33 = vector.shape_cast %30 : vector<32x128xf32> to vector<1x32x128xf32>
    tpu.vector_store %arg6[%c0_25, %c32_26, %c0_27], %33 {strides = array<i32>} : memref<1x128x128xf32, #tpu.memory_space<vmem>>, vector<1x32x128xf32>,
    %c64 = arith.constant 64 : index
    %c0_28 = arith.constant 0 : index
    %34 = vector.load %arg2[%c64, %c0_28] : memref<128x256xbf16, #tpu.memory_space<vmem>>, vector<32x256xbf16>
    %cst_29 = arith.constant dense<0.000000e+00> : vector<32x1024xf32>
    %35 = tpu.matmul %34, %1, %cst_29 {dimension_numbers = #tpu.dot_dimension_numbers<[1], [0], [0], [1], [0, 0, 1, 1], [], []>} : vector<32x256xbf16>, vector<256x1024xbf16>, vector<32x1024xf32> -> vector<32x1024xf32>
    %c64_30 = arith.constant 64 : index
    %c0_31 = arith.constant 0 : index
    %36 = vector.load %arg3[%c64_30, %c0_31] : memref<128x1xf32, #tpu.memory_space<vmem>>, vector<32x1xf32>
    %37 = vector.broadcast %36 : vector<32x1xf32> to vector<32x1024xf32>
    %38 = arith.addf %35, %37 : vector<32x1024xf32>
    %cst_32 = arith.constant 0.000000e+00 : f32
    %39 = vector.broadcast %cst_32 : f32 to vector<32x1024xf32>
    %40 = arith.maximumf %38, %39 : vector<32x1024xf32>
    %41 = arith.truncf %40 : vector<32x1024xf32> to vector<32x1024xbf16>
    %c0_33 = arith.constant 0 : index
    %c0_34 = arith.constant 0 : index
    %42 = vector.load %arg4[%c0_33, %c0_34] : memref<1024x128xbf16, #tpu.memory_space<vmem>>, vector<1024x128xbf16>
    %cst_35 = arith.constant dense<0.000000e+00> : vector<32x128xf32>
    %43 = tpu.matmul %41, %42, %cst_35 {dimension_numbers = #tpu.dot_dimension_numbers<[1], [0], [0], [1], [0, 0, 1, 1], [], []>} : vector<32x1024xbf16>, vector<1024x128xbf16>, vector<32x128xf32> -> vector<32x128xf32>
    %c0_36 = arith.constant 0 : index
    %c0_37 = arith.constant 0 : index
    %44 = vector.load %arg5[%c0_36, %c0_37] : memref<1x128xf32, #tpu.memory_space<vmem>>, vector<1x128xf32>
    %45 = vector.broadcast %44 : vector<1x128xf32> to vector<32x128xf32>
    %46 = arith.addf %43, %45 : vector<32x128xf32>
    %c0_38 = arith.constant 0 : index
    %c64_39 = arith.constant 64 : index
    %c0_40 = arith.constant 0 : index
    %47 = vector.load %arg6[%c0_38, %c64_39, %c0_40] : memref<1x128x128xf32, #tpu.memory_space<vmem>>, vector<1x32x128xf32>
    %48 = vector.shape_cast %47 : vector<1x32x128xf32> to vector<32x128xf32>
    %49 = vector.shape_cast %46 : vector<32x128xf32> to vector<1x32x128xf32>
    tpu.vector_store %arg6[%c0_38, %c64_39, %c0_40], %49 {strides = array<i32>} : memref<1x128x128xf32, #tpu.memory_space<vmem>>, vector<1x32x128xf32>,
    %c96 = arith.constant 96 : index
    %c0_41 = arith.constant 0 : index
    %50 = vector.load %arg2[%c96, %c0_41] : memref<128x256xbf16, #tpu.memory_space<vmem>>, vector<32x256xbf16>
    %cst_42 = arith.constant dense<0.000000e+00> : vector<32x1024xf32>
    %51 = tpu.matmul %50, %1, %cst_42 {dimension_numbers = #tpu.dot_dimension_numbers<[1], [0], [0], [1], [0, 0, 1, 1], [], []>} : vector<32x256xbf16>, vector<256x1024xbf16>, vector<32x1024xf32> -> vector<32x1024xf32>
    %c96_43 = arith.constant 96 : index
    %c0_44 = arith.constant 0 : index
    %52 = vector.load %arg3[%c96_43, %c0_44] : memref<128x1xf32, #tpu.memory_space<vmem>>, vector<32x1xf32>
    %53 = vector.broadcast %52 : vector<32x1xf32> to vector<32x1024xf32>
    %54 = arith.addf %51, %53 : vector<32x1024xf32>
    %cst_45 = arith.constant 0.000000e+00 : f32
    %55 = vector.broadcast %cst_45 : f32 to vector<32x1024xf32>
    %56 = arith.maximumf %54, %55 : vector<32x1024xf32>
    %57 = arith.truncf %56 : vector<32x1024xf32> to vector<32x1024xbf16>
    %c0_46 = arith.constant 0 : index
    %c0_47 = arith.constant 0 : index
    %58 = vector.load %arg4[%c0_46, %c0_47] : memref<1024x128xbf16, #tpu.memory_space<vmem>>, vector<1024x128xbf16>
    %cst_48 = arith.constant dense<0.000000e+00> : vector<32x128xf32>
    %59 = tpu.matmul %57, %58, %cst_48 {dimension_numbers = #tpu.dot_dimension_numbers<[1], [0], [0], [1], [0, 0, 1, 1], [], []>} : vector<32x1024xbf16>, vector<1024x128xbf16>, vector<32x128xf32> -> vector<32x128xf32>
    %c0_49 = arith.constant 0 : index
    %c0_50 = arith.constant 0 : index
    %60 = vector.load %arg5[%c0_49, %c0_50] : memref<1x128xf32, #tpu.memory_space<vmem>>, vector<1x128xf32>
    %61 = vector.broadcast %60 : vector<1x128xf32> to vector<32x128xf32>
    %62 = arith.addf %59, %61 : vector<32x128xf32>
    %c0_51 = arith.constant 0 : index
    %c96_52 = arith.constant 96 : index
    %c0_53 = arith.constant 0 : index
    %63 = vector.load %arg6[%c0_51, %c96_52, %c0_53] : memref<1x128x128xf32, #tpu.memory_space<vmem>>, vector<1x32x128xf32>
    %64 = vector.shape_cast %63 : vector<1x32x128xf32> to vector<32x128xf32>
    %65 = vector.shape_cast %62 : vector<32x128xf32> to vector<1x32x128xf32>
    tpu.vector_store %arg6[%c0_51, %c96_52, %c0_53], %65 {strides = array<i32>} : memref<1x128x128xf32, #tpu.memory_space<vmem>>, vector<1x32x128xf32>,
    return
  }
  func.func @transform_0(%arg0: i32) -> (i32, i32, i32) {
    %c0_i32 = arith.constant 0 : i32
    %c0_i32_0 = arith.constant 0 : i32
    %c0_i32_1 = arith.constant 0 : i32
    return %arg0, %c0_i32, %c0_i32_0 : i32, i32, i32
  }
  func.func @transform_1(%arg0: i32) -> (i32, i32) {
    %c0_i32 = arith.constant 0 : i32
    %c0_i32_0 = arith.constant 0 : i32
    %c0_i32_1 = arith.constant 0 : i32
    return %c0_i32, %c0_i32_0 : i32, i32
  }
  func.func @transform_2(%arg0: i32) -> (i32, i32) {
    %c0_i32 = arith.constant 0 : i32
    %c0_i32_0 = arith.constant 0 : i32
    %c0_i32_1 = arith.constant 0 : i32
    return %c0_i32, %c0_i32_0 : i32, i32
  }
  func.func @transform_3(%arg0: i32) -> (i32, i32) {
    %c0_i32 = arith.constant 0 : i32
    %c0_i32_0 = arith.constant 0 : i32
    %c0_i32_1 = arith.constant 0 : i32
    return %c0_i32, %c0_i32_0 : i32, i32
  }
  func.func @transform_4(%arg0: i32) -> (i32, i32) {
    %c0_i32 = arith.constant 0 : i32
    %c0_i32_0 = arith.constant 0 : i32
    %c0_i32_1 = arith.constant 0 : i32
    return %c0_i32, %c0_i32_0 : i32, i32
  }
  func.func @transform_5(%arg0: i32) -> (i32, i32, i32) {
    %c0_i32 = arith.constant 0 : i32
    %c0_i32_0 = arith.constant 0 : i32
    %c0_i32_1 = arith.constant 0 : i32
    return %arg0, %c0_i32, %c0_i32_0 : i32, i32, i32
  }
}

</mosaic_0001>

<bundles_post_ra>
// kernel: asr_head.1
= control target key start
LH: loop header
LB: loop body
LE: loop exit
PB: predicated region body
PF: predicated region fallthrough
CT: control target
= control target key end

     0   :  { %s6352_s18 = smov 0   ;;  %s8428_s0 = inlined_call_operand.vmem [shape: bf16[2,256,1024], index: 0, kind: input, shape index: {}]   ;;  %s8429_s1 = inlined_call_operand.vmem [shape: bf16[128,256], index: 1, kind: input, shape index: {}]   ;;  %s8430_s2 = inlined_call_operand.vmem [shape: f32[128,1], index: 2, kind: input, shape index: {}]   ;;  %s8431_s3 = inlined_call_operand.vmem [shape: bf16[1024,128], index: 3, kind: input, shape index: {}]   ;;  %s8432_s4 = inlined_call_operand.vmem [shape: f32[1,128], index: 4, kind: input, shape index: {}]   ;;  %s8433_s5 = inlined_call_operand.vmem [shape: f32[2,128,128], index: 5, kind: output, shape index: {}]  }
   0x1 LB: > { %s5157_s19 = sadd.s32 4294967295, %s6319_s18   ;;  %p5161_p0 = scmp.ge.s32.totalorder %s6319_s18, 1  ;;  %s6319_s18 = sphi %s6352_s18, %s15_s18  }
   0x2   : > { %p187_p1 = scmp.lt.s32.totalorder %s6319_s18, 3 }
   0x4   : > { %p188_p2 = pnand %p5161_p0, %p187_p1 }
   0x6   : > { %191 = sbr.rel (%p188_p2) target bundleno = 1570 (0x622), region = 40 }
   0xb   : > { %p215_p3 = scmp.lt.s32.totalorder %s5157_s19, 1  ;;  %v6363_v0 = vld [vmem:[%s8429_s1 + $0x4] ss:$8 sps:$4 sm:$0xff]   ;;  %v6321_v27 = vmov 0  }
   0xc   : > { %1074 = vmatprep.mubr.bf16.mxu0 %v6363_v0  ;;  %1127 = vmatprep.mubr.bf16.mxu1 %v6363_v0 }
   0xd   : > { %s9023_s19 = smov (!%p215_p3, %s5157_s19), 1  ;;  %6031 = vset.pattern.permute.xlu0 %v6321_v27  ;;  %6032 = vset.pattern.permute.xlu1 %v6321_v27 }
   0xe   : > { %s5572_s22 = sshll.u32 %s9023_s19, 10  ;;  %s5573_s16 = sshll.u32 %s9023_s19, 7 }
   0xf   : > { %s6373_s25 = scalar_lea.vmem %s8428_s0, %s5572_s22  ;;  %s7469_s20 = scalar_lea.vmem %s8433_s5, %s5573_s16 }
  0x10   : > { %v282_v1 = vld [vmem:[%s6373_s25 + $0x1c0] sm:$0xff]  ;;  %v283_v3 = vld [vmem:[%s6373_s25 + $0x1c8] sm:$0xff] }
  0x11   : > { %v286_v2 = vld [vmem:[%s6373_s25 + $0x1e0] sm:$0xff]  ;;  %v287_v5 = vld [vmem:[%s6373_s25 + $0x1e8] sm:$0xff] }
  0x12   : > { %v6378_v4 = vcombine.high %v282_v1, %v286_v2  ;;  %v6381_v6 = vcombine.low %v282_v1, %v286_v2  ;;  %v274_v7 = vld [vmem:[%s6373_s25 + $0x180] sm:$0xff]  ;;  %v6385_v9 = vcombine.high %v283_v3, %v287_v5  ;;  %v6387_v10 = vcombine.low %v283_v3, %v287_v5  ;;  %v275_v12 = vld [vmem:[%s6373_s25 + $0x188] sm:$0xff] }
  0x13   : > { %v278_v8 = vld [vmem:[%s6373_s25 + $0x1a0] sm:$0xff]  ;;  %v279_v13 = vld [vmem:[%s6373_s25 + $0x1a8] sm:$0xff] }
  0x14   : > { %8633 = vst [vmem:[#allocation2_spill] sm:$0xff] %v6378_v4  ;;  %8634 = vst [vmem:[#allocation3_spill] sm:$0xff] %v6385_v9  ;;  %v6389_v11 = vcombine.high %v274_v7, %v278_v8  ;;  %v266_v14 = vld [vmem:[%s6373_s25 + $0x140] sm:$0xff]  ;;  %1042 = vmatprep.subr.bf16.mxu0 %v6378_v4  ;;  %v6395_v15 = vcombine.high %v275_v12, %v279_v13  ;;  %v267_v17 = vld [vmem:[%s6373_s25 + $0x148] sm:$0xff]  ;;  %1095 = vmatprep.subr.bf16.mxu1 %v6385_v9 }
  0x15   : > { %v270_v16 = vld [vmem:[%s6373_s25 + $0x160] sm:$0xff]  ;;  %v271_v18 = vld [vmem:[%s6373_s25 + $0x168] sm:$0xff]  ;;  %1043 = vmatpush1.bf16.msra.mxu0 %v6381_v6  ;;  %v6402_v19 = vcombine.low %v274_v7, %v278_v8  ;;  %1096 = vmatpush1.bf16.msra.mxu1 %v6387_v10  ;;  %v6406_v20 = vcombine.low %v275_v12, %v279_v13 }
  0x16   : > { %1044 = vmatprep.subr.bf16.mxu0 %v6389_v11  ;;  %v6408_v21 = vcombine.high %v266_v14, %v270_v16  ;;  %1097 = vmatprep.subr.bf16.mxu1 %v6395_v15  ;;  %v6411_v22 = vcombine.high %v267_v17, %v271_v18  ;;  %v258_v23 = vld [vmem:[%s6373_s25 + $0x100] sm:$0xff]  ;;  %v259_v25 = vld [vmem:[%s6373_s25 + $0x108] sm:$0xff]  ;;  %v6418_v28 = vcombine.low %v266_v14, %v270_v16 }
  0x17   : > { %v262_v24 = vld [vmem:[%s6373_s25 + $0x120] sm:$0xff]  ;;  %v263_v26 = vld [vmem:[%s6373_s25 + $0x128] sm:$0xff]  ;;  %v6422_v29 = vcombine.low %v267_v17, %v271_v18 }
  0x18   : > { %v6424_v30 = vcombine.high %v258_v23, %v262_v24  ;;  %v6427_v31 = vcombine.high %v259_v25, %v263_v26  ;;  %v250_v32 = vld [vmem:[%s6373_s25 + $0xc0] sm:$0xff]  ;;  %v251_v34 = vld [vmem:[%s6373_s25 + $0xc8] sm:$0xff]  ;;  %v6434_v36 = vcombine.low %v258_v23, %v262_v24  ;;  %v6438_v37 = vcombine.low %v259_v25, %v263_v26 }
  0x19   : > { %1045 = vmatpush1.bf16.msra.mxu0 %v6402_v19  ;;  %1098 = vmatpush1.bf16.msra.mxu1 %v6406_v20  ;;  %v254_v33 = vld [vmem:[%s6373_s25 + $0xe0] sm:$0xff]  ;;  %v255_v35 = vld [vmem:[%s6373_s25 + $0xe8] sm:$0xff] }
  0x1a   : > { %1046 = vmatprep.subr.bf16.mxu0 %v6408_v21  ;;  %1099 = vmatprep.subr.bf16.mxu1 %v6411_v22  ;;  %v6440_v38 = vcombine.high %v250_v32, %v254_v33  ;;  %v6443_v39 = vcombine.high %v251_v34, %v255_v35  ;;  %v242_v40 = vld [vmem:[%s6373_s25 + $0x80] sm:$0xff]  ;;  %v243_v42 = vld [vmem:[%s6373_s25 + $0x88] sm:$0xff]  ;;  %v6450_v44 = vcombine.low %v250_v32, %v254_v33 }
  0x1b   : > { %v246_v41 = vld [vmem:[%s6373_s25 + $0xa0] sm:$0xff]  ;;  %v247_v43 = vld [vmem:[%s6373_s25 + $0xa8] sm:$0xff]  ;;  %v6454_v45 = vcombine.low %v251_v34, %v255_v35 }
  0x1c   : > { %v6456_v46 = vcombine.high %v242_v40, %v246_v41  ;;  %v6459_v47 = vcombine.high %v243_v42, %v247_v43  ;;  %v234_v48 = vld [vmem:[%s6373_s25 + $0x40] sm:$0xff]  ;;  %v235_v50 = vld [vmem:[%s6373_s25 + $0x48] sm:$0xff]  ;;  %v6466_v52 = vcombine.low %v242_v40, %v246_v41  ;;  %v6470_v53 = vcombine.low %v243_v42, %v247_v43 }
  0x1d   : > { %1047 = vmatpush1.bf16.msra.mxu0 %v6418_v28  ;;  %1100 = vmatpush1.bf16.msra.mxu1 %v6422_v29  ;;  %v238_v49 = vld [vmem:[%s6373_s25 + $0x60] sm:$0xff]  ;;  %v239_v51 = vld [vmem:[%s6373_s25 + $0x68] sm:$0xff] }
  0x1e   : > { %1048 = vmatprep.subr.bf16.mxu0 %v6424_v30  ;;  %1101 = vmatprep.subr.bf16.mxu1 %v6427_v31  ;;  %v6472_v54 = vcombine.high %v234_v48, %v238_v49  ;;  %v6475_v55 = vcombine.high %v235_v50, %v239_v51  ;;  %v226_v56 = vld [vmem:[%s6373_s25] sm:$0xff]  ;;  %v227_v58 = vld [vmem:[%s6373_s25 + $0x8] sm:$0xff]  ;;  %v6482_v60 = vcombine.low %v234_v48, %v238_v49 }
  0x1f   : > { %v230_v57 = vld [vmem:[%s6373_s25 + $0x20] sm:$0xff]  ;;  %v231_v59 = vld [vmem:[%s6373_s25 + $0x28] sm:$0xff]  ;;  %v6486_v61 = vcombine.low %v235_v50, %v239_v51 }
  0x20   : > { %v6488_v62 = vcombine.high %v226_v56, %v230_v57  ;;  %v6491_v63 = vcombine.high %v227_v58, %v231_v59  ;;  %v346_v1 = vld [vmem:[%s6373_s25 + $0x3c0] sm:$0xff]  ;;  %v347_v3 = vld [vmem:[%s6373_s25 + $0x3c8] sm:$0xff]  ;;  %v6498_v7 = vcombine.low %v226_v56, %v230_v57  ;;  %v6502_v8 = vcombine.low %v227_v58, %v231_v59 }
  0x21   : > { %1049 = vmatpush1.bf16.msra.mxu0 %v6434_v36  ;;  %1102 = vmatpush1.bf16.msra.mxu1 %v6438_v37  ;;  %v350_v2 = vld [vmem:[%s6373_s25 + $0x3e0] sm:$0xff]  ;;  %v351_v5 = vld [vmem:[%s6373_s25 + $0x3e8] sm:$0xff] }
  0x22   : > { %1050 = vmatprep.subr.bf16.mxu0 %v6440_v38  ;;  %1103 = vmatprep.subr.bf16.mxu1 %v6443_v39  ;;  %8635 = vst [vmem:[#allocation4_spill] sm:$0xff] %v6491_v63  ;;  %8636 = vst [vmem:[#allocation5_spill] sm:$0xff] %v6498_v7  ;;  %v6504_v12 = vcombine.high %v346_v1, %v350_v2  ;;  %v6507_v13 = vcombine.high %v347_v3, %v351_v5  ;;  %v338_v14 = vld [vmem:[%s6373_s25 + $0x380] sm:$0xff]  ;;  %v339_v17 = vld [vmem:[%s6373_s25 + $0x388] sm:$0xff] }
  0x23   : > { %8637 = vst [vmem:[#allocation6_spill] sm:$0xff] %v6502_v8  ;;  %v342_v16 = vld [vmem:[%s6373_s25 + $0x3a0] sm:$0xff]  ;;  %v343_v18 = vld [vmem:[%s6373_s25 + $0x3a8] sm:$0xff]  ;;  %v6514_v23 = vcombine.low %v346_v1, %v350_v2  ;;  %v6518_v24 = vcombine.low %v347_v3, %v351_v5 }
  0x24   : > { %8638 = vst [vmem:[#allocation7_spill] sm:$0xff] %v6504_v12  ;;  %8639 = vst [vmem:[#allocation8_spill] sm:$0xff] %v6507_v13  ;;  %v6520_v25 = vcombine.high %v338_v14, %v342_v16  ;;  %v6523_v26 = vcombine.high %v339_v17, %v343_v18  ;;  %v330_v27 = vld [vmem:[%s6373_s25 + $0x340] sm:$0xff]  ;;  %v331_v33 = vld [vmem:[%s6373_s25 + $0x348] sm:$0xff]  ;;  %v6530_v35 = vcombine.low %v338_v14, %v342_v16 }
  0x25   : > { %1051 = vmatpush1.bf16.msra.mxu0 %v6450_v44  ;;  %1104 = vmatpush1.bf16.msra.mxu1 %v6454_v45  ;;  %8640 = vst [vmem:[#allocation9_spill] sm:$0xff] %v6514_v23  ;;  %8641 = vst [vmem:[#allocation10_spill] sm:$0xff] %v6518_v24  ;;  %v334_v32 = vld [vmem:[%s6373_s25 + $0x360] sm:$0xff]  ;;  %v335_v34 = vld [vmem:[%s6373_s25 + $0x368] sm:$0xff]  ;;  %v6534_v40 = vcombine.low %v339_v17, %v343_v18 }
  0x26   : > { %1052 = vmatprep.subr.bf16.mxu0 %v6456_v46  ;;  %1105 = vmatprep.subr.bf16.mxu1 %v6459_v47  ;;  %8642 = vst [vmem:[#allocation11_spill] sm:$0xff] %v6520_v25  ;;  %8643 = vst [vmem:[#allocation12_spill] sm:$0xff] %v6523_v26  ;;  %v6536_v41 = vcombine.high %v330_v27, %v334_v32  ;;  %v6539_v42 = vcombine.high %v331_v33, %v335_v34  ;;  %v322_v43 = vld [vmem:[%s6373_s25 + $0x300] sm:$0xff]  ;;  %v323_v49 = vld [vmem:[%s6373_s25 + $0x308] sm:$0xff] }
  0x27   : > { %8644 = vst [vmem:[#allocation13_spill] sm:$0xff] %v6530_v35  ;;  %8645 = vst [vmem:[#allocation14_spill] sm:$0xff] %v6534_v40  ;;  %v326_v48 = vld [vmem:[%s6373_s25 + $0x320] sm:$0xff]  ;;  %v327_v50 = vld [vmem:[%s6373_s25 + $0x328] sm:$0xff]  ;;  %v6546_v51 = vcombine.low %v330_v27, %v334_v32  ;;  %v6550_v56 = vcombine.low %v331_v33, %v335_v34 }
  0x28   : > { %8646 = vst [vmem:[#allocation15_spill] sm:$0xff] %v6536_v41  ;;  %8647 = vst [vmem:[#allocation16_spill] sm:$0xff] %v6539_v42  ;;  %v6552_v57 = vcombine.high %v322_v43, %v326_v48  ;;  %v6555_v58 = vcombine.high %v323_v49, %v327_v50  ;;  %v314_v59 = vld [vmem:[%s6373_s25 + $0x2c0] sm:$0xff]  ;;  %v315_v3 = vld [vmem:[%s6373_s25 + $0x2c8] sm:$0xff]  ;;  %v6565_v14 = vcombine.low %v322_v43, %v326_v48 }
  0x29   : > { %1053 = vmatpush1.bf16.msra.mxu0 %v6466_v52  ;;  %1106 = vmatpush1.bf16.msra.mxu1 %v6470_v53  ;;  %8648 = vst [vmem:[#allocation17_spill] sm:$0xff] %v6546_v51  ;;  %8649 = vst [vmem:[#allocation18_spill] sm:$0xff] %v6550_v56  ;;  %v318_v1 = vld [vmem:[%s6373_s25 + $0x2e0] sm:$0xff]  ;;  %v319_v5 = vld [vmem:[%s6373_s25 + $0x2e8] sm:$0xff]  ;;  %v6575_v18 = vcombine.low %v323_v49, %v327_v50 }
  0x2a   : > { %1054 = vmatprep.subr.bf16.mxu0 %v6472_v54  ;;  %1107 = vmatprep.subr.bf16.mxu1 %v6475_v55  ;;  %8650 = vst [vmem:[#allocation19_spill] sm:$0xff] %v6552_v57  ;;  %8651 = vst [vmem:[#allocation20_spill] sm:$0xff] %v6555_v58  ;;  %v358_v2 = vld [vmem:[%s8430_s2] sm:$0xff]  ;;  %v359_v16 = vld [vmem:[%s8430_s2 + $0x8] sm:$0xff]  ;;  %v6577_v27 = vcombine.high %v314_v59, %v318_v1  ;;  %v6580_v32 = vcombine.high %v315_v3, %v319_v5 }
  0x2b   : > { %364 = vperm.xlu0 %6031, %v358_v2   ;;  %8652 = vst [vmem:[#allocation21_spill] sm:$0xff] %v6565_v14  ;;  %v360_v17 = vld [vmem:[%s8430_s2 + $0x10] sm:$0xff]  ;;  %8653 = vst [vmem:[#allocation22_spill] sm:$0xff] %v6575_v18  ;;  %v306_v33 = vld [vmem:[%s6373_s25 + $0x280] sm:$0xff]  ;;  %v6590_v49 = vcombine.low %v314_v59, %v318_v1 }
  0x2c   : > { %8654 = vst [vmem:[#allocation23_spill] sm:$0xff] %v6577_v27  ;;  %8655 = vst [vmem:[#allocation24_spill] sm:$0xff] %v6580_v32  ;;  %v310_v34 = vld [vmem:[%s6373_s25 + $0x2a0] sm:$0xff]  ;;  %374 = vperm.xlu1 %6032, %v360_v17   ;;  %v307_v43 = vld [vmem:[%s6373_s25 + $0x288] sm:$0xff] }
  0x2d   : > { %1055 = vmatpush1.bf16.msra.mxu0 %v6482_v60  ;;  %1108 = vmatpush1.bf16.msra.mxu1 %v6486_v61  ;;  %v311_v48 = vld [vmem:[%s6373_s25 + $0x2a8] sm:$0xff]  ;;  %v361_v2 = vld [vmem:[%s8430_s2 + $0x18] sm:$0xff]  ;;  %8656 = vst [vmem:[#allocation25_spill] sm:$0xff] %v6590_v49  ;;  %v298_v50 = vld [vmem:[%s6373_s25 + $0x240] sm:$0xff] }
  0x2e   : > { %1056 = vmatprep.subr.bf16.mxu0 %v6488_v62  ;;  %1109 = vmatprep.subr.bf16.mxu1 %v6491_v63  ;;  %v2025_v17 = vld [vmem:[%s8430_s2 + $0x20] sm:$0xff]  ;;  %v6605_v59 = vcombine.high %v307_v43, %v311_v48  ;;  %v303_v1 = vld [vmem:[%s6373_s25 + $0x268] sm:$0xff] }
  0x2f   : > { %369 = vperm.xlu0 %6031, %v359_v16   ;;  %v6599_v16 = vcombine.low %v315_v3, %v319_v5  ;;  %v6612_v3 = vcombine.low %v306_v33, %v310_v34  ;;  %v290_v5 = vld [vmem:[%s6373_s25 + $0x200] sm:$0xff] }
  0x30   : > { %8659 = vst [vmem:[#allocation28_spill] sm:$0xff] %v6605_v59  ;;  %379 = vperm.xlu1 %6032, %v361_v2   ;;  %v6621_v2 = vcombine.low %v307_v43, %v311_v48  ;;  %v284_v48 = vld [vmem:[%s6373_s25 + $0x1d0] sm:$0xff] }
  0x31   : > { %1057 = vmatpush1.bf16.msra.mxu0 %v6498_v7  ;;  %1110 = vmatpush1.bf16.msra.mxu1 %v6502_v8  ;;  %8657 = vst [vmem:[#allocation26_spill] sm:$0xff] %v6599_v16  ;;  %8660 = vst [vmem:[#allocation29_spill] sm:$0xff] %v6612_v3 }
  0x32   : > { %1058 = vmatprep.subr.bf16.mxu0 %v6504_v12  ;;  %1111 = vmatprep.subr.bf16.mxu1 %v6507_v13  ;;  %8661 = vst [vmem:[#allocation30_spill] sm:$0xff] %v6621_v2 }
  0x33   : > { %2031 = vperm.xlu0 %6031, %v2025_v17  }
  0x35   : > { %1059 = vmatpush2.bf16.msra.mxu0 %v6514_v23  ;;  %1112 = vmatpush2.bf16.msra.mxu1 %v6518_v24 }
  0x36   : > { %1060 = vmatprep.subr.bf16.mxu0 %v6520_v25  ;;  %1113 = vmatprep.subr.bf16.mxu1 %v6523_v26 }
  0x39   : > { %1061 = vmatpush2.bf16.msra.mxu0 %v6530_v35  ;;  %1114 = vmatpush2.bf16.msra.mxu1 %v6534_v40 }
  0x3a   : > { %1062 = vmatprep.subr.bf16.mxu0 %v6536_v41  ;;  %1115 = vmatprep.subr.bf16.mxu1 %v6539_v42  ;;  %v261_v42 = vld [vmem:[%s6373_s25 + $0x118] sm:$0xff] }
  0x3b   : > { %v265_v41 = vld [vmem:[%s6373_s25 + $0x138] sm:$0xff] }
  0x3d   : > { %1063 = vmatpush2.bf16.msra.mxu0 %v6546_v51  ;;  %1116 = vmatpush2.bf16.msra.mxu1 %v6550_v56  ;;  %v299_v56 = vld [vmem:[%s6373_s25 + $0x248] sm:$0xff] }
  0x3e   : > { %1064 = vmatprep.subr.bf16.mxu0 %v6552_v57  ;;  %1117 = vmatprep.subr.bf16.mxu1 %v6555_v58  ;;  %v302_v58 = vld [vmem:[%s6373_s25 + $0x260] sm:$0xff]  ;;  %v6601_v57 = vcombine.high %v306_v33, %v310_v34  ;;  %v6627_v33 = vcombine.high %v299_v56, %v303_v1  ;;  %v295_v34 = vld [vmem:[%s6373_s25 + $0x228] sm:$0xff] }
  0x3f   : > { %v6623_v17 = vcombine.high %v298_v50, %v302_v58  ;;  %v6634_v43 = vcombine.low %v298_v50, %v302_v58  ;;  %v289_v50 = vld [vmem:[%s6373_s25 + $0x1f8] sm:$0xff] }
  0x40   : > { %8658 = vst [vmem:[#allocation27_spill] sm:$0xff] %v6601_v57  ;;  %8663 = vst [vmem:[#allocation32_spill] sm:$0xff] %v6627_v33 }
  0x41   : > { %1065 = vmatpush2.bf16.msra.mxu0 %v6565_v14  ;;  %1118 = vmatpush2.bf16.msra.mxu1 %v6575_v18  ;;  %v2026_v18 = vld [vmem:[%s8430_s2 + $0x28] sm:$0xff]  ;;  %8662 = vst [vmem:[#allocation31_spill] sm:$0xff] %v6623_v17  ;;  %8664 = vst [vmem:[#allocation33_spill] sm:$0xff] %v6634_v43 }
  0x42   : > { %1066 = vmatprep.subr.bf16.mxu0 %v6577_v27  ;;  %1119 = vmatprep.subr.bf16.mxu1 %v6580_v32  ;;  %v294_v27 = vld [vmem:[%s6373_s25 + $0x220] sm:$0xff]  ;;  %v2027_v32 = vld [vmem:[%s8430_s2 + $0x30] sm:$0xff]  ;;  %v291_v14 = vld [vmem:[%s6373_s25 + $0x208] sm:$0xff] }
  0x43   : > { %2036 = vperm.xlu1 %6032, %v2026_v18   ;;  %2041 = vperm.xlu0 %6031, %v2027_v32   ;;  %v6643_v18 = vcombine.low %v299_v56, %v303_v1  ;;  %v6645_v32 = vcombine.high %v290_v5, %v294_v27  ;;  %v6649_v58 = vcombine.high %v291_v14, %v295_v34  ;;  %v276_v1 = vld [vmem:[%s6373_s25 + $0x190] sm:$0xff] }
  0x44   : > { %v6656_v56 = vcombine.low %v290_v5, %v294_v27  ;;  %v277_v5 = vld [vmem:[%s6373_s25 + $0x198] sm:$0xff] }
  0x45   : > { %1067 = vmatpush2.bf16.msra.mxu0 %v6590_v49  ;;  %1120 = vmatpush2.bf16.msra.mxu1 %v6599_v16  ;;  %v2028_v16 = vld [vmem:[%s8430_s2 + $0x38] sm:$0xff]  ;;  %8665 = vst [vmem:[#allocation34_spill] sm:$0xff] %v6643_v18  ;;  %8666 = vst [vmem:[#allocation35_spill] sm:$0xff] %v6645_v32 }
  0x46   : > { %1068 = vmatprep.subr.bf16.mxu0 %v6601_v57  ;;  %1121 = vmatprep.subr.bf16.mxu1 %v6605_v59  ;;  %v288_v57 = vld [vmem:[%s6373_s25 + $0x1f0] sm:$0xff]  ;;  %v3052_v59 = vld [vmem:[%s8430_s2 + $0x40] sm:$0xff]  ;;  %v285_v49 = vld [vmem:[%s6373_s25 + $0x1d8] sm:$0xff]  ;;  %8667 = vst [vmem:[#allocation36_spill] sm:$0xff] %v6649_v58 }
  0x47   : > { %2046 = vperm.xlu1 %6032, %v2028_v16   ;;  %3058 = vperm.xlu0 %6031, %v3052_v59   ;;  %8668 = vst [vmem:[#allocation37_spill] sm:$0xff] %v6656_v56  ;;  %v6665_v16 = vcombine.low %v291_v14, %v295_v34  ;;  %v6670_v59 = vld [vmem:[%s8429_s1] ss:$8 sps:$4 sm:$0xff]   ;;  %v6672_v27 = vcombine.high %v284_v48, %v288_v57  ;;  %v3055_v14 = vld [vmem:[%s8430_s2 + $0x58] sm:$0xff] }
  0x48   : > { %v6683_v34 = vcombine.low %v284_v48, %v288_v57  ;;  %v269_v48 = vld [vmem:[%s6373_s25 + $0x158] sm:$0xff] }
  0x49   : > { %1069 = vmatpush2.bf16.msra.mxu0 %v6612_v3  ;;  %1122 = vmatpush2.bf16.msra.mxu1 %v6621_v2  ;;  %v3053_v2 = vld [vmem:[%s8430_s2 + $0x48] sm:$0xff]  ;;  %8669 = vst [vmem:[#allocation38_spill] sm:$0xff] %v6665_v16  ;;  %8670 = vst [vmem:[#allocation39_spill] sm:$0xff] %v6672_v27  ;;  %v281_v3 = vld [vmem:[%s6373_s25 + $0x1b8] sm:$0xff] }
  0x4a   : > { %1070 = vmatprep.subr.bf16.mxu0 %v6623_v17  ;;  %1123 = vmatprep.subr.bf16.mxu1 %v6627_v33  ;;  %v280_v17 = vld [vmem:[%s6373_s25 + $0x1b0] sm:$0xff]  ;;  %8672 = vst [vmem:[#allocation41_spill] sm:$0xff] %v6683_v34  ;;  %v6704_v51 = vcombine.high %v277_v5, %v281_v3 }
  0x4b   : > { %v3054_v33 = vld [vmem:[%s8430_s2 + $0x50] sm:$0xff]  ;;  %3063 = vperm.xlu1 %6032, %v3053_v2   ;;  %v4079_v2 = vld [vmem:[%s8430_s2 + $0x60] sm:$0xff]  ;;  %v6699_v57 = vcombine.high %v276_v1, %v280_v17 }
  0x4c   : > { %3068 = vperm.xlu0 %6031, %v3054_v33   ;;  %v6697_v33 = vcombine.low %v285_v49, %v289_v50  ;;  %8675 = vst [vmem:[#allocation44_spill] sm:$0xff] %v6704_v51 }
  0x4d   : > { %1071 = vmatpush2.bf16.msra.mxu0 %v6634_v43  ;;  %1124 = vmatpush2.bf16.msra.mxu1 %v6643_v18  ;;  %v6676_v43 = vcombine.high %v285_v49, %v289_v50  ;;  %v272_v18 = vld [vmem:[%s6373_s25 + $0x170] sm:$0xff]  ;;  %8674 = vst [vmem:[#allocation43_spill] sm:$0xff] %v6699_v57  ;;  %v4080_v49 = vld [vmem:[%s8430_s2 + $0x68] sm:$0xff]  ;;  %v6715_v50 = vcombine.low %v276_v1, %v280_v17 }
  0x4e   : > { %1072 = vmatprep.subr.bf16.mxu0 %v6645_v32  ;;  %1125 = vmatprep.subr.bf16.mxu1 %v6649_v58  ;;  %v268_v32 = vld [vmem:[%s6373_s25 + $0x150] sm:$0xff]  ;;  %8673 = vst [vmem:[#allocation42_spill] sm:$0xff] %v6697_v33 }
  0x4f   : > { %8671 = vst [vmem:[#allocation40_spill] sm:$0xff] %v6676_v43  ;;  %v6690_v58 = vld [vmem:[%s8429_s1 + $0x14] ss:$8 sps:$4 sm:$0xff]   ;;  %3073 = vperm.xlu1 %6032, %v3055_v14   ;;  %8676 = vst [vmem:[#allocation45_spill] sm:$0xff] %v6715_v50  ;;  %v6721_v14 = vcombine.low %v277_v5, %v281_v3  ;;  %v6730_v17 = vld [vmem:[%s8429_s1 + $0x10] ss:$8 sps:$4 sm:$0xff]   ;;  %v6738_v3 = vcombine.low %v268_v32, %v272_v18 }
  0x50   : > { %4085 = vperm.xlu0 %6031, %v4079_v2   ;;  %v6723_v2 = vcombine.high %v268_v32, %v272_v18  ;;  %v252_v5 = vld [vmem:[%s6373_s25 + $0xd0] sm:$0xff]  ;;  %v6751_v18 = vcombine.high %v261_v42, %v265_v41  ;;  %v4082_v32 = vld [vmem:[%s8430_s2 + $0x78] sm:$0xff] }
  0x51   : > { %1073 = vmatpush2.bf16.msra.mxu0 %v6656_v56  ;;  %1126 = vmatpush2.bf16.msra.mxu1 %v6665_v16  ;;  %v273_v56 = vld [vmem:[%s6373_s25 + $0x178] sm:$0xff]  ;;  %v4081_v16 = vld [vmem:[%s8430_s2 + $0x70] sm:$0xff]  ;;  %8677 = vst [vmem:[#allocation46_spill] sm:$0xff] %v6721_v14  ;;  %8680 = vst [vmem:[#allocation49_spill] sm:$0xff] %v6738_v3 }
  0x52   : > { %1148 = vmatprep.subr.bf16.mxu0 %v6672_v27  ;;  %1201 = vmatprep.subr.bf16.mxu1 %v6676_v43  ;;  %v260_v43 = vld [vmem:[%s6373_s25 + $0x110] sm:$0xff]  ;;  %8678 = vst [vmem:[#allocation47_spill] sm:$0xff] %v6723_v2  ;;  %v6733_v1 = vcombine.high %v269_v48, %v273_v56  ;;  %8683 = vst [vmem:[#allocation52_spill] sm:$0xff] %v6751_v18 }
  0x53   : > { %v264_v27 = vld [vmem:[%s6373_s25 + $0x130] sm:$0xff]  ;;  %4090 = vperm.xlu1 %6032, %v4080_v49  }
  0x54   : > { %1075 = vmatmul.mubr.bf16.vlgmr.msra.gmra.mxu0 %v6670_v59  ;;  %1128 = vmatmul.mubr.bf16.vlgmr.msra.gmra.mxu1 %v6670_v59  ;;  %8679 = vst [vmem:[#allocation48_spill] sm:$0xff] %v6733_v1  ;;  %v248_v49 = vld [vmem:[%s6373_s25 + $0xb0] sm:$0xff] }
  0x55   : > { %1149 = vmatpush1.bf16.msra.mxu0 %v6683_v34  ;;  %1202 = vmatpush1.bf16.msra.mxu1 %v6697_v33  ;;  %v6746_v33 = vcombine.high %v260_v43, %v264_v27  ;;  %v253_v34 = vld [vmem:[%s6373_s25 + $0xd8] sm:$0xff] }
  0x56   : > { %1150 = vmatprep.subr.bf16.mxu0 %v6699_v57  ;;  %1203 = vmatprep.subr.bf16.mxu1 %v6704_v51  ;;  %v256_v57 = vld [vmem:[%s6373_s25 + $0xf0] sm:$0xff]  ;;  %v6744_v51 = vcombine.low %v269_v48, %v273_v56  ;;  %v6758_v56 = vcombine.low %v260_v43, %v264_v27 }
  0x57   : > { %1084 = vmatprep.mubr.bf16.mxu0 %v6690_v58  ;;  %1137 = vmatprep.mubr.bf16.mxu1 %v6690_v58  ;;  %8682 = vst [vmem:[#allocation51_spill] sm:$0xff] %v6746_v33  ;;  %v244_v48 = vld [vmem:[%s6373_s25 + $0x90] sm:$0xff] }
  0x58   : > { %4095 = vperm.xlu0 %6031, %v4081_v16   ;;  %8681 = vst [vmem:[#allocation50_spill] sm:$0xff] %v6744_v51  ;;  %v257_v16 = vld [vmem:[%s6373_s25 + $0xf8] sm:$0xff]  ;;  %8684 = vst [vmem:[#allocation53_spill] sm:$0xff] %v6758_v56  ;;  %4100 = vperm.xlu1 %6032, %v4082_v32   ;;  %v240_v27 = vld [vmem:[%s6373_s25 + $0x70] sm:$0xff] }
  0x59   : > { %1151 = vmatpush1.bf16.msra.mxu0 %v6715_v50  ;;  %1204 = vmatpush1.bf16.msra.mxu1 %v6721_v14  ;;  %v245_v14 = vld [vmem:[%s6373_s25 + $0x98] sm:$0xff]  ;;  %v6772_v43 = vcombine.high %v253_v34, %v257_v16 }
  0x5a   : > { %1152 = vmatprep.subr.bf16.mxu0 %v6723_v2  ;;  %1205 = vmatprep.subr.bf16.mxu1 %v6733_v1  ;;  %v6765_v1 = vcombine.low %v261_v42, %v265_v41  ;;  %v6767_v2 = vcombine.high %v252_v5, %v256_v57  ;;  %v6777_v41 = vcombine.low %v252_v5, %v256_v57  ;;  %v236_v42 = vld [vmem:[%s6373_s25 + $0x50] sm:$0xff] }
  0x5b   : > { %8687 = vst [vmem:[#allocation56_spill] sm:$0xff] %v6772_v43  ;;  %v6793_v57 = vcombine.low %v244_v48, %v248_v49  ;;  %v228_v5 = vld [vmem:[%s6373_s25 + $0x10] sm:$0xff] }
  0x5c   : > { %1085 = vmatmul.mubr.bf16.gmra.mxu0 %v6730_v17  ;;  %1138 = vmatmul.mubr.bf16.gmra.mxu1 %v6730_v17  ;;  %8685 = vst [vmem:[#allocation54_spill] sm:$0xff] %v6765_v1  ;;  %8686 = vst [vmem:[#allocation55_spill] sm:$0xff] %v6767_v2 }
  0x5d   : > { %1153 = vmatpush1.bf16.msra.mxu0 %v6738_v3  ;;  %1206 = vmatpush1.bf16.msra.mxu1 %v6744_v51  ;;  %v249_v3 = vld [vmem:[%s6373_s25 + $0xb8] sm:$0xff]  ;;  %8688 = vst [vmem:[#allocation57_spill] sm:$0xff] %v6777_v41  ;;  %8692 = vst [vmem:[#allocation61_spill] sm:$0xff] %v6793_v57 }
  0x5e   : > { %1154 = vmatprep.subr.bf16.mxu0 %v6746_v33  ;;  %1207 = vmatprep.subr.bf16.mxu1 %v6751_v18  ;;  %v6783_v18 = vcombine.low %v253_v34, %v257_v16  ;;  %v6785_v33 = vcombine.high %v244_v48, %v248_v49  ;;  %v241_v51 = vld [vmem:[%s6373_s25 + $0x78] sm:$0xff]  ;;  %v6790_v32 = vcombine.high %v245_v14, %v249_v3  ;;  %v348_v49 = vld [vmem:[%s6373_s25 + $0x3d0] sm:$0xff] }
  0x5f   : > { %1180 = vmatprep.mubr.bf16.mxu0 %v6363_v0  ;;  %1233 = vmatprep.mubr.bf16.mxu1 %v6363_v0  ;;  %v237_v0 = vld [vmem:[%s6373_s25 + $0x58] sm:$0xff]  ;;  %v6799_v34 = vcombine.low %v245_v14, %v249_v3  ;;  %v6801_v16 = vcombine.high %v236_v42, %v240_v27  ;;  %v6809_v48 = vcombine.low %v236_v42, %v240_v27  ;;  %v340_v27 = vld [vmem:[%s6373_s25 + $0x390] sm:$0xff] }
  0x60   : > { %8689 = vst [vmem:[#allocation58_spill] sm:$0xff] %v6783_v18  ;;  %8690 = vst [vmem:[#allocation59_spill] sm:$0xff] %v6785_v33  ;;  %v6815_v14 = vcombine.low %v237_v0, %v241_v51 }
  0x61   : > { %1155 = vmatpush1.bf16.msra.mxu0 %v6758_v56  ;;  %1208 = vmatpush1.bf16.msra.mxu1 %v6765_v1  ;;  %8691 = vst [vmem:[#allocation60_spill] sm:$0xff] %v6790_v32  ;;  %v232_v1 = vld [vmem:[%s6373_s25 + $0x30] sm:$0xff]  ;;  %8693 = vst [vmem:[#allocation62_spill] sm:$0xff] %v6799_v34 }
  0x62   : > { %1156 = vmatprep.subr.bf16.mxu0 %v6767_v2  ;;  %1209 = vmatprep.subr.bf16.mxu1 %v6772_v43  ;;  %8694 = vst [vmem:[#allocation63_spill] sm:$0xff] %v6801_v16  ;;  %v229_v43 = vld [vmem:[%s6373_s25 + $0x18] sm:$0xff]  ;;  %8696 = vst [vmem:[#allocation65_spill] sm:$0xff] %v6809_v48  ;;  %v6817_v3 = vcombine.high %v228_v5, %v232_v1  ;;  %v6825_v42 = vcombine.low %v228_v5, %v232_v1  ;;  %v332_v5 = vld [vmem:[%s6373_s25 + $0x350] sm:$0xff] }
  0x63   : > { %v233_v2 = vld [vmem:[%s6373_s25 + $0x38] sm:$0xff]  ;;  %8697 = vst [vmem:[#allocation66_spill] sm:$0xff] %v6815_v14 }
  0x64   : > { %8698 = vst [vmem:[#allocation67_spill] sm:$0xff] %v6817_v3  ;;  %8700 = vst [vmem:[#allocation69_spill] sm:$0xff] %v6825_v42 }
  0x65   : > { %1157 = vmatpush1.bf16.msra.mxu0 %v6777_v41  ;;  %1210 = vmatpush1.bf16.msra.mxu1 %v6783_v18  ;;  %v6806_v41 = vcombine.high %v237_v0, %v241_v51  ;;  %v352_v18 = vld [vmem:[%s6373_s25 + $0x3f0] sm:$0xff]  ;;  %v6831_v51 = vcombine.low %v229_v43, %v233_v2 }
  0x66   : > { %1158 = vmatprep.subr.bf16.mxu0 %v6785_v33  ;;  %1211 = vmatprep.subr.bf16.mxu1 %v6790_v32  ;;  %v349_v32 = vld [vmem:[%s6373_s25 + $0x3d8] sm:$0xff]  ;;  %v6833_v0 = vcombine.high %v348_v49, %v352_v18  ;;  %v6841_v1 = vcombine.low %v348_v49, %v352_v18  ;;  %v324_v49 = vld [vmem:[%s6373_s25 + $0x310] sm:$0xff] }
  0x67   : > { %8695 = vst [vmem:[#allocation64_spill] sm:$0xff] %v6806_v41  ;;  %v353_v33 = vld [vmem:[%s6373_s25 + $0x3f8] sm:$0xff]  ;;  %8701 = vst [vmem:[#allocation70_spill] sm:$0xff] %v6831_v51 }
  0x68   : > { %8702 = vst [vmem:[#allocation71_spill] sm:$0xff] %v6833_v0  ;;  %8704 = vst [vmem:[#allocation73_spill] sm:$0xff] %v6841_v1 }
  0x69   : > { %1159 = vmatpush1.bf16.msra.mxu0 %v6793_v57  ;;  %1212 = vmatpush1.bf16.msra.mxu1 %v6799_v34  ;;  %v6822_v57 = vcombine.high %v229_v43, %v233_v2  ;;  %v344_v34 = vld [vmem:[%s6373_s25 + $0x3b0] sm:$0xff]  ;;  %v6847_v2 = vcombine.low %v349_v32, %v353_v33 }
  0x6a   : > { %1160 = vmatprep.subr.bf16.mxu0 %v6801_v16  ;;  %1213 = vmatprep.subr.bf16.mxu1 %v6806_v41  ;;  %v341_v41 = vld [vmem:[%s6373_s25 + $0x398] sm:$0xff]  ;;  %v6849_v43 = vcombine.high %v340_v27, %v344_v34  ;;  %v6857_v18 = vcombine.low %v340_v27, %v344_v34  ;;  %v316_v27 = vld [vmem:[%s6373_s25 + $0x2d0] sm:$0xff] }
  0x6b   : > { %8699 = vst [vmem:[#allocation68_spill] sm:$0xff] %v6822_v57  ;;  %v345_v16 = vld [vmem:[%s6373_s25 + $0x3b8] sm:$0xff]  ;;  %8705 = vst [vmem:[#allocation74_spill] sm:$0xff] %v6847_v2 }
  0x6c   : > { %8706 = vst [vmem:[#allocation75_spill] sm:$0xff] %v6849_v43  ;;  %8708 = vst [vmem:[#allocation77_spill] sm:$0xff] %v6857_v18 }
  0x6d   : > { %1161 = vmatpush1.bf16.msra.mxu0 %v6809_v48  ;;  %1214 = vmatpush1.bf16.msra.mxu1 %v6815_v14  ;;  %v6838_v48 = vcombine.high %v349_v32, %v353_v33  ;;  %v336_v14 = vld [vmem:[%s6373_s25 + $0x370] sm:$0xff]  ;;  %v6863_v33 = vcombine.low %v341_v41, %v345_v16 }
  0x6e   : > { %1162 = vmatprep.subr.bf16.mxu0 %v6817_v3  ;;  %1215 = vmatprep.subr.bf16.mxu1 %v6822_v57  ;;  %v333_v57 = vld [vmem:[%s6373_s25 + $0x358] sm:$0xff]  ;;  %v6865_v32 = vcombine.high %v332_v5, %v336_v14  ;;  %v6873_v34 = vcombine.low %v332_v5, %v336_v14  ;;  %v308_v5 = vld [vmem:[%s6373_s25 + $0x290] sm:$0xff] }
  0x6f   : > { %8703 = vst [vmem:[#allocation72_spill] sm:$0xff] %v6838_v48  ;;  %v337_v3 = vld [vmem:[%s6373_s25 + $0x378] sm:$0xff]  ;;  %8709 = vst [vmem:[#allocation78_spill] sm:$0xff] %v6863_v33 }
  0x70   : > { %8710 = vst [vmem:[#allocation79_spill] sm:$0xff] %v6865_v32  ;;  %8712 = vst [vmem:[#allocation81_spill] sm:$0xff] %v6873_v34 }
  0x71   : > { %1163 = vmatpush1.bf16.msra.mxu0 %v6825_v42  ;;  %1216 = vmatpush1.bf16.msra.mxu1 %v6831_v51  ;;  %v6854_v42 = vcombine.high %v341_v41, %v345_v16  ;;  %v328_v51 = vld [vmem:[%s6373_s25 + $0x330] sm:$0xff]  ;;  %v6879_v41 = vcombine.low %v333_v57, %v337_v3 }
  0x72   : > { %1164 = vmatprep.subr.bf16.mxu0 %v6833_v0  ;;  %1217 = vmatprep.subr.bf16.mxu1 %v6838_v48  ;;  %v325_v48 = vld [vmem:[%s6373_s25 + $0x318] sm:$0xff]  ;;  %v6881_v16 = vcombine.high %v324_v49, %v328_v51  ;;  %v6889_v14 = vcombine.low %v324_v49, %v328_v51  ;;  %v300_v49 = vld [vmem:[%s6373_s25 + $0x250] sm:$0xff] }
  0x73   : > { %8707 = vst [vmem:[#allocation76_spill] sm:$0xff] %v6854_v42  ;;  %v329_v0 = vld [vmem:[%s6373_s25 + $0x338] sm:$0xff]  ;;  %8713 = vst [vmem:[#allocation82_spill] sm:$0xff] %v6879_v41 }
  0x74   : > { %8714 = vst [vmem:[#allocation83_spill] sm:$0xff] %v6881_v16  ;;  %8716 = vst [vmem:[#allocation85_spill] sm:$0xff] %v6889_v14 }
  0x75   : > { %1165 = vmatpush2.bf16.msra.mxu0 %v6841_v1  ;;  %1218 = vmatpush2.bf16.msra.mxu1 %v6847_v2  ;;  %v6870_v1 = vcombine.high %v333_v57, %v337_v3  ;;  %v320_v2 = vld [vmem:[%s6373_s25 + $0x2f0] sm:$0xff]  ;;  %v6895_v57 = vcombine.low %v325_v48, %v329_v0 }
  0x76   : > { %1166 = vmatprep.subr.bf16.mxu0 %v6849_v43  ;;  %1219 = vmatprep.subr.bf16.mxu1 %v6854_v42  ;;  %v317_v42 = vld [vmem:[%s6373_s25 + $0x2d8] sm:$0xff]  ;;  %v6897_v3 = vcombine.high %v316_v27, %v320_v2  ;;  %v6905_v51 = vcombine.low %v316_v27, %v320_v2  ;;  %v292_v27 = vld [vmem:[%s6373_s25 + $0x210] sm:$0xff] }
  0x77   : > { %8711 = vst [vmem:[#allocation80_spill] sm:$0xff] %v6870_v1  ;;  %v321_v43 = vld [vmem:[%s6373_s25 + $0x2f8] sm:$0xff]  ;;  %8717 = vst [vmem:[#allocation86_spill] sm:$0xff] %v6895_v57 }
  0x78   : > { %8718 = vst [vmem:[#allocation87_spill] sm:$0xff] %v6897_v3  ;;  %8720 = vst [vmem:[#allocation89_spill] sm:$0xff] %v6905_v51 }
  0x79   : > { %1167 = vmatpush2.bf16.msra.mxu0 %v6857_v18  ;;  %1220 = vmatpush2.bf16.msra.mxu1 %v6863_v33  ;;  %v6886_v18 = vcombine.high %v325_v48, %v329_v0  ;;  %v312_v33 = vld [vmem:[%s6373_s25 + $0x2b0] sm:$0xff]  ;;  %v6911_v48 = vcombine.low %v317_v42, %v321_v43 }
  0x7a   : > { %1168 = vmatprep.subr.bf16.mxu0 %v6865_v32  ;;  %1221 = vmatprep.subr.bf16.mxu1 %v6870_v1  ;;  %v309_v1 = vld [vmem:[%s6373_s25 + $0x298] sm:$0xff]  ;;  %v6913_v0 = vcombine.high %v308_v5, %v312_v33  ;;  %v6921_v2 = vcombine.low %v308_v5, %v312_v33 }
  0x7b   : > { %8715 = vst [vmem:[#allocation84_spill] sm:$0xff] %v6886_v18  ;;  %v313_v32 = vld [vmem:[%s6373_s25 + $0x2b8] sm:$0xff]  ;;  %8721 = vst [vmem:[#allocation90_spill] sm:$0xff] %v6911_v48 }
  0x7c   : > { %8722 = vst [vmem:[#allocation91_spill] sm:$0xff] %v6913_v0  ;;  %v6918_v56 = vcombine.high %v309_v1, %v313_v32  ;;  %8724 = vst [vmem:[#allocation93_spill] sm:$0xff] %v6921_v2 }
  0x7d   : > { %1169 = vmatpush2.bf16.msra.mxu0 %v6873_v34  ;;  %1222 = vmatpush2.bf16.msra.mxu1 %v6879_v41  ;;  %v6902_v34 = vcombine.high %v317_v42, %v321_v43  ;;  %v304_v41 = vld [vmem:[%s6373_s25 + $0x270] sm:$0xff]  ;;  %v6927_v42 = vcombine.low %v309_v1, %v313_v32 }
  0x7e   : > { %1170 = vmatprep.subr.bf16.mxu0 %v6881_v16  ;;  %1223 = vmatprep.subr.bf16.mxu1 %v6886_v18  ;;  %v301_v18 = vld [vmem:[%s6373_s25 + $0x258] sm:$0xff]  ;;  %8723 = vst [vmem:[#allocation92_spill] sm:$0xff] %v6918_v56  ;;  %v6929_v43 = vcombine.high %v300_v49, %v304_v41  ;;  %v6937_v33 = vcombine.low %v300_v49, %v304_v41 }
  0x7f   : > { %8719 = vst [vmem:[#allocation88_spill] sm:$0xff] %v6902_v34  ;;  %v305_v16 = vld [vmem:[%s6373_s25 + $0x278] sm:$0xff]  ;;  %8725 = vst [vmem:[#allocation94_spill] sm:$0xff] %v6927_v42 }
  0x80   : > { %8726 = vst [vmem:[#allocation95_spill] sm:$0xff] %v6929_v43  ;;  %8728 = vst [vmem:[#allocation97_spill] sm:$0xff] %v6937_v33  ;;  %v6941_v5 = vcombine.low %v301_v18, %v305_v16  ;;  %v6040_v49 = vld [vmem:[%s8431_s3 + $0xf8] sm:$0xff]  }
  0x81   : > { %1171 = vmatpush2.bf16.msra.mxu0 %v6889_v14  ;;  %1224 = vmatpush2.bf16.msra.mxu1 %v6895_v57  ;;  %v296_v57 = vld [vmem:[%s6373_s25 + $0x230] sm:$0xff]  ;;  %v297_v14 = vld [vmem:[%s6373_s25 + $0x238] sm:$0xff] }
  0x82   : > { %1172 = vmatprep.subr.bf16.mxu0 %v6897_v3  ;;  %1225 = vmatprep.subr.bf16.mxu1 %v6902_v34  ;;  %v293_v3 = vld [vmem:[%s6373_s25 + $0x218] sm:$0xff]  ;;  %v6934_v34 = vcombine.high %v301_v18, %v305_v16  ;;  %8729 = vst [vmem:[#allocation98_spill] sm:$0xff] %v6941_v5  ;;  %v6943_v1 = vcombine.high %v292_v27, %v296_v57 }
  0x83   : > { %v6946_v32 = vcombine.high %v293_v3, %v297_v14  ;;  %v6952_v41 = vcombine.low %v292_v27, %v296_v57  ;;  %v6959_v18 = vcombine.low %v293_v3, %v297_v14  ;;  %v6041_v16 = vld [vmem:[%s8431_s3 + $0x38] sm:$0xff]   ;;  %v6043_v27 = vld [vmem:[%s8431_s3 + $0x70] sm:$0xff]  }
  0x84   : > { %8727 = vst [vmem:[#allocation96_spill] sm:$0xff] %v6934_v34  ;;  %8730 = vst [vmem:[#allocation99_spill] sm:$0xff] %v6943_v1  ;;  %v6042_v57 = vld [vmem:[%s8431_s3 + $0xb8] sm:$0xff]   ;;  %v6044_v14 = vld [vmem:[%s8431_s3 + $0xf0] sm:$0xff]  }
  0x85   : > { %1173 = vmatpush2.bf16.msra.mxu0 %v6905_v51  ;;  %1226 = vmatpush2.bf16.msra.mxu1 %v6911_v48  ;;  %8731 = vst [vmem:[#allocation100_spill] sm:$0xff] %v6946_v32  ;;  %8732 = vst [vmem:[#allocation101_spill] sm:$0xff] %v6952_v41  ;;  %v6045_v3 = vld [vmem:[%s8431_s3 + $0x30] sm:$0xff]  }
  0x86   : > { %1174 = vmatprep.subr.bf16.mxu0 %v6913_v0  ;;  %1227 = vmatprep.subr.bf16.mxu1 %v6918_v56  ;;  %v6039_v56 = vld [vmem:[%s8431_s3 + $0x78] sm:$0xff]   ;;  %8733 = vst [vmem:[#allocation102_spill] sm:$0xff] %v6959_v18 }
  0x89   : > { %1175 = vmatpush2.bf16.msra.mxu0 %v6921_v2  ;;  %1228 = vmatpush2.bf16.msra.mxu1 %v6927_v42 }
  0x8a   : > { %1176 = vmatprep.subr.bf16.mxu0 %v6929_v43  ;;  %1229 = vmatprep.subr.bf16.mxu1 %v6934_v34 }
  0x8d   : > { %1177 = vmatpush2.bf16.msra.mxu0 %v6937_v33  ;;  %1230 = vmatpush2.bf16.msra.mxu1 %v6941_v5 }
  0x8e   : > { %1178 = vmatprep.subr.bf16.mxu0 %v6943_v1  ;;  %1231 = vmatprep.subr.bf16.mxu1 %v6946_v32 }
  0x91   : > { %1179 = vmatpush2.bf16.msra.mxu0 %v6952_v41  ;;  %1232 = vmatpush2.bf16.msra.mxu1 %v6959_v18  ;;  %v6046_v18 = vld [vmem:[%s8431_s3 + $0xb0] sm:$0xff]   ;;  %v6052_v41 = vld [vmem:[%s8431_s3 + $0xe0] sm:$0xff]  }
  0x92   : > { %5574 = vmatprep.subr.bf16.mxu0 %v6039_v56  ;;  %5602 = vmatprep.subr.bf16.mxu1 %v6040_v49  ;;  %v6047_v56 = vld [vmem:[%s8431_s3 + $0x68] sm:$0xff]  }
  0x93   : > { %v6049_v49 = vld [vmem:[%s8431_s3 + $0x28] sm:$0xff]  }
  0x94   : > { %1181 = vmatmul.mubr.bf16.vlgmr.msra.gmra.mxu0 %v6670_v59  ;;  %1234 = vmatmul.mubr.bf16.vlgmr.msra.gmra.mxu1 %v6670_v59  ;;  %v6048_v59 = vld [vmem:[%s8431_s3 + $0xe8] sm:$0xff]  }
  0x95   : > { %1190 = vmatprep.mubr.bf16.mxu0 %v6690_v58  ;;  %1243 = vmatprep.mubr.bf16.mxu1 %v6690_v58  ;;  %v6050_v58 = vld [vmem:[%s8431_s3 + $0xa8] sm:$0xff]  }
  0x96   : > { %5575 = vmatpush3.bf16.msra.mxu0 %v6041_v16  ;;  %5603 = vmatpush3.bf16.msra.mxu1 %v6042_v57  ;;  %v6051_v16 = vld [vmem:[%s8431_s3 + $0x60] sm:$0xff]  }
  0x97   : > { %5576 = vmatprep.subr.bf16.mxu0 %v6043_v27  ;;  %5604 = vmatprep.subr.bf16.mxu1 %v6044_v14  ;;  %v6053_v57 = vld [vmem:[%s8431_s3 + $0x20] sm:$0xff]   ;;  %v6055_v14 = vld [vmem:[%s8431_s3 + $0x58] sm:$0xff]  }
  0x98   : > { %v6054_v27 = vld [vmem:[%s8431_s3 + $0xa0] sm:$0xff]  }
  0x9a   : > { %5577 = vmatpush3.bf16.msra.mxu0 %v6045_v3  ;;  %5605 = vmatpush3.bf16.msra.mxu1 %v6046_v18  ;;  %v6056_v18 = vld [vmem:[%s8431_s3 + $0xd8] sm:$0xff]  }
  0x9b   : > { %5578 = vmatprep.subr.bf16.mxu0 %v6047_v56  ;;  %5606 = vmatprep.subr.bf16.mxu1 %v6048_v59  ;;  %v6058_v3 = vld [vmem:[%s8431_s3 + $0x98] sm:$0xff]   ;;  %v6059_v56 = vld [vmem:[%s8431_s3 + $0x50] sm:$0xff]  }
  0x9c   : > { %1191 = vmatmul.mubr.bf16.gmra.mxu0 %v6730_v17  ;;  %1244 = vmatmul.mubr.bf16.gmra.mxu1 %v6730_v17  ;;  %v6057_v17 = vld [vmem:[%s8431_s3 + $0x18] sm:$0xff]   ;;  %v6061_v59 = vld [vmem:[%s8431_s3 + $0x10] sm:$0xff]  }
  0x9e   : > { %5579 = vmatpush3.bf16.msra.mxu0 %v6049_v49  ;;  %5607 = vmatpush3.bf16.msra.mxu1 %v6050_v58  ;;  %v6062_v49 = vld [vmem:[%s8431_s3 + $0x90] sm:$0xff]   ;;  %v6063_v58 = vld [vmem:[%s8431_s3 + $0x48] sm:$0xff]  }
  0x9f   : > { %5580 = vmatprep.subr.bf16.mxu0 %v6051_v16  ;;  %5608 = vmatprep.subr.bf16.mxu1 %v6052_v41  ;;  %v6060_v41 = vld [vmem:[%s8431_s3 + $0xd0] sm:$0xff]   ;;  %v6064_v16 = vld [vmem:[%s8431_s3 + $0xc8] sm:$0xff]  }
  0xa2   : > { %5581 = vmatpush3.bf16.msra.mxu0 %v6053_v57  ;;  %5609 = vmatpush3.bf16.msra.mxu1 %v6054_v27  ;;  %v6065_v57 = vld [vmem:[%s8431_s3 + $0x8] sm:$0xff]  }
  0xa3   : > { %5582 = vmatprep.subr.bf16.mxu0 %v6055_v14  ;;  %5610 = vmatprep.subr.bf16.mxu1 %v6056_v18  ;;  %v6066_v27 = vld [vmem:[%s8431_s3 + $0x88] sm:$0xff]   ;;  %v6067_v14 = vld [vmem:[%s8431_s3 + $0x40] sm:$0xff]  }
  0xa4   : > { %v6068_v18 = vld [vmem:[%s8431_s3 + $0xc0] sm:$0xff]  }
  0xa6   : > { %5583 = vmatpush3.bf16.msra.mxu0 %v6057_v17  ;;  %5611 = vmatpush3.bf16.msra.mxu1 %v6058_v3  ;;  %v6069_v17 = vld [vmem:[%s8431_s3] sm:$0xff]  }
  0xa7   : > { %5584 = vmatprep.subr.bf16.mxu0 %v6059_v56  ;;  %5612 = vmatprep.subr.bf16.mxu1 %v6060_v41  ;;  %v6070_v3 = vld [vmem:[%s8431_s3 + $0x80] sm:$0xff]   ;;  %v6071_v56 = vld [vmem:[%s8431_s3 + $0x178] sm:$0xff]   ;;  %v7076_v33 = vpop.permute.xlu1 %374 }
  0xa8   : > { %v6072_v41 = vld [vmem:[%s8431_s3 + $0x1f8] sm:$0xff]  }
  0xaa   : > { %5585 = vmatpush3.bf16.msra.mxu0 %v6061_v59  ;;  %5613 = vmatpush3.bf16.msra.mxu1 %v6062_v49  ;;  %v7066_v59 = vpop.permute.xlu0 %364 }
  0xab   : > { %5586 = vmatprep.subr.bf16.mxu0 %v6063_v58  ;;  %5614 = vmatprep.subr.bf16.mxu1 %v6064_v16 }
  0xae   : > { %5587 = vmatpush3.bf16.msra.mxu0 %v6065_v57  ;;  %5615 = vmatpush3.bf16.msra.mxu1 %v6066_v27  ;;  %v7068_v57 = vpop.permute.xlu0 %369 }
  0xaf   : > { %5588 = vmatprep.subr.bf16.mxu0 %v6067_v14  ;;  %5616 = vmatprep.subr.bf16.mxu1 %v6068_v18 }
  0xb2   : > { %5589 = vmatpush3.bf16.msra.mxu0 %v6069_v17  ;;  %5617 = vmatpush3.bf16.msra.mxu1 %v6070_v3 }
  0xb3   : > { %5630 = vmatprep.subr.bf16.mxu0 %v6071_v56  ;;  %5658 = vmatprep.subr.bf16.mxu1 %v6072_v41 }
 0x114   : > { %v1076_v49 = vpop.f32.mrf.mxu0  ;;  %v1129_v58 = vpop.f32.mrf.mxu1 }
 0x115   : > { %v1130_v32 = vadd.f32 %v1129_v58, %v7066_v59  ;;  %v1077_v17 = vadd.f32 %v1076_v49, %v7066_v59 }
 0x116   : > { %v1078_v16 = vpop.f32.mrf.mxu0  ;;  %v1131_v27 = vpop.f32.mrf.mxu1 }
 0x117   : > { %v1079_v18 = vadd.f32 %v1078_v16, %v7066_v59  ;;  %v1132_v3 = vadd.f32 %v1131_v27, %v7066_v59  ;;  %v1256_v16 = vmax.f32 %v1130_v32, 0.0  ;;  %v1254_v49 = vmax.f32 %v1077_v17, 0.0  ;;  %v6074_v17 = vld [vmem:[%s8431_s3 + $0x1b8] sm:$0xff]  }
 0x118   : > { %v1080_v14 = vpop.f32.mrf.mxu0  ;;  %v1133_v5 = vpop.f32.mrf.mxu1 }
 0x119   : > { %v1081_v1 = vadd.f32 %v1080_v14, %v7068_v57  ;;  %v1134_v56 = vadd.f32 %v1133_v5, %v7068_v57  ;;  %v1255_v0 = vmax.f32 %v1079_v18, 0.0  ;;  %v1257_v50 = vmax.f32 %v1132_v3, 0.0 }
 0x11a   : > { %v1082_v41 = vpop.f32.mrf.mxu0  ;;  %v1135_v43 = vpop.f32.mrf.mxu1 }
 0x11b   : > { %v1083_v34 = vadd.f32 %v1082_v41, %v7068_v57  ;;  %v1262_v42 = vmax.f32 %v1081_v1, 0.0  ;;  %v1136_v58 = vadd.f32 %v1135_v43, %v7068_v57  ;;  %v1264_v14 = vmax.f32 %v1134_v56, 0.0  ;;  %v6073_v43 = vld [vmem:[%s8431_s3 + $0x138] sm:$0xff]  }
 0x11c   : > { %v1086_v2 = vpop.f32.mrf.mxu0  ;;  %v1139_v51 = vpop.f32.mrf.mxu1 }
 0x11d   : > { %v1263_v48 = vmax.f32 %v1083_v34, 0.0  ;;  %v1265_v27 = vmax.f32 %v1136_v58, 0.0  ;;  %v1087_v5 = vadd.f32 %v1086_v2, %v7076_v33  ;;  %v1140_v41 = vadd.f32 %v1139_v51, %v7076_v33  ;;  %v7086_v34 = vpop.permute.xlu1 %379 }
 0x11e   : > { %v1088_v40 = vpop.f32.mrf.mxu0  ;;  %v1141_v1 = vpop.f32.mrf.mxu1  ;;  %v1286_v32 = vpack.c.bf16 %v1262_v42, %v1254_v49  ;;  %v1288_v51 = vpack.c.bf16 %v1264_v14, %v1256_v16  ;;  %v6077_v16 = vld [vmem:[%s8431_s3 + $0x130] sm:$0xff]  }
 0x11f   : > { %v1287_v35 = vpack.c.bf16 %v1263_v48, %v1255_v0  ;;  %v1089_v26 = vadd.f32 %v1088_v40, %v7076_v33  ;;  %v1289_v18 = vpack.c.bf16 %v1265_v27, %v1257_v50  ;;  %v1142_v48 = vadd.f32 %v1141_v1, %v7076_v33  ;;  %v6075_v40 = vld [vmem:[%s8431_s3 + $0x170] sm:$0xff]  }
 0x120   : > { %v1090_v2 = vpop.f32.mrf.mxu0  ;;  %v1143_v3 = vpop.f32.mrf.mxu1  ;;  %v6076_v50 = vld [vmem:[%s8431_s3 + $0x1f0] sm:$0xff]   ;;  %v1270_v42 = vmax.f32 %v1087_v5, 0.0  ;;  %v1272_v27 = vmax.f32 %v1140_v41, 0.0  ;;  %v6079_v41 = vld [vmem:[%s8431_s3 + $0x168] sm:$0xff]  }
 0x121   : > { %1853 = vmatprep.mubr.bf16.mxu0 %v1287_v35  ;;  %v1091_v0 = vadd.f32 %v1090_v2, %v7086_v34  ;;  %1902 = vmatprep.mubr.bf16.mxu1 %v1289_v18  ;;  %v1144_v58 = vadd.f32 %v1143_v3, %v7086_v34  ;;  %v1271_v49 = vmax.f32 %v1089_v26, 0.0  ;;  %v1273_v2 = vmax.f32 %v1142_v48, 0.0  ;;  %v6078_v5 = vld [vmem:[%s8431_s3 + $0x1b0] sm:$0xff]   ;;  %v6082_v3 = vld [vmem:[%s8431_s3 + $0x1a8] sm:$0xff]  }
 0x122   : > { %1854 = vmatmul.mubr.bf16.vlgmr.msra.gmra.mxu0 %v1286_v32  ;;  %v1092_v56 = vpop.f32.mrf.mxu0  ;;  %1903 = vmatmul.mubr.bf16.vlgmr.msra.gmra.mxu1 %v1288_v51  ;;  %v1145_v14 = vpop.f32.mrf.mxu1  ;;  %v6080_v32 = vld [vmem:[%s8431_s3 + $0x1e8] sm:$0xff]  }
 0x123   : > { %5631 = vmatpush3.bf16.msra.mxu0 %v6073_v43  ;;  %v1278_v1 = vmax.f32 %v1091_v0, 0.0  ;;  %v1093_v35 = vadd.f32 %v1092_v56, %v7086_v34  ;;  %5659 = vmatpush3.bf16.msra.mxu1 %v6074_v17  ;;  %v1280_v18 = vmax.f32 %v1144_v58, 0.0  ;;  %v1146_v26 = vadd.f32 %v1145_v14, %v7086_v34  ;;  %v6085_v58 = vld [vmem:[%s8431_s3 + $0x120] sm:$0xff]   ;;  %v6091_v14 = vld [vmem:[%s8431_s3 + $0x150] sm:$0xff]  }
 0x124   : > { %5632 = vmatprep.subr.bf16.mxu0 %v6075_v40  ;;  %5660 = vmatprep.subr.bf16.mxu1 %v6076_v50  ;;  %v6081_v40 = vld [vmem:[%s8431_s3 + $0x128] sm:$0xff]   ;;  %v6083_v50 = vld [vmem:[%s8431_s3 + $0x160] sm:$0xff]  }
 0x125   : > { %v1279_v43 = vmax.f32 %v1093_v35, 0.0  ;;  %v1294_v17 = vpack.c.bf16 %v1278_v1, %v1270_v42  ;;  %v1281_v48 = vmax.f32 %v1146_v26, 0.0  ;;  %v1296_v51 = vpack.c.bf16 %v1280_v18, %v1272_v27  ;;  %v6084_v42 = vld [vmem:[%s8431_s3 + $0x1e0] sm:$0xff]   ;;  %v6087_v27 = vld [vmem:[%s8431_s3 + $0x158] sm:$0xff]   ;;  %v6093_v18 = vld [vmem:[%s8431_s3 + $0x110] sm:$0xff]  }
 0x126   : > { %v6088_v1 = vld [vmem:[%s8431_s3 + $0x1d8] sm:$0xff]   ;;  %v6095_v26 = vld [vmem:[%s8431_s3 + $0x148] sm:$0xff]  }
 0x127   : > { %5633 = vmatpush3.bf16.msra.mxu0 %v6077_v16  ;;  %v1295_v0 = vpack.c.bf16 %v1279_v43, %v1271_v49  ;;  %5661 = vmatpush3.bf16.msra.mxu1 %v6078_v5  ;;  %v1297_v56 = vpack.c.bf16 %v1281_v48, %v1273_v2  ;;  %v6086_v49 = vld [vmem:[%s8431_s3 + $0x1a0] sm:$0xff]   ;;  %v6089_v35 = vld [vmem:[%s8431_s3 + $0x118] sm:$0xff]   ;;  %v6092_v2 = vld [vmem:[%s8431_s3 + $0x1d0] sm:$0xff]  }
 0x128   : > { %5634 = vmatprep.subr.bf16.mxu0 %v6079_v41  ;;  %5662 = vmatprep.subr.bf16.mxu1 %v6080_v32  ;;  %v6090_v16 = vld [vmem:[%s8431_s3 + $0x198] sm:$0xff]   ;;  %v6094_v5 = vld [vmem:[%s8431_s3 + $0x190] sm:$0xff]   ;;  %v6096_v41 = vld [vmem:[%s8431_s3 + $0x1c8] sm:$0xff]  }
 0x129   : > { %1861 = vmatprep.mubr.bf16.mxu0 %v1295_v0  ;;  %1910 = vmatprep.mubr.bf16.mxu1 %v1297_v56  ;;  %v6097_v43 = vld [vmem:[%s8431_s3 + $0x108] sm:$0xff]   ;;  %v6100_v48 = vld [vmem:[%s8431_s3 + $0x1c0] sm:$0xff]  }
 0x12a   : > { %1862 = vmatmul.mubr.bf16.gmra.mxu0 %v1294_v17  ;;  %1911 = vmatmul.mubr.bf16.gmra.mxu1 %v1296_v51  ;;  %v6098_v32 = vld [vmem:[%s8431_s3 + $0x188] sm:$0xff]   ;;  %v6099_v17 = vld [vmem:[%s8431_s3 + $0x140] sm:$0xff]  }
 0x12b   : > { %5635 = vmatpush3.bf16.msra.mxu0 %v6081_v40  ;;  %5663 = vmatpush3.bf16.msra.mxu1 %v6082_v3  ;;  %v6101_v51 = vld [vmem:[%s8431_s3 + $0x100] sm:$0xff]  }
 0x12c   : > { %5636 = vmatprep.subr.bf16.mxu0 %v6083_v50  ;;  %5664 = vmatprep.subr.bf16.mxu1 %v6084_v42  ;;  %v6102_v40 = vld [vmem:[%s8431_s3 + $0x180] sm:$0xff]  }
 0x12f   : > { %5637 = vmatpush3.bf16.msra.mxu0 %v6085_v58  ;;  %5665 = vmatpush3.bf16.msra.mxu1 %v6086_v49 }
 0x130   : > { %5638 = vmatprep.subr.bf16.mxu0 %v6087_v27  ;;  %5666 = vmatprep.subr.bf16.mxu1 %v6088_v1 }
 0x133   : > { %5639 = vmatpush3.bf16.msra.mxu0 %v6089_v35  ;;  %5667 = vmatpush3.bf16.msra.mxu1 %v6090_v16 }
 0x134   : > { %5640 = vmatprep.subr.bf16.mxu0 %v6091_v14  ;;  %5668 = vmatprep.subr.bf16.mxu1 %v6092_v2 }
 0x137   : > { %5641 = vmatpush3.bf16.msra.mxu0 %v6093_v18  ;;  %5669 = vmatpush3.bf16.msra.mxu1 %v6094_v5 }
 0x138   : > { %5642 = vmatprep.subr.bf16.mxu0 %v6095_v26  ;;  %5670 = vmatprep.subr.bf16.mxu1 %v6096_v41 }
 0x13b   : > { %5643 = vmatpush3.bf16.msra.mxu0 %v6097_v43  ;;  %5671 = vmatpush3.bf16.msra.mxu1 %v6098_v32 }
 0x13c   : > { %5644 = vmatprep.subr.bf16.mxu0 %v6099_v17  ;;  %5672 = vmatprep.subr.bf16.mxu1 %v6100_v48 }
 0x13f   : > { %5645 = vmatpush3.bf16.msra.mxu0 %v6101_v51  ;;  %5673 = vmatpush3.bf16.msra.mxu1 %v6102_v40 }
 0x140   : > { %2069 = vmatprep.subr.bf16.mxu0 %v6378_v4  ;;  %2122 = vmatprep.subr.bf16.mxu1 %v6385_v9 }
 0x154   : > { %v1182_v0 = vpop.f32.mrf.mxu0  ;;  %v1235_v3 = vpop.f32.mrf.mxu1 }
 0x155   : > { %v1183_v1 = vadd.f32 %v1182_v0, %v7066_v59  ;;  %v1236_v2 = vadd.f32 %v1235_v3, %v7066_v59 }
 0x156   : > { %v1184_v50 = vpop.f32.mrf.mxu0  ;;  %v1237_v56 = vpop.f32.mrf.mxu1 }
 0x157   : > { %v1185_v58 = vadd.f32 %v1184_v50, %v7066_v59  ;;  %v1238_v35 = vadd.f32 %v1237_v56, %v7066_v59  ;;  %v1258_v40 = vmax.f32 %v1183_v1, 0.0 }
 0x158   : > { %v1186_v42 = vpop.f32.mrf.mxu0  ;;  %v1239_v27 = vpop.f32.mrf.mxu1 }
 0x159   : > { %v1187_v49 = vadd.f32 %v1186_v42, %v7068_v57  ;;  %v1240_v16 = vadd.f32 %v1239_v27, %v7068_v57  ;;  %v1259_v32 = vmax.f32 %v1185_v58, 0.0  ;;  %v1261_v0 = vmax.f32 %v1238_v35, 0.0 }
 0x15a   : > { %v1188_v14 = vpop.f32.mrf.mxu0  ;;  %v1241_v5 = vpop.f32.mrf.mxu1  ;;  %v1260_v42 = vmax.f32 %v1236_v2, 0.0 }
 0x15b   : > { %v1189_v18 = vadd.f32 %v1188_v14, %v7068_v57  ;;  %v1266_v26 = vmax.f32 %v1187_v49, 0.0  ;;  %v1242_v41 = vadd.f32 %v1241_v5, %v7068_v57  ;;  %v1268_v17 = vmax.f32 %v1240_v16, 0.0 }
 0x15c   : > { %v1192_v43 = vpop.f32.mrf.mxu0  ;;  %v1245_v51 = vpop.f32.mrf.mxu1 }
 0x15d   : > { %v1267_v48 = vmax.f32 %v1189_v18, 0.0  ;;  %v1269_v50 = vmax.f32 %v1242_v41, 0.0  ;;  %v1290_v4 = vpack.c.bf16 %v1266_v26, %v1258_v40  ;;  %v1292_v14 = vpack.c.bf16 %v1268_v17, %v1260_v42  ;;  %v8734_v42 = vld [vmem:[#allocation12_spill] sm:$0xff] }
 0x15e   : > { %v1194_v56 = vpop.f32.mrf.mxu0  ;;  %v1247_v27 = vpop.f32.mrf.mxu1  ;;  %v1193_v58 = vadd.f32 %v1192_v43, %v7076_v33  ;;  %v1246_v2 = vadd.f32 %v1245_v51, %v7076_v33 }
 0x15f   : > { %v1291_v9 = vpack.c.bf16 %v1267_v48, %v1259_v32  ;;  %v1293_v3 = vpack.c.bf16 %v1269_v50, %v1261_v0  ;;  %v1195_v49 = vadd.f32 %v1194_v56, %v7076_v33  ;;  %v1248_v1 = vadd.f32 %v1247_v27, %v7076_v33  ;;  %v7209_v56 = vld [vmem:[%s8429_s1 + $0x24] ss:$8 sps:$4 sm:$0xff]   ;;  %v8735_v27 = vld [vmem:[#allocation13_spill] sm:$0xff] }
 0x160   : > { %v1196_v59 = vpop.f32.mrf.mxu0  ;;  %v1249_v5 = vpop.f32.mrf.mxu1  ;;  %v1276_v51 = vmax.f32 %v1246_v2, 0.0  ;;  %v8746_v2 = vld [vmem:[#allocation24_spill] sm:$0xff] }
 0x161   : > { %v1197_v57 = vadd.f32 %v1196_v59, %v7086_v34  ;;  %1951 = vmatprep.mubr.bf16.mxu0 %v1291_v9  ;;  %v1250_v35 = vadd.f32 %v1249_v5, %v7086_v34  ;;  %2000 = vmatprep.mubr.bf16.mxu1 %v1293_v3  ;;  %v1275_v43 = vmax.f32 %v1195_v49, 0.0  ;;  %v1277_v33 = vmax.f32 %v1248_v1, 0.0  ;;  %v8736_v59 = vld [vmem:[#allocation14_spill] sm:$0xff]  ;;  %v8737_v3 = vld [vmem:[#allocation15_spill] sm:$0xff]  ;;  %v8739_v49 = vld [vmem:[#allocation17_spill] sm:$0xff] }
 0x162   : > { %v1198_v16 = vpop.f32.mrf.mxu0  ;;  %1952 = vmatmul.mubr.bf16.vlgmr.msra.gmra.mxu0 %v1290_v4  ;;  %v1251_v26 = vpop.f32.mrf.mxu1  ;;  %2001 = vmatmul.mubr.bf16.vlgmr.msra.gmra.mxu1 %v1292_v14  ;;  %v1274_v4 = vmax.f32 %v1193_v58, 0.0  ;;  %v8738_v14 = vld [vmem:[#allocation16_spill] sm:$0xff]  ;;  %v8741_v5 = vld [vmem:[#allocation19_spill] sm:$0xff]  ;;  %v8743_v1 = vld [vmem:[#allocation21_spill] sm:$0xff] }
 0x163   : > { %v1199_v18 = vadd.f32 %v1198_v16, %v7086_v34  ;;  %2070 = vmatpush1.bf16.msra.mxu0 %v6381_v6  ;;  %v1282_v41 = vmax.f32 %v1197_v57, 0.0  ;;  %v1252_v9 = vadd.f32 %v1251_v26, %v7086_v34  ;;  %2123 = vmatpush1.bf16.msra.mxu1 %v6387_v10  ;;  %v1284_v32 = vmax.f32 %v1250_v35, 0.0  ;;  %v8740_v57 = vld [vmem:[#allocation18_spill] sm:$0xff]  ;;  %v8742_v58 = vld [vmem:[#allocation20_spill] sm:$0xff]  ;;  %v8745_v16 = vld [vmem:[#allocation23_spill] sm:$0xff] }
 0x164   : > { %2071 = vmatprep.subr.bf16.mxu0 %v6389_v11  ;;  %2124 = vmatprep.subr.bf16.mxu1 %v6395_v15  ;;  %v8744_v35 = vld [vmem:[#allocation22_spill] sm:$0xff] }
 0x165   : > { %v1283_v17 = vmax.f32 %v1199_v18, 0.0  ;;  %v1285_v48 = vmax.f32 %v1252_v9, 0.0  ;;  %v1298_v0 = vpack.c.bf16 %v1282_v41, %v1274_v4  ;;  %v1300_v50 = vpack.c.bf16 %v1284_v32, %v1276_v51  ;;  %v8747_v18 = vld [vmem:[#allocation25_spill] sm:$0xff]  ;;  %v8748_v26 = vld [vmem:[#allocation26_spill] sm:$0xff]  ;;  %v8749_v41 = vld [vmem:[#allocation27_spill] sm:$0xff] }
 0x166   : > { %v8750_v9 = vld [vmem:[#allocation28_spill] sm:$0xff]  ;;  %v8752_v32 = vld [vmem:[#allocation30_spill] sm:$0xff]  ;;  %v8757_v51 = vld [vmem:[#allocation35_spill] sm:$0xff] }
 0x167   : > { %2072 = vmatpush1.bf16.msra.mxu0 %v6402_v19  ;;  %v1299_v40 = vpack.c.bf16 %v1283_v17, %v1275_v43  ;;  %2125 = vmatpush1.bf16.msra.mxu1 %v6406_v20  ;;  %v1301_v34 = vpack.c.bf16 %v1285_v48, %v1277_v33  ;;  %v8751_v43 = vld [vmem:[#allocation29_spill] sm:$0xff]  ;;  %v8753_v17 = vld [vmem:[#allocation31_spill] sm:$0xff]  ;;  %v8754_v4 = vld [vmem:[#allocation32_spill] sm:$0xff] }
 0x168   : > { %2073 = vmatprep.subr.bf16.mxu0 %v6408_v21  ;;  %2126 = vmatprep.subr.bf16.mxu1 %v6411_v22  ;;  %v8755_v33 = vld [vmem:[#allocation33_spill] sm:$0xff]  ;;  %v8756_v48 = vld [vmem:[#allocation34_spill] sm:$0xff] }
 0x169   : > { %1959 = vmatprep.mubr.bf16.mxu0 %v1299_v40  ;;  %2008 = vmatprep.mubr.bf16.mxu1 %v1301_v34  ;;  %v8758_v40 = vld [vmem:[#allocation36_spill] sm:$0xff]  ;;  %v8759_v34 = vld [vmem:[#allocation37_spill] sm:$0xff] }
 0x16a   : > { %1960 = vmatmul.mubr.bf16.gmra.mxu0 %v1298_v0  ;;  %2009 = vmatmul.mubr.bf16.gmra.mxu1 %v1300_v50  ;;  %v7268_v0 = vld [vmem:[%s8429_s1 + $0x20] ss:$8 sps:$4 sm:$0xff]  }
 0x16b   : > { %2074 = vmatpush1.bf16.msra.mxu0 %v6418_v28  ;;  %2127 = vmatpush1.bf16.msra.mxu1 %v6422_v29  ;;  %v8760_v50 = vld [vmem:[#allocation38_spill] sm:$0xff] }
 0x16c   : > { %2075 = vmatprep.subr.bf16.mxu0 %v6424_v30  ;;  %2128 = vmatprep.subr.bf16.mxu1 %v6427_v31 }
 0x16d   : > { %2101 = vmatprep.mubr.bf16.mxu0 %v7209_v56  ;;  %2154 = vmatprep.mubr.bf16.mxu1 %v7209_v56 }
 0x16f   : > { %2076 = vmatpush1.bf16.msra.mxu0 %v6434_v36  ;;  %2129 = vmatpush1.bf16.msra.mxu1 %v6438_v37 }
 0x170   : > { %2077 = vmatprep.subr.bf16.mxu0 %v6440_v38  ;;  %2130 = vmatprep.subr.bf16.mxu1 %v6443_v39 }
 0x173   : > { %2078 = vmatpush1.bf16.msra.mxu0 %v6450_v44  ;;  %2131 = vmatpush1.bf16.msra.mxu1 %v6454_v45 }
 0x174   : > { %2079 = vmatprep.subr.bf16.mxu0 %v6456_v46  ;;  %2132 = vmatprep.subr.bf16.mxu1 %v6459_v47 }
 0x177   : > { %2080 = vmatpush1.bf16.msra.mxu0 %v6466_v52  ;;  %2133 = vmatpush1.bf16.msra.mxu1 %v6470_v53 }
 0x178   : > { %2081 = vmatprep.subr.bf16.mxu0 %v6472_v54  ;;  %2134 = vmatprep.subr.bf16.mxu1 %v6475_v55 }
 0x17b   : > { %2082 = vmatpush1.bf16.msra.mxu0 %v6482_v60  ;;  %2135 = vmatpush1.bf16.msra.mxu1 %v6486_v61 }
 0x17c   : > { %2083 = vmatprep.subr.bf16.mxu0 %v6488_v62  ;;  %2136 = vmatprep.subr.bf16.mxu1 %v6491_v63 }
 0x17f   : > { %2084 = vmatpush1.bf16.msra.mxu0 %v6498_v7  ;;  %2137 = vmatpush1.bf16.msra.mxu1 %v6502_v8 }
 0x180   : > { %2085 = vmatprep.subr.bf16.mxu0 %v6504_v12  ;;  %2138 = vmatprep.subr.bf16.mxu1 %v6507_v13 }
 0x183   : > { %2086 = vmatpush2.bf16.msra.mxu0 %v6514_v23  ;;  %2139 = vmatpush2.bf16.msra.mxu1 %v6518_v24 }
 0x184   : > { %2087 = vmatprep.subr.bf16.mxu0 %v6520_v25  ;;  %2140 = vmatprep.subr.bf16.mxu1 %v8734_v42 }
 0x187   : > { %2088 = vmatpush2.bf16.msra.mxu0 %v8735_v27  ;;  %2141 = vmatpush2.bf16.msra.mxu1 %v8736_v59 }
 0x188   : > { %2089 = vmatprep.subr.bf16.mxu0 %v8737_v3  ;;  %2142 = vmatprep.subr.bf16.mxu1 %v8738_v14 }
 0x18b   : > { %2090 = vmatpush2.bf16.msra.mxu0 %v8739_v49  ;;  %2143 = vmatpush2.bf16.msra.mxu1 %v8740_v57 }
 0x18c   : > { %2091 = vmatprep.subr.bf16.mxu0 %v8741_v5  ;;  %2144 = vmatprep.subr.bf16.mxu1 %v8742_v58 }
 0x18f   : > { %2092 = vmatpush2.bf16.msra.mxu0 %v8743_v1  ;;  %2145 = vmatpush2.bf16.msra.mxu1 %v8744_v35 }
 0x190   : > { %2093 = vmatprep.subr.bf16.mxu0 %v8745_v16  ;;  %2146 = vmatprep.subr.bf16.mxu1 %v8746_v2 }
 0x193   : > { %2094 = vmatpush2.bf16.msra.mxu0 %v8747_v18  ;;  %2147 = vmatpush2.bf16.msra.mxu1 %v8748_v26 }
 0x194   : > { %2095 = vmatprep.subr.bf16.mxu0 %v8749_v41  ;;  %2148 = vmatprep.subr.bf16.mxu1 %v8750_v9  ;;  %v8779_v9 = vld [vmem:[#allocation57_spill] sm:$0xff]  ;;  %v8784_v41 = vld [vmem:[#allocation62_spill] sm:$0xff] }
 0x197   : > { %2096 = vmatpush2.bf16.msra.mxu0 %v8751_v43  ;;  %2149 = vmatpush2.bf16.msra.mxu1 %v8752_v32  ;;  %v8773_v32 = vld [vmem:[#allocation51_spill] sm:$0xff]  ;;  %v8774_v43 = vld [vmem:[#allocation52_spill] sm:$0xff] }
 0x198   : > { %2097 = vmatprep.subr.bf16.mxu0 %v8753_v17  ;;  %2150 = vmatprep.subr.bf16.mxu1 %v8754_v4  ;;  %v8761_v17 = vld [vmem:[#allocation39_spill] sm:$0xff]  ;;  %v8762_v4 = vld [vmem:[#allocation40_spill] sm:$0xff] }
 0x19b   : > { %2098 = vmatpush2.bf16.msra.mxu0 %v8755_v33  ;;  %2151 = vmatpush2.bf16.msra.mxu1 %v8756_v48  ;;  %v7277_v48 = vld [vmem:[%s8429_s1 + $0x34] ss:$8 sps:$4 sm:$0xff]   ;;  %v8768_v33 = vld [vmem:[#allocation46_spill] sm:$0xff] }
 0x19c   : > { %2099 = vmatprep.subr.bf16.mxu0 %v8757_v51  ;;  %2152 = vmatprep.subr.bf16.mxu1 %v8758_v40  ;;  %v8763_v40 = vld [vmem:[#allocation41_spill] sm:$0xff]  ;;  %v8764_v51 = vld [vmem:[#allocation42_spill] sm:$0xff] }
 0x19f   : > { %2100 = vmatpush2.bf16.msra.mxu0 %v8759_v34  ;;  %2153 = vmatpush2.bf16.msra.mxu1 %v8760_v50  ;;  %v8765_v34 = vld [vmem:[#allocation43_spill] sm:$0xff]  ;;  %v8766_v50 = vld [vmem:[#allocation44_spill] sm:$0xff] }
 0x1a0   : > { %2175 = vmatprep.subr.bf16.mxu0 %v8761_v17  ;;  %2228 = vmatprep.subr.bf16.mxu1 %v8762_v4  ;;  %v7290_v4 = vld [vmem:[%s8429_s1 + $0x30] ss:$8 sps:$4 sm:$0xff]  }
 0x1a1   : > { %v8767_v17 = vld [vmem:[#allocation45_spill] sm:$0xff] }
 0x1a2   : > { %2102 = vmatmul.mubr.bf16.vlgmr.msra.gmra.mxu0 %v7268_v0  ;;  %2155 = vmatmul.mubr.bf16.vlgmr.msra.gmra.mxu1 %v7268_v0 }
 0x1a3   : > { %2176 = vmatpush1.bf16.msra.mxu0 %v8763_v40  ;;  %2229 = vmatpush1.bf16.msra.mxu1 %v8764_v51  ;;  %v8769_v40 = vld [vmem:[#allocation47_spill] sm:$0xff]  ;;  %v8770_v51 = vld [vmem:[#allocation48_spill] sm:$0xff] }
 0x1a4   : > { %2177 = vmatprep.subr.bf16.mxu0 %v8765_v34  ;;  %2230 = vmatprep.subr.bf16.mxu1 %v8766_v50  ;;  %v8771_v50 = vld [vmem:[#allocation49_spill] sm:$0xff]  ;;  %v8772_v34 = vld [vmem:[#allocation50_spill] sm:$0xff] }
 0x1a5   : > { %2111 = vmatprep.mubr.bf16.mxu0 %v7277_v48  ;;  %2164 = vmatprep.mubr.bf16.mxu1 %v7277_v48 }
 0x1a7   : > { %2178 = vmatpush1.bf16.msra.mxu0 %v8767_v17  ;;  %2231 = vmatpush1.bf16.msra.mxu1 %v8768_v33  ;;  %v8775_v33 = vld [vmem:[#allocation53_spill] sm:$0xff]  ;;  %v8778_v17 = vld [vmem:[#allocation56_spill] sm:$0xff] }
 0x1a8   : > { %2179 = vmatprep.subr.bf16.mxu0 %v8769_v40  ;;  %2232 = vmatprep.subr.bf16.mxu1 %v8770_v51  ;;  %v8776_v40 = vld [vmem:[#allocation54_spill] sm:$0xff]  ;;  %v8777_v51 = vld [vmem:[#allocation55_spill] sm:$0xff] }
 0x1aa   : > { %2112 = vmatmul.mubr.bf16.gmra.mxu0 %v7290_v4  ;;  %2165 = vmatmul.mubr.bf16.gmra.mxu1 %v7290_v4 }
 0x1ab   : > { %2180 = vmatpush1.bf16.msra.mxu0 %v8771_v50  ;;  %2233 = vmatpush1.bf16.msra.mxu1 %v8772_v34  ;;  %v8780_v50 = vld [vmem:[#allocation58_spill] sm:$0xff]  ;;  %v8781_v34 = vld [vmem:[#allocation59_spill] sm:$0xff] }
 0x1ac   : > { %2181 = vmatprep.subr.bf16.mxu0 %v8773_v32  ;;  %2234 = vmatprep.subr.bf16.mxu1 %v8774_v43  ;;  %v8782_v32 = vld [vmem:[#allocation60_spill] sm:$0xff]  ;;  %v8783_v43 = vld [vmem:[#allocation61_spill] sm:$0xff] }
 0x1ad   : > { %2207 = vmatprep.mubr.bf16.mxu0 %v7209_v56  ;;  %2260 = vmatprep.mubr.bf16.mxu1 %v7209_v56  ;;  %v8785_v56 = vld [vmem:[#allocation63_spill] sm:$0xff] }
 0x1af   : > { %2182 = vmatpush1.bf16.msra.mxu0 %v8775_v33  ;;  %2235 = vmatpush1.bf16.msra.mxu1 %v8776_v40  ;;  %v8786_v33 = vld [vmem:[#allocation64_spill] sm:$0xff]  ;;  %v8787_v40 = vld [vmem:[#allocation65_spill] sm:$0xff] }
 0x1b0   : > { %2183 = vmatprep.subr.bf16.mxu0 %v8777_v51  ;;  %2236 = vmatprep.subr.bf16.mxu1 %v8778_v17  ;;  %v8788_v51 = vld [vmem:[#allocation66_spill] sm:$0xff]  ;;  %v8789_v17 = vld [vmem:[#allocation67_spill] sm:$0xff] }
 0x1b3   : > { %2184 = vmatpush1.bf16.msra.mxu0 %v8779_v9  ;;  %2237 = vmatpush1.bf16.msra.mxu1 %v8780_v50  ;;  %v8790_v9 = vld [vmem:[#allocation68_spill] sm:$0xff]  ;;  %v8791_v50 = vld [vmem:[#allocation69_spill] sm:$0xff] }
 0x1b4   : > { %2185 = vmatprep.subr.bf16.mxu0 %v8781_v34  ;;  %2238 = vmatprep.subr.bf16.mxu1 %v8782_v32  ;;  %v8792_v34 = vld [vmem:[#allocation70_spill] sm:$0xff]  ;;  %v8793_v32 = vld [vmem:[#allocation71_spill] sm:$0xff] }
 0x1b7   : > { %2186 = vmatpush1.bf16.msra.mxu0 %v8783_v43  ;;  %2239 = vmatpush1.bf16.msra.mxu1 %v8784_v41  ;;  %v8794_v43 = vld [vmem:[#allocation72_spill] sm:$0xff]  ;;  %v8795_v41 = vld [vmem:[#allocation73_spill] sm:$0xff] }
 0x1b8   : > { %2187 = vmatprep.subr.bf16.mxu0 %v8785_v56  ;;  %2240 = vmatprep.subr.bf16.mxu1 %v8786_v33  ;;  %v8796_v56 = vld [vmem:[#allocation74_spill] sm:$0xff]  ;;  %v8797_v33 = vld [vmem:[#allocation75_spill] sm:$0xff] }
 0x1bb   : > { %2188 = vmatpush1.bf16.msra.mxu0 %v8787_v40  ;;  %2241 = vmatpush1.bf16.msra.mxu1 %v8788_v51  ;;  %v8798_v40 = vld [vmem:[#allocation76_spill] sm:$0xff]  ;;  %v8799_v51 = vld [vmem:[#allocation77_spill] sm:$0xff] }
 0x1bc   : > { %2189 = vmatprep.subr.bf16.mxu0 %v8789_v17  ;;  %2242 = vmatprep.subr.bf16.mxu1 %v8790_v9  ;;  %v8800_v17 = vld [vmem:[#allocation78_spill] sm:$0xff]  ;;  %v8801_v9 = vld [vmem:[#allocation79_spill] sm:$0xff] }
 0x1bf   : > { %2190 = vmatpush1.bf16.msra.mxu0 %v8791_v50  ;;  %2243 = vmatpush1.bf16.msra.mxu1 %v8792_v34  ;;  %v8802_v50 = vld [vmem:[#allocation80_spill] sm:$0xff]  ;;  %v8803_v34 = vld [vmem:[#allocation81_spill] sm:$0xff] }
 0x1c0   : > { %2191 = vmatprep.subr.bf16.mxu0 %v8793_v32  ;;  %2244 = vmatprep.subr.bf16.mxu1 %v8794_v43  ;;  %v8804_v32 = vld [vmem:[#allocation82_spill] sm:$0xff]  ;;  %v8805_v43 = vld [vmem:[#allocation83_spill] sm:$0xff] }
 0x1c3   : > { %2192 = vmatpush2.bf16.msra.mxu0 %v8795_v41  ;;  %2245 = vmatpush2.bf16.msra.mxu1 %v8796_v56  ;;  %v8806_v41 = vld [vmem:[#allocation84_spill] sm:$0xff]  ;;  %v8807_v56 = vld [vmem:[#allocation85_spill] sm:$0xff] }
 0x1c4   : > { %2193 = vmatprep.subr.bf16.mxu0 %v8797_v33  ;;  %2246 = vmatprep.subr.bf16.mxu1 %v8798_v40  ;;  %v8808_v33 = vld [vmem:[#allocation86_spill] sm:$0xff]  ;;  %v8809_v40 = vld [vmem:[#allocation87_spill] sm:$0xff] }
 0x1c7   : > { %2194 = vmatpush2.bf16.msra.mxu0 %v8799_v51  ;;  %2247 = vmatpush2.bf16.msra.mxu1 %v8800_v17  ;;  %v8810_v51 = vld [vmem:[#allocation88_spill] sm:$0xff]  ;;  %v8811_v17 = vld [vmem:[#allocation89_spill] sm:$0xff] }
 0x1c8   : > { %2195 = vmatprep.subr.bf16.mxu0 %v8801_v9  ;;  %2248 = vmatprep.subr.bf16.mxu1 %v8802_v50  ;;  %v8812_v9 = vld [vmem:[#allocation90_spill] sm:$0xff]  ;;  %v8813_v50 = vld [vmem:[#allocation91_spill] sm:$0xff] }
 0x1cb   : > { %2196 = vmatpush2.bf16.msra.mxu0 %v8803_v34  ;;  %2249 = vmatpush2.bf16.msra.mxu1 %v8804_v32  ;;  %v8814_v34 = vld [vmem:[#allocation92_spill] sm:$0xff]  ;;  %v8815_v32 = vld [vmem:[#allocation93_spill] sm:$0xff] }
 0x1cc   : > { %2197 = vmatprep.subr.bf16.mxu0 %v8805_v43  ;;  %2250 = vmatprep.subr.bf16.mxu1 %v8806_v41  ;;  %v8816_v43 = vld [vmem:[#allocation94_spill] sm:$0xff]  ;;  %v8817_v41 = vld [vmem:[#allocation95_spill] sm:$0xff] }
 0x1cf   : > { %2198 = vmatpush2.bf16.msra.mxu0 %v8807_v56  ;;  %2251 = vmatpush2.bf16.msra.mxu1 %v8808_v33  ;;  %v8818_v56 = vld [vmem:[#allocation96_spill] sm:$0xff]  ;;  %v8819_v33 = vld [vmem:[#allocation97_spill] sm:$0xff] }
 0x1d0   : > { %2199 = vmatprep.subr.bf16.mxu0 %v8809_v40  ;;  %2252 = vmatprep.subr.bf16.mxu1 %v8810_v51  ;;  %v8820_v40 = vld [vmem:[#allocation98_spill] sm:$0xff]  ;;  %v8821_v51 = vld [vmem:[#allocation99_spill] sm:$0xff] }
 0x1d3   : > { %2200 = vmatpush2.bf16.msra.mxu0 %v8811_v17  ;;  %2253 = vmatpush2.bf16.msra.mxu1 %v8812_v9  ;;  %v8822_v9 = vld [vmem:[#allocation100_spill] sm:$0xff] }
 0x1d4   : > { %2201 = vmatprep.subr.bf16.mxu0 %v8813_v50  ;;  %2254 = vmatprep.subr.bf16.mxu1 %v8814_v34  ;;  %v6109_v50 = vld [vmem:[%s8431_s3 + $0x78] sm:$0xff]  }
 0x1d7   : > { %2202 = vmatpush2.bf16.msra.mxu0 %v8815_v32  ;;  %2255 = vmatpush2.bf16.msra.mxu1 %v8816_v43  ;;  %v6110_v43 = vld [vmem:[%s8431_s3 + $0xf8] sm:$0xff]  }
 0x1d8   : > { %2203 = vmatprep.subr.bf16.mxu0 %v8817_v41  ;;  %2256 = vmatprep.subr.bf16.mxu1 %v8818_v56  ;;  %v8823_v32 = vld [vmem:[#allocation101_spill] sm:$0xff]  ;;  %v8824_v41 = vld [vmem:[#allocation102_spill] sm:$0xff] }
 0x1db   : > { %2204 = vmatpush2.bf16.msra.mxu0 %v8819_v33  ;;  %2257 = vmatpush2.bf16.msra.mxu1 %v8820_v40  ;;  %v6111_v40 = vld [vmem:[%s8431_s3 + $0x38] sm:$0xff]  }
 0x1dc   : > { %2205 = vmatprep.subr.bf16.mxu0 %v8821_v51  ;;  %2258 = vmatprep.subr.bf16.mxu1 %v8822_v9  ;;  %v6112_v51 = vld [vmem:[%s8431_s3 + $0xb8] sm:$0xff]   ;;  %v6113_v9 = vld [vmem:[%s8431_s3 + $0x70] sm:$0xff]  }
 0x1df   : > { %2206 = vmatpush2.bf16.msra.mxu0 %v8823_v32  ;;  %2259 = vmatpush2.bf16.msra.mxu1 %v8824_v41  ;;  %v6114_v41 = vld [vmem:[%s8431_s3 + $0xf0] sm:$0xff]   ;;  %v6117_v32 = vld [vmem:[%s8431_s3 + $0x68] sm:$0xff]  }
 0x1e0   : > { %5686 = vmatprep.subr.bf16.mxu0 %v6109_v50  ;;  %5714 = vmatprep.subr.bf16.mxu1 %v6110_v43  ;;  %v6115_v43 = vld [vmem:[%s8431_s3 + $0x30] sm:$0xff]  }
 0x1e1   : > { %v6116_v50 = vld [vmem:[%s8431_s3 + $0xb0] sm:$0xff]  }
 0x1e2   : > { %2208 = vmatmul.mubr.bf16.vlgmr.msra.gmra.mxu0 %v7268_v0  ;;  %2261 = vmatmul.mubr.bf16.vlgmr.msra.gmra.mxu1 %v7268_v0  ;;  %v6124_v0 = vld [vmem:[%s8431_s3 + $0xa0] sm:$0xff]  }
 0x1e3   : > { %2217 = vmatprep.mubr.bf16.mxu0 %v7277_v48  ;;  %2270 = vmatprep.mubr.bf16.mxu1 %v7277_v48  ;;  %v6118_v48 = vld [vmem:[%s8431_s3 + $0xe8] sm:$0xff]  }
 0x1e4   : > { %5687 = vmatpush3.bf16.msra.mxu0 %v6111_v40  ;;  %5715 = vmatpush3.bf16.msra.mxu1 %v6112_v51  ;;  %v6119_v40 = vld [vmem:[%s8431_s3 + $0x28] sm:$0xff]   ;;  %v6121_v51 = vld [vmem:[%s8431_s3 + $0x60] sm:$0xff]  }
 0x1e5   : > { %5688 = vmatprep.subr.bf16.mxu0 %v6113_v9  ;;  %5716 = vmatprep.subr.bf16.mxu1 %v6114_v41  ;;  %v6120_v9 = vld [vmem:[%s8431_s3 + $0xa8] sm:$0xff]   ;;  %v6122_v41 = vld [vmem:[%s8431_s3 + $0xe0] sm:$0xff]  }
 0x1e8   : > { %5689 = vmatpush3.bf16.msra.mxu0 %v6115_v43  ;;  %5717 = vmatpush3.bf16.msra.mxu1 %v6116_v50  ;;  %v6125_v43 = vld [vmem:[%s8431_s3 + $0x58] sm:$0xff]  }
 0x1e9   : > { %5690 = vmatprep.subr.bf16.mxu0 %v6117_v32  ;;  %5718 = vmatprep.subr.bf16.mxu1 %v6118_v48  ;;  %v6123_v32 = vld [vmem:[%s8431_s3 + $0x20] sm:$0xff]   ;;  %v6127_v50 = vld [vmem:[%s8431_s3 + $0x18] sm:$0xff]  }
 0x1ea   : > { %2218 = vmatmul.mubr.bf16.gmra.mxu0 %v7290_v4  ;;  %2271 = vmatmul.mubr.bf16.gmra.mxu1 %v7290_v4  ;;  %v6126_v4 = vld [vmem:[%s8431_s3 + $0xd8] sm:$0xff]  }
 0x1eb   : > { %v6128_v48 = vld [vmem:[%s8431_s3 + $0x98] sm:$0xff]  }
 0x1ec   : > { %5691 = vmatpush3.bf16.msra.mxu0 %v6119_v40  ;;  %5719 = vmatpush3.bf16.msra.mxu1 %v6120_v9  ;;  %v6129_v40 = vld [vmem:[%s8431_s3 + $0x50] sm:$0xff]  }
 0x1ed   : > { %5692 = vmatprep.subr.bf16.mxu0 %v6121_v51  ;;  %5720 = vmatprep.subr.bf16.mxu1 %v6122_v41  ;;  %v6130_v9 = vld [vmem:[%s8431_s3 + $0xd0] sm:$0xff]  }
 0x1ee   : > { %v6131_v51 = vld [vmem:[%s8431_s3 + $0x10] sm:$0xff]  }
 0x1ef   : > { %v6132_v41 = vld [vmem:[%s8431_s3 + $0x90] sm:$0xff]  }
 0x1f0   : > { %5693 = vmatpush3.bf16.msra.mxu0 %v6123_v32  ;;  %5721 = vmatpush3.bf16.msra.mxu1 %v6124_v0  ;;  %v6133_v32 = vld [vmem:[%s8431_s3 + $0x48] sm:$0xff]  }
 0x1f1   : > { %5694 = vmatprep.subr.bf16.mxu0 %v6125_v43  ;;  %5722 = vmatprep.subr.bf16.mxu1 %v6126_v4  ;;  %v6134_v0 = vld [vmem:[%s8431_s3 + $0xc8] sm:$0xff]  }
 0x1f2   : > { %v6135_v43 = vld [vmem:[%s8431_s3 + $0x8] sm:$0xff]  }
 0x1f3   : > { %v6136_v4 = vld [vmem:[%s8431_s3 + $0x88] sm:$0xff]  }
 0x1f4   : > { %5695 = vmatpush3.bf16.msra.mxu0 %v6127_v50  ;;  %5723 = vmatpush3.bf16.msra.mxu1 %v6128_v48  ;;  %v6137_v50 = vld [vmem:[%s8431_s3 + $0x40] sm:$0xff]  }
 0x1f5   : > { %5696 = vmatprep.subr.bf16.mxu0 %v6129_v40  ;;  %5724 = vmatprep.subr.bf16.mxu1 %v6130_v9  ;;  %v6138_v48 = vld [vmem:[%s8431_s3 + $0xc0] sm:$0xff]  }
 0x1f6   : > { %v6139_v40 = vld [vmem:[%s8431_s3] sm:$0xff]  }
 0x1f7   : > { %v6140_v9 = vld [vmem:[%s8431_s3 + $0x80] sm:$0xff]  }
 0x1f8   : > { %5697 = vmatpush3.bf16.msra.mxu0 %v6131_v51  ;;  %5725 = vmatpush3.bf16.msra.mxu1 %v6132_v41  ;;  %v6141_v51 = vld [vmem:[%s8431_s3 + $0x178] sm:$0xff]  }
 0x1f9   : > { %5698 = vmatprep.subr.bf16.mxu0 %v6133_v32  ;;  %5726 = vmatprep.subr.bf16.mxu1 %v6134_v0  ;;  %v6142_v41 = vld [vmem:[%s8431_s3 + $0x1f8] sm:$0xff]   ;;  %v5590_v32 = vpop.f32.mrf.mxu0  ;;  %v5618_v0 = vpop.f32.mrf.mxu1 }
 0x1fc   : > { %5699 = vmatpush3.bf16.msra.mxu0 %v6135_v43  ;;  %5727 = vmatpush3.bf16.msra.mxu1 %v6136_v4  ;;  %v5591_v43 = vpop.f32.mrf.mxu0  ;;  %v5619_v4 = vpop.f32.mrf.mxu1 }
 0x1fd   : > { %5700 = vmatprep.subr.bf16.mxu0 %v6137_v50  ;;  %5728 = vmatprep.subr.bf16.mxu1 %v6138_v48  ;;  %v5592_v16 = vadd.f32 %v5591_v43, %v5590_v32  ;;  %v5620_v5 = vadd.f32 %v5619_v4, %v5618_v0 }
 0x1fe   : > { %v5593_v50 = vpop.f32.mrf.mxu0  ;;  %v5621_v33 = vpop.f32.mrf.mxu1 }
 0x200   : > { %5701 = vmatpush3.bf16.msra.mxu0 %v6139_v40  ;;  %5729 = vmatpush3.bf16.msra.mxu1 %v6140_v9  ;;  %v5594_v56 = vpop.f32.mrf.mxu0  ;;  %v5622_v34 = vpop.f32.mrf.mxu1  ;;  %v5298_v40 = vld [vmem:[%s8432_s4] ss:$0 sm:$0xff] }
 0x201   : > { %5742 = vmatprep.subr.bf16.mxu0 %v6141_v51  ;;  %5770 = vmatprep.subr.bf16.mxu1 %v6142_v41  ;;  %v1856_v51 = vadd.f32 %v5592_v16, %v5298_v40  ;;  %v5595_v41 = vadd.f32 %v5594_v56, %v5593_v50  ;;  %v5623_v43 = vadd.f32 %v5622_v34, %v5621_v33 }
 0x202   : > { %v5596_v17 = vpop.f32.mrf.mxu0  ;;  %v5624_v26 = vpop.f32.mrf.mxu1 }
 0x203   : > { %v1905_v3 = vadd.f32 %v5620_v5, %v1856_v51  ;;  %v1859_v59 = vadd.f32 %v5595_v41, %v5298_v40 }
 0x204   : > { %v5597_v18 = vpop.f32.mrf.mxu0  ;;  %v5625_v48 = vpop.f32.mrf.mxu1 }
 0x205   : > { %v5598_v49 = vadd.f32 %v5597_v18, %v5596_v17  ;;  %v5626_v12 = vadd.f32 %v5625_v48, %v5624_v26  ;;  %v1908_v18 = vadd.f32 %v5623_v43, %v1859_v59 }
 0x206   : > { %v5599_v2 = vpop.f32.mrf.mxu0  ;;  %v5627_v35 = vpop.f32.mrf.mxu1 }
 0x207   : > { %v1864_v13 = vadd.f32 %v5598_v49, %v5298_v40 }
 0x208   : > { %v5600_v9 = vpop.f32.mrf.mxu0  ;;  %v5628_v1 = vpop.f32.mrf.mxu1 }
 0x209   : > { %v5601_v5 = vadd.f32 %v5600_v9, %v5599_v2  ;;  %v1913_v49 = vadd.f32 %v5626_v12, %v1864_v13  ;;  %v5629_v33 = vadd.f32 %v5628_v1, %v5627_v35 }
 0x20b   : > { %v1867_v26 = vadd.f32 %v5601_v5, %v5298_v40 }
 0x20d   : > { %v1916_v48 = vadd.f32 %v5629_v33, %v1867_v26 }
 0x222   : > { %v5646_v58 = vpop.f32.mrf.mxu0  ;;  %v5674_v57 = vpop.f32.mrf.mxu1 }
 0x224   : > { %v5647_v14 = vpop.f32.mrf.mxu0  ;;  %v5675_v42 = vpop.f32.mrf.mxu1 }
 0x225   : > { %v5648_v27 = vadd.f32 %v5647_v14, %v5646_v58  ;;  %v5676_v24 = vadd.f32 %v5675_v42, %v5674_v57 }
 0x226   : > { %v5649_v32 = vpop.f32.mrf.mxu0  ;;  %v5677_v23 = vpop.f32.mrf.mxu1 }
 0x227   : > { %v1954_v25 = vadd.f32 %v5648_v27, %v1905_v3 }
 0x228   : > { %v5650_v16 = vpop.f32.mrf.mxu0  ;;  %v5678_v58 = vpop.f32.mrf.mxu1 }
 0x229   : > { %v2003_v17 = vadd.f32 %v5676_v24, %v1954_v25  ;;  %v5651_v14 = vadd.f32 %v5650_v16, %v5649_v32  ;;  %v5679_v42 = vadd.f32 %v5678_v58, %v5677_v23  ;;  %v7475_v32 = vpop.permute.xlu0 %2031  ;;  %v7477_v16 = vpop.permute.xlu1 %2036 }
 0x22a   : > { %v5652_v56 = vpop.f32.mrf.mxu0  ;;  %v5680_v3 = vpop.f32.mrf.mxu1 }
 0x22b   : > { %2017 = vst [vmem:[%s7469_s20] sm:$0xff] %v2003_v17  ;;  %v1957_v27 = vadd.f32 %v5651_v14, %v1908_v18 }
 0x22c   : > { %v5653_v57 = vpop.f32.mrf.mxu0  ;;  %v5681_v4 = vpop.f32.mrf.mxu1 }
 0x22d   : > { %v2006_v34 = vadd.f32 %v5679_v42, %v1957_v27  ;;  %v5654_v0 = vadd.f32 %v5653_v57, %v5652_v56  ;;  %v5682_v25 = vadd.f32 %v5681_v4, %v5680_v3 }
 0x22e   : > { %v5655_v59 = vpop.f32.mrf.mxu0  ;;  %v5683_v2 = vpop.f32.mrf.mxu1 }
 0x22f   : > { %2018 = vst [vmem:[%s7469_s20 + $0x8] sm:$0xff] %v2006_v34  ;;  %v1962_v24 = vadd.f32 %v5654_v0, %v1913_v49 }
 0x230   : > { %v5656_v50 = vpop.f32.mrf.mxu0  ;;  %v5684_v23 = vpop.f32.mrf.mxu1 }
 0x231   : > { %v2011_v9 = vadd.f32 %v5682_v25, %v1962_v24  ;;  %v5657_v51 = vadd.f32 %v5656_v50, %v5655_v59  ;;  %v5685_v13 = vadd.f32 %v5684_v23, %v5683_v2 }
 0x233   : > { %2019 = vst [vmem:[%s7469_s20 + $0x10] sm:$0xff] %v2011_v9  ;;  %v1965_v12 = vadd.f32 %v5657_v51, %v1916_v48  ;;  %v7487_v9 = vpop.permute.xlu0 %2041 }
 0x235   : > { %v2014_v41 = vadd.f32 %v5685_v13, %v1965_v12  ;;  %v6143_v13 = vld [vmem:[%s8431_s3 + $0x138] sm:$0xff]  }
 0x237   : > { %2020 = vst [vmem:[%s7469_s20 + $0x18] sm:$0xff] %v2014_v41  ;;  %v7492_v41 = vpop.permute.xlu1 %2046 }
 0x262   : > { %v2103_v1 = vpop.f32.mrf.mxu0  ;;  %v2156_v35 = vpop.f32.mrf.mxu1 }
 0x263   : > { %v2104_v58 = vadd.f32 %v2103_v1, %v7475_v32  ;;  %v2157_v3 = vadd.f32 %v2156_v35, %v7475_v32 }
 0x264   : > { %v2105_v40 = vpop.f32.mrf.mxu0  ;;  %v2158_v43 = vpop.f32.mrf.mxu1 }
 0x265   : > { %v2106_v5 = vadd.f32 %v2105_v40, %v7475_v32  ;;  %v2159_v56 = vadd.f32 %v2158_v43, %v7475_v32  ;;  %v2281_v25 = vmax.f32 %v2104_v58, 0.0  ;;  %v2283_v51 = vmax.f32 %v2157_v3, 0.0  ;;  %v6144_v43 = vld [vmem:[%s8431_s3 + $0x1b8] sm:$0xff]  }
 0x266   : > { %v2107_v18 = vpop.f32.mrf.mxu0  ;;  %v2160_v14 = vpop.f32.mrf.mxu1 }
 0x267   : > { %v2108_v17 = vadd.f32 %v2107_v18, %v7477_v16  ;;  %v2161_v27 = vadd.f32 %v2160_v14, %v7477_v16  ;;  %v2282_v0 = vmax.f32 %v2106_v5, 0.0  ;;  %v2284_v2 = vmax.f32 %v2159_v56, 0.0  ;;  %v6145_v18 = vld [vmem:[%s8431_s3 + $0x170] sm:$0xff]  }
 0x268   : > { %v2109_v42 = vpop.f32.mrf.mxu0  ;;  %v2162_v57 = vpop.f32.mrf.mxu1  ;;  %v6146_v56 = vld [vmem:[%s8431_s3 + $0x1f0] sm:$0xff]  }
 0x269   : > { %v2110_v49 = vadd.f32 %v2109_v42, %v7477_v16  ;;  %v2289_v26 = vmax.f32 %v2108_v17, 0.0  ;;  %v2163_v33 = vadd.f32 %v2162_v57, %v7477_v16  ;;  %v2291_v4 = vmax.f32 %v2161_v27, 0.0 }
 0x26a   : > { %v2113_v34 = vpop.f32.mrf.mxu0  ;;  %v2166_v24 = vpop.f32.mrf.mxu1 }
 0x26b   : > { %v2290_v59 = vmax.f32 %v2110_v49, 0.0  ;;  %v2292_v50 = vmax.f32 %v2163_v33, 0.0  ;;  %v2313_v1 = vpack.c.bf16 %v2289_v26, %v2281_v25  ;;  %v2315_v5 = vpack.c.bf16 %v2291_v4, %v2283_v51 }
 0x26c   : > { %v2115_v48 = vpop.f32.mrf.mxu0  ;;  %v2168_v12 = vpop.f32.mrf.mxu1  ;;  %v2114_v27 = vadd.f32 %v2113_v34, %v7487_v9  ;;  %v2167_v57 = vadd.f32 %v2166_v24, %v7487_v9  ;;  %v6149_v24 = vld [vmem:[%s8431_s3 + $0x168] sm:$0xff]  }
 0x26d   : > { %v2314_v23 = vpack.c.bf16 %v2290_v59, %v2282_v0  ;;  %v2316_v35 = vpack.c.bf16 %v2292_v50, %v2284_v2  ;;  %v2116_v17 = vadd.f32 %v2115_v48, %v7487_v9  ;;  %v2169_v42 = vadd.f32 %v2168_v12, %v7487_v9  ;;  %v6147_v0 = vld [vmem:[%s8431_s3 + $0x130] sm:$0xff]   ;;  %v6150_v48 = vld [vmem:[%s8431_s3 + $0x1e8] sm:$0xff]  }
 0x26e   : > { %v2117_v40 = vpop.f32.mrf.mxu0  ;;  %v2170_v58 = vpop.f32.mrf.mxu1  ;;  %v6148_v59 = vld [vmem:[%s8431_s3 + $0x1b0] sm:$0xff]   ;;  %v2297_v51 = vmax.f32 %v2114_v27, 0.0  ;;  %v6157_v27 = vld [vmem:[%s8431_s3 + $0x158] sm:$0xff]  }
 0x26f   : > { %v2118_v14 = vadd.f32 %v2117_v40, %v7492_v41  ;;  %2880 = vmatprep.mubr.bf16.mxu0 %v2314_v23  ;;  %v2171_v3 = vadd.f32 %v2170_v58, %v7492_v41  ;;  %2929 = vmatprep.mubr.bf16.mxu1 %v2316_v35  ;;  %v2298_v25 = vmax.f32 %v2116_v17, 0.0  ;;  %v2300_v23 = vmax.f32 %v2169_v42, 0.0  ;;  %v6151_v35 = vld [vmem:[%s8431_s3 + $0x128] sm:$0xff]   ;;  %v6155_v58 = vld [vmem:[%s8431_s3 + $0x120] sm:$0xff]   ;;  %v6158_v42 = vld [vmem:[%s8431_s3 + $0x1d8] sm:$0xff]  }
 0x270   : > { %v2119_v49 = vpop.f32.mrf.mxu0  ;;  %2881 = vmatmul.mubr.bf16.vlgmr.msra.gmra.mxu0 %v2313_v1  ;;  %v2172_v33 = vpop.f32.mrf.mxu1  ;;  %2930 = vmatmul.mubr.bf16.vlgmr.msra.gmra.mxu1 %v2315_v5  ;;  %v6153_v5 = vld [vmem:[%s8431_s3 + $0x160] sm:$0xff]  }
 0x271   : > { %v2120_v26 = vadd.f32 %v2119_v49, %v7492_v41  ;;  %5743 = vmatpush3.bf16.msra.mxu0 %v6143_v13  ;;  %v2305_v4 = vmax.f32 %v2118_v14, 0.0  ;;  %v2173_v34 = vadd.f32 %v2172_v33, %v7492_v41  ;;  %5771 = vmatpush3.bf16.msra.mxu1 %v6144_v43  ;;  %v2307_v2 = vmax.f32 %v2171_v3, 0.0  ;;  %v6154_v14 = vld [vmem:[%s8431_s3 + $0x1e0] sm:$0xff]   ;;  %v6159_v3 = vld [vmem:[%s8431_s3 + $0x118] sm:$0xff]   ;;  %v6163_v33 = vld [vmem:[%s8431_s3 + $0x110] sm:$0xff]  }
 0x272   : > { %5744 = vmatprep.subr.bf16.mxu0 %v6145_v18  ;;  %5772 = vmatprep.subr.bf16.mxu1 %v6146_v56  ;;  %v2299_v13 = vmax.f32 %v2167_v57, 0.0  ;;  %v6152_v18 = vld [vmem:[%s8431_s3 + $0x1a8] sm:$0xff]   ;;  %v6156_v56 = vld [vmem:[%s8431_s3 + $0x1a0] sm:$0xff]   ;;  %v6160_v49 = vld [vmem:[%s8431_s3 + $0x198] sm:$0xff]  }
 0x273   : > { %v2306_v50 = vmax.f32 %v2120_v26, 0.0  ;;  %v2308_v12 = vmax.f32 %v2173_v34, 0.0  ;;  %v2321_v40 = vpack.c.bf16 %v2305_v4, %v2297_v51  ;;  %v6161_v57 = vld [vmem:[%s8431_s3 + $0x150] sm:$0xff]   ;;  %v6165_v4 = vld [vmem:[%s8431_s3 + $0x148] sm:$0xff]   ;;  %v8825_v51 = vld [vmem:[#allocation2_spill] sm:$0xff] }
 0x274   : > { %v2323_v17 = vpack.c.bf16 %v2307_v2, %v2299_v13  ;;  %v6162_v26 = vld [vmem:[%s8431_s3 + $0x1d0] sm:$0xff]   ;;  %v6166_v34 = vld [vmem:[%s8431_s3 + $0x1c8] sm:$0xff]   ;;  %v6170_v2 = vld [vmem:[%s8431_s3 + $0x1c0] sm:$0xff]  }
 0x275   : > { %v2322_v1 = vpack.c.bf16 %v2306_v50, %v2298_v25  ;;  %5745 = vmatpush3.bf16.msra.mxu0 %v6147_v0  ;;  %v2324_v43 = vpack.c.bf16 %v2308_v12, %v2300_v23  ;;  %5773 = vmatpush3.bf16.msra.mxu1 %v6148_v59  ;;  %v6164_v0 = vld [vmem:[%s8431_s3 + $0x190] sm:$0xff]   ;;  %v6167_v59 = vld [vmem:[%s8431_s3 + $0x108] sm:$0xff]   ;;  %v6169_v25 = vld [vmem:[%s8431_s3 + $0x140] sm:$0xff]  }
 0x276   : > { %5746 = vmatprep.subr.bf16.mxu0 %v6149_v24  ;;  %5774 = vmatprep.subr.bf16.mxu1 %v6150_v48  ;;  %v6168_v24 = vld [vmem:[%s8431_s3 + $0x188] sm:$0xff]   ;;  %v6171_v50 = vld [vmem:[%s8431_s3 + $0x100] sm:$0xff]  }
 0x277   : > { %2888 = vmatprep.mubr.bf16.mxu0 %v2322_v1  ;;  %2937 = vmatprep.mubr.bf16.mxu1 %v2324_v43  ;;  %v6172_v48 = vld [vmem:[%s8431_s3 + $0x180] sm:$0xff]   ;;  %v8826_v23 = vld [vmem:[#allocation3_spill] sm:$0xff] }
 0x278   : > { %2889 = vmatmul.mubr.bf16.gmra.mxu0 %v2321_v40  ;;  %2938 = vmatmul.mubr.bf16.gmra.mxu1 %v2323_v17 }
 0x279   : > { %5747 = vmatpush3.bf16.msra.mxu0 %v6151_v35  ;;  %5775 = vmatpush3.bf16.msra.mxu1 %v6152_v18 }
 0x27a   : > { %5748 = vmatprep.subr.bf16.mxu0 %v6153_v5  ;;  %5776 = vmatprep.subr.bf16.mxu1 %v6154_v14 }
 0x27d   : > { %5749 = vmatpush3.bf16.msra.mxu0 %v6155_v58  ;;  %5777 = vmatpush3.bf16.msra.mxu1 %v6156_v56 }
 0x27e   : > { %5750 = vmatprep.subr.bf16.mxu0 %v6157_v27  ;;  %5778 = vmatprep.subr.bf16.mxu1 %v6158_v42 }
 0x281   : > { %5751 = vmatpush3.bf16.msra.mxu0 %v6159_v3  ;;  %5779 = vmatpush3.bf16.msra.mxu1 %v6160_v49 }
 0x282   : > { %5752 = vmatprep.subr.bf16.mxu0 %v6161_v57  ;;  %5780 = vmatprep.subr.bf16.mxu1 %v6162_v26 }
 0x285   : > { %5753 = vmatpush3.bf16.msra.mxu0 %v6163_v33  ;;  %5781 = vmatpush3.bf16.msra.mxu1 %v6164_v0 }
 0x286   : > { %5754 = vmatprep.subr.bf16.mxu0 %v6165_v4  ;;  %5782 = vmatprep.subr.bf16.mxu1 %v6166_v34 }
 0x289   : > { %5755 = vmatpush3.bf16.msra.mxu0 %v6167_v59  ;;  %5783 = vmatpush3.bf16.msra.mxu1 %v6168_v24 }
 0x28a   : > { %5756 = vmatprep.subr.bf16.mxu0 %v6169_v25  ;;  %5784 = vmatprep.subr.bf16.mxu1 %v6170_v2 }
 0x28d   : > { %5757 = vmatpush3.bf16.msra.mxu0 %v6171_v50  ;;  %5785 = vmatpush3.bf16.msra.mxu1 %v6172_v48 }
 0x28e   : > { %3096 = vmatprep.subr.bf16.mxu0 %v8825_v51  ;;  %3149 = vmatprep.subr.bf16.mxu1 %v8826_v23 }
 0x2a2   : > { %v2209_v12 = vpop.f32.mrf.mxu0  ;;  %v2262_v13 = vpop.f32.mrf.mxu1 }
 0x2a3   : > { %v2210_v17 = vadd.f32 %v2209_v12, %v7475_v32  ;;  %v2263_v27 = vadd.f32 %v2262_v13, %v7475_v32 }
 0x2a4   : > { %v2211_v1 = vpop.f32.mrf.mxu0  ;;  %v2264_v35 = vpop.f32.mrf.mxu1 }
 0x2a5   : > { %v2212_v43 = vadd.f32 %v2211_v1, %v7475_v32  ;;  %v2265_v14 = vadd.f32 %v2264_v35, %v7475_v32  ;;  %v2285_v59 = vmax.f32 %v2210_v17, 0.0  ;;  %v2287_v50 = vmax.f32 %v2263_v27, 0.0 }
 0x2a6   : > { %v2213_v40 = vpop.f32.mrf.mxu0  ;;  %v2266_v5 = vpop.f32.mrf.mxu1 }
 0x2a7   : > { %v2214_v18 = vadd.f32 %v2213_v40, %v7477_v16  ;;  %v2267_v58 = vadd.f32 %v2266_v5, %v7477_v16  ;;  %v2286_v33 = vmax.f32 %v2212_v43, 0.0  ;;  %v2288_v24 = vmax.f32 %v2265_v14, 0.0 }
 0x2a8   : > { %v2215_v56 = vpop.f32.mrf.mxu0  ;;  %v2268_v3 = vpop.f32.mrf.mxu1 }
 0x2a9   : > { %v2216_v42 = vadd.f32 %v2215_v56, %v7477_v16  ;;  %v2293_v49 = vmax.f32 %v2214_v18, 0.0  ;;  %v2269_v57 = vadd.f32 %v2268_v3, %v7477_v16  ;;  %v2295_v0 = vmax.f32 %v2267_v58, 0.0 }
 0x2aa   : > { %v2219_v26 = vpop.f32.mrf.mxu0  ;;  %v2272_v34 = vpop.f32.mrf.mxu1 }
 0x2ab   : > { %v2294_v4 = vmax.f32 %v2216_v42, 0.0  ;;  %v2296_v25 = vmax.f32 %v2269_v57, 0.0  ;;  %v2317_v1 = vpack.c.bf16 %v2293_v49, %v2285_v59  ;;  %v2319_v35 = vpack.c.bf16 %v2295_v0, %v2287_v50  ;;  %v8828_v50 = vld [vmem:[#allocation8_spill] sm:$0xff] }
 0x2ac   : > { %v2221_v2 = vpop.f32.mrf.mxu0  ;;  %v2274_v12 = vpop.f32.mrf.mxu1  ;;  %v2220_v43 = vadd.f32 %v2219_v26, %v7487_v9  ;;  %v2273_v58 = vadd.f32 %v2272_v34, %v7487_v9 }
 0x2ad   : > { %v2318_v48 = vpack.c.bf16 %v2294_v4, %v2286_v33  ;;  %v2320_v32 = vpack.c.bf16 %v2296_v25, %v2288_v24  ;;  %v2222_v40 = vadd.f32 %v2221_v2, %v7487_v9  ;;  %v2275_v5 = vadd.f32 %v2274_v12, %v7487_v9  ;;  %v7618_v25 = vld [vmem:[%s8429_s1 + $0x44] ss:$8 sps:$4 sm:$0xff]  }
 0x2ae   : > { %v2223_v13 = vpop.f32.mrf.mxu0  ;;  %v2276_v18 = vpop.f32.mrf.mxu1  ;;  %v2301_v33 = vmax.f32 %v2220_v43, 0.0  ;;  %v2303_v4 = vmax.f32 %v2273_v58, 0.0  ;;  %v8827_v2 = vld [vmem:[#allocation7_spill] sm:$0xff]  ;;  %v8830_v12 = vld [vmem:[#allocation10_spill] sm:$0xff] }
 0x2af   : > { %v2224_v16 = vadd.f32 %v2223_v13, %v7492_v41  ;;  %2978 = vmatprep.mubr.bf16.mxu0 %v2318_v48  ;;  %v2277_v17 = vadd.f32 %v2276_v18, %v7492_v41  ;;  %3027 = vmatprep.mubr.bf16.mxu1 %v2320_v32  ;;  %v2302_v49 = vmax.f32 %v2222_v40, 0.0  ;;  %v2304_v9 = vmax.f32 %v2275_v5, 0.0  ;;  %v8829_v48 = vld [vmem:[#allocation9_spill] sm:$0xff]  ;;  %v8832_v32 = vld [vmem:[#allocation12_spill] sm:$0xff]  ;;  %v8835_v40 = vld [vmem:[#allocation15_spill] sm:$0xff] }
 0x2b0   : > { %v2225_v14 = vpop.f32.mrf.mxu0  ;;  %2979 = vmatmul.mubr.bf16.vlgmr.msra.gmra.mxu0 %v2317_v1  ;;  %v2278_v27 = vpop.f32.mrf.mxu1  ;;  %3028 = vmatmul.mubr.bf16.vlgmr.msra.gmra.mxu1 %v2319_v35  ;;  %v8831_v1 = vld [vmem:[#allocation11_spill] sm:$0xff]  ;;  %v8833_v13 = vld [vmem:[#allocation13_spill] sm:$0xff]  ;;  %v8834_v35 = vld [vmem:[#allocation14_spill] sm:$0xff] }
 0x2b1   : > { %v2226_v56 = vadd.f32 %v2225_v14, %v7492_v41  ;;  %3097 = vmatpush1.bf16.msra.mxu0 %v6381_v6  ;;  %v2309_v42 = vmax.f32 %v2224_v16, 0.0  ;;  %v2279_v3 = vadd.f32 %v2278_v27, %v7492_v41  ;;  %3150 = vmatpush1.bf16.msra.mxu1 %v6387_v10  ;;  %v2311_v57 = vmax.f32 %v2277_v17, 0.0  ;;  %v8836_v16 = vld [vmem:[#allocation16_spill] sm:$0xff]  ;;  %v8837_v18 = vld [vmem:[#allocation17_spill] sm:$0xff]  ;;  %v8838_v43 = vld [vmem:[#allocation18_spill] sm:$0xff] }
 0x2b2   : > { %3098 = vmatprep.subr.bf16.mxu0 %v6389_v11  ;;  %3151 = vmatprep.subr.bf16.mxu1 %v6395_v15  ;;  %v8839_v5 = vld [vmem:[#allocation19_spill] sm:$0xff]  ;;  %v8840_v17 = vld [vmem:[#allocation20_spill] sm:$0xff]  ;;  %v8841_v14 = vld [vmem:[#allocation21_spill] sm:$0xff] }
 0x2b3   : > { %v2310_v26 = vmax.f32 %v2226_v56, 0.0  ;;  %v2312_v0 = vmax.f32 %v2279_v3, 0.0  ;;  %v2325_v59 = vpack.c.bf16 %v2309_v42, %v2301_v33  ;;  %v2327_v41 = vpack.c.bf16 %v2311_v57, %v2303_v4  ;;  %v8842_v58 = vld [vmem:[#allocation22_spill] sm:$0xff]  ;;  %v8843_v56 = vld [vmem:[#allocation23_spill] sm:$0xff]  ;;  %v8844_v27 = vld [vmem:[#allocation24_spill] sm:$0xff] }
 0x2b4   : > { %v8845_v42 = vld [vmem:[#allocation25_spill] sm:$0xff]  ;;  %v8846_v3 = vld [vmem:[#allocation26_spill] sm:$0xff]  ;;  %v8848_v57 = vld [vmem:[#allocation28_spill] sm:$0xff] }
 0x2b5   : > { %v2326_v34 = vpack.c.bf16 %v2310_v26, %v2302_v49  ;;  %3099 = vmatpush1.bf16.msra.mxu0 %v6402_v19  ;;  %v2328_v24 = vpack.c.bf16 %v2312_v0, %v2304_v9  ;;  %3152 = vmatpush1.bf16.msra.mxu1 %v6406_v20  ;;  %v8847_v49 = vld [vmem:[#allocation27_spill] sm:$0xff]  ;;  %v8849_v26 = vld [vmem:[#allocation29_spill] sm:$0xff]  ;;  %v8850_v33 = vld [vmem:[#allocation30_spill] sm:$0xff] }
 0x2b6   : > { %3100 = vmatprep.subr.bf16.mxu0 %v6408_v21  ;;  %3153 = vmatprep.subr.bf16.mxu1 %v6411_v22  ;;  %v8851_v9 = vld [vmem:[#allocation31_spill] sm:$0xff]  ;;  %v8852_v0 = vld [vmem:[#allocation32_spill] sm:$0xff]  ;;  %v8853_v4 = vld [vmem:[#allocation33_spill] sm:$0xff] }
 0x2b7   : > { %2986 = vmatprep.mubr.bf16.mxu0 %v2326_v34  ;;  %3035 = vmatprep.mubr.bf16.mxu1 %v2328_v24  ;;  %v8854_v34 = vld [vmem:[#allocation34_spill] sm:$0xff]  ;;  %v8856_v24 = vld [vmem:[#allocation36_spill] sm:$0xff] }
 0x2b8   : > { %2987 = vmatmul.mubr.bf16.gmra.mxu0 %v2325_v59  ;;  %3036 = vmatmul.mubr.bf16.gmra.mxu1 %v2327_v41  ;;  %v8855_v59 = vld [vmem:[#allocation35_spill] sm:$0xff] }
 0x2b9   : > { %3101 = vmatpush1.bf16.msra.mxu0 %v6418_v28  ;;  %3154 = vmatpush1.bf16.msra.mxu1 %v6422_v29  ;;  %v7677_v41 = vld [vmem:[%s8429_s1 + $0x40] ss:$8 sps:$4 sm:$0xff]  }
 0x2ba   : > { %3102 = vmatprep.subr.bf16.mxu0 %v6424_v30  ;;  %3155 = vmatprep.subr.bf16.mxu1 %v6427_v31 }
 0x2bb   : > { %3128 = vmatprep.mubr.bf16.mxu0 %v7618_v25  ;;  %3181 = vmatprep.mubr.bf16.mxu1 %v7618_v25 }
 0x2bd   : > { %3103 = vmatpush1.bf16.msra.mxu0 %v6434_v36  ;;  %3156 = vmatpush1.bf16.msra.mxu1 %v6438_v37 }
 0x2be   : > { %3104 = vmatprep.subr.bf16.mxu0 %v6440_v38  ;;  %3157 = vmatprep.subr.bf16.mxu1 %v6443_v39 }
 0x2c1   : > { %3105 = vmatpush1.bf16.msra.mxu0 %v6450_v44  ;;  %3158 = vmatpush1.bf16.msra.mxu1 %v6454_v45 }
 0x2c2   : > { %3106 = vmatprep.subr.bf16.mxu0 %v6456_v46  ;;  %3159 = vmatprep.subr.bf16.mxu1 %v6459_v47 }
 0x2c5   : > { %3107 = vmatpush1.bf16.msra.mxu0 %v6466_v52  ;;  %3160 = vmatpush1.bf16.msra.mxu1 %v6470_v53 }
 0x2c6   : > { %3108 = vmatprep.subr.bf16.mxu0 %v6472_v54  ;;  %3161 = vmatprep.subr.bf16.mxu1 %v6475_v55 }
 0x2c9   : > { %3109 = vmatpush1.bf16.msra.mxu0 %v6482_v60  ;;  %3162 = vmatpush1.bf16.msra.mxu1 %v6486_v61 }
 0x2ca   : > { %3110 = vmatprep.subr.bf16.mxu0 %v6488_v62  ;;  %3163 = vmatprep.subr.bf16.mxu1 %v6491_v63 }
 0x2cd   : > { %3111 = vmatpush1.bf16.msra.mxu0 %v6498_v7  ;;  %3164 = vmatpush1.bf16.msra.mxu1 %v6502_v8 }
 0x2ce   : > { %3112 = vmatprep.subr.bf16.mxu0 %v8827_v2  ;;  %3165 = vmatprep.subr.bf16.mxu1 %v8828_v50 }
 0x2d1   : > { %3113 = vmatpush2.bf16.msra.mxu0 %v8829_v48  ;;  %3166 = vmatpush2.bf16.msra.mxu1 %v8830_v12 }
 0x2d2   : > { %3114 = vmatprep.subr.bf16.mxu0 %v8831_v1  ;;  %3167 = vmatprep.subr.bf16.mxu1 %v8832_v32 }
 0x2d5   : > { %3115 = vmatpush2.bf16.msra.mxu0 %v8833_v13  ;;  %3168 = vmatpush2.bf16.msra.mxu1 %v8834_v35 }
 0x2d6   : > { %3116 = vmatprep.subr.bf16.mxu0 %v8835_v40  ;;  %3169 = vmatprep.subr.bf16.mxu1 %v8836_v16 }
 0x2d9   : > { %3117 = vmatpush2.bf16.msra.mxu0 %v8837_v18  ;;  %3170 = vmatpush2.bf16.msra.mxu1 %v8838_v43 }
 0x2da   : > { %3118 = vmatprep.subr.bf16.mxu0 %v8839_v5  ;;  %3171 = vmatprep.subr.bf16.mxu1 %v8840_v17 }
 0x2dd   : > { %3119 = vmatpush2.bf16.msra.mxu0 %v8841_v14  ;;  %3172 = vmatpush2.bf16.msra.mxu1 %v8842_v58 }
 0x2de   : > { %3120 = vmatprep.subr.bf16.mxu0 %v8843_v56  ;;  %3173 = vmatprep.subr.bf16.mxu1 %v8844_v27 }
 0x2e1   : > { %3121 = vmatpush2.bf16.msra.mxu0 %v8845_v42  ;;  %3174 = vmatpush2.bf16.msra.mxu1 %v8846_v3  ;;  %v8877_v3 = vld [vmem:[#allocation57_spill] sm:$0xff]  ;;  %v8882_v42 = vld [vmem:[#allocation62_spill] sm:$0xff] }
 0x2e2   : > { %3122 = vmatprep.subr.bf16.mxu0 %v8847_v49  ;;  %3175 = vmatprep.subr.bf16.mxu1 %v8848_v57  ;;  %v8871_v57 = vld [vmem:[#allocation51_spill] sm:$0xff]  ;;  %v8872_v49 = vld [vmem:[#allocation52_spill] sm:$0xff] }
 0x2e5   : > { %3123 = vmatpush2.bf16.msra.mxu0 %v8849_v26  ;;  %3176 = vmatpush2.bf16.msra.mxu1 %v8850_v33  ;;  %v8857_v26 = vld [vmem:[#allocation37_spill] sm:$0xff]  ;;  %v8858_v33 = vld [vmem:[#allocation38_spill] sm:$0xff] }
 0x2e6   : > { %3124 = vmatprep.subr.bf16.mxu0 %v8851_v9  ;;  %3177 = vmatprep.subr.bf16.mxu1 %v8852_v0  ;;  %v8859_v9 = vld [vmem:[#allocation39_spill] sm:$0xff]  ;;  %v8860_v0 = vld [vmem:[#allocation40_spill] sm:$0xff] }
 0x2e9   : > { %3125 = vmatpush2.bf16.msra.mxu0 %v8853_v4  ;;  %3178 = vmatpush2.bf16.msra.mxu1 %v8854_v34  ;;  %v7686_v34 = vld [vmem:[%s8429_s1 + $0x54] ss:$8 sps:$4 sm:$0xff]   ;;  %v8866_v4 = vld [vmem:[#allocation46_spill] sm:$0xff] }
 0x2ea   : > { %3126 = vmatprep.subr.bf16.mxu0 %v8855_v59  ;;  %3179 = vmatprep.subr.bf16.mxu1 %v8856_v24  ;;  %v8861_v24 = vld [vmem:[#allocation41_spill] sm:$0xff]  ;;  %v8862_v59 = vld [vmem:[#allocation42_spill] sm:$0xff] }
 0x2ed   : > { %3127 = vmatpush2.bf16.msra.mxu0 %v8857_v26  ;;  %3180 = vmatpush2.bf16.msra.mxu1 %v8858_v33  ;;  %v8863_v26 = vld [vmem:[#allocation43_spill] sm:$0xff]  ;;  %v8864_v33 = vld [vmem:[#allocation44_spill] sm:$0xff] }
 0x2ee   : > { %3202 = vmatprep.subr.bf16.mxu0 %v8859_v9  ;;  %3255 = vmatprep.subr.bf16.mxu1 %v8860_v0  ;;  %v7699_v0 = vld [vmem:[%s8429_s1 + $0x50] ss:$8 sps:$4 sm:$0xff]  }
 0x2ef   : > { %v8865_v9 = vld [vmem:[#allocation45_spill] sm:$0xff] }
 0x2f0   : > { %3129 = vmatmul.mubr.bf16.vlgmr.msra.gmra.mxu0 %v7677_v41  ;;  %3182 = vmatmul.mubr.bf16.vlgmr.msra.gmra.mxu1 %v7677_v41 }
 0x2f1   : > { %3203 = vmatpush1.bf16.msra.mxu0 %v8861_v24  ;;  %3256 = vmatpush1.bf16.msra.mxu1 %v8862_v59  ;;  %v8867_v24 = vld [vmem:[#allocation47_spill] sm:$0xff]  ;;  %v8868_v59 = vld [vmem:[#allocation48_spill] sm:$0xff] }
 0x2f2   : > { %3204 = vmatprep.subr.bf16.mxu0 %v8863_v26  ;;  %3257 = vmatprep.subr.bf16.mxu1 %v8864_v33  ;;  %v8869_v33 = vld [vmem:[#allocation49_spill] sm:$0xff]  ;;  %v8870_v26 = vld [vmem:[#allocation50_spill] sm:$0xff] }
 0x2f3   : > { %3138 = vmatprep.mubr.bf16.mxu0 %v7686_v34  ;;  %3191 = vmatprep.mubr.bf16.mxu1 %v7686_v34 }
 0x2f5   : > { %3205 = vmatpush1.bf16.msra.mxu0 %v8865_v9  ;;  %3258 = vmatpush1.bf16.msra.mxu1 %v8866_v4  ;;  %v8873_v4 = vld [vmem:[#allocation53_spill] sm:$0xff]  ;;  %v8876_v9 = vld [vmem:[#allocation56_spill] sm:$0xff] }
 0x2f6   : > { %3206 = vmatprep.subr.bf16.mxu0 %v8867_v24  ;;  %3259 = vmatprep.subr.bf16.mxu1 %v8868_v59  ;;  %v8874_v24 = vld [vmem:[#allocation54_spill] sm:$0xff]  ;;  %v8875_v59 = vld [vmem:[#allocation55_spill] sm:$0xff] }
 0x2f8   : > { %3139 = vmatmul.mubr.bf16.gmra.mxu0 %v7699_v0  ;;  %3192 = vmatmul.mubr.bf16.gmra.mxu1 %v7699_v0 }
 0x2f9   : > { %3207 = vmatpush1.bf16.msra.mxu0 %v8869_v33  ;;  %3260 = vmatpush1.bf16.msra.mxu1 %v8870_v26  ;;  %v8878_v33 = vld [vmem:[#allocation58_spill] sm:$0xff]  ;;  %v8879_v26 = vld [vmem:[#allocation59_spill] sm:$0xff] }
 0x2fa   : > { %3208 = vmatprep.subr.bf16.mxu0 %v8871_v57  ;;  %3261 = vmatprep.subr.bf16.mxu1 %v8872_v49  ;;  %v8880_v57 = vld [vmem:[#allocation60_spill] sm:$0xff]  ;;  %v8881_v49 = vld [vmem:[#allocation61_spill] sm:$0xff] }
 0x2fb   : > { %3234 = vmatprep.mubr.bf16.mxu0 %v7618_v25  ;;  %3287 = vmatprep.mubr.bf16.mxu1 %v7618_v25  ;;  %v8883_v25 = vld [vmem:[#allocation63_spill] sm:$0xff] }
 0x2fd   : > { %3209 = vmatpush1.bf16.msra.mxu0 %v8873_v4  ;;  %3262 = vmatpush1.bf16.msra.mxu1 %v8874_v24  ;;  %v8884_v4 = vld [vmem:[#allocation64_spill] sm:$0xff]  ;;  %v8885_v24 = vld [vmem:[#allocation65_spill] sm:$0xff] }
 0x2fe   : > { %3210 = vmatprep.subr.bf16.mxu0 %v8875_v59  ;;  %3263 = vmatprep.subr.bf16.mxu1 %v8876_v9  ;;  %v8886_v59 = vld [vmem:[#allocation66_spill] sm:$0xff]  ;;  %v8887_v9 = vld [vmem:[#allocation67_spill] sm:$0xff] }
 0x301   : > { %3211 = vmatpush1.bf16.msra.mxu0 %v8877_v3  ;;  %3264 = vmatpush1.bf16.msra.mxu1 %v8878_v33  ;;  %v8888_v3 = vld [vmem:[#allocation68_spill] sm:$0xff]  ;;  %v8889_v33 = vld [vmem:[#allocation69_spill] sm:$0xff] }
 0x302   : > { %3212 = vmatprep.subr.bf16.mxu0 %v8879_v26  ;;  %3265 = vmatprep.subr.bf16.mxu1 %v8880_v57  ;;  %v8890_v26 = vld [vmem:[#allocation70_spill] sm:$0xff]  ;;  %v8891_v57 = vld [vmem:[#allocation71_spill] sm:$0xff] }
 0x305   : > { %3213 = vmatpush1.bf16.msra.mxu0 %v8881_v49  ;;  %3266 = vmatpush1.bf16.msra.mxu1 %v8882_v42  ;;  %v8892_v49 = vld [vmem:[#allocation72_spill] sm:$0xff]  ;;  %v8893_v42 = vld [vmem:[#allocation73_spill] sm:$0xff] }
 0x306   : > { %3214 = vmatprep.subr.bf16.mxu0 %v8883_v25  ;;  %3267 = vmatprep.subr.bf16.mxu1 %v8884_v4  ;;  %v8894_v25 = vld [vmem:[#allocation74_spill] sm:$0xff]  ;;  %v8895_v4 = vld [vmem:[#allocation75_spill] sm:$0xff] }
 0x309   : > { %3215 = vmatpush1.bf16.msra.mxu0 %v8885_v24  ;;  %3268 = vmatpush1.bf16.msra.mxu1 %v8886_v59  ;;  %v8896_v24 = vld [vmem:[#allocation76_spill] sm:$0xff]  ;;  %v8897_v59 = vld [vmem:[#allocation77_spill] sm:$0xff] }
 0x30a   : > { %3216 = vmatprep.subr.bf16.mxu0 %v8887_v9  ;;  %3269 = vmatprep.subr.bf16.mxu1 %v8888_v3  ;;  %v8898_v9 = vld [vmem:[#allocation78_spill] sm:$0xff]  ;;  %v8899_v3 = vld [vmem:[#allocation79_spill] sm:$0xff] }
 0x30d   : > { %3217 = vmatpush1.bf16.msra.mxu0 %v8889_v33  ;;  %3270 = vmatpush1.bf16.msra.mxu1 %v8890_v26  ;;  %v8900_v33 = vld [vmem:[#allocation80_spill] sm:$0xff]  ;;  %v8901_v26 = vld [vmem:[#allocation81_spill] sm:$0xff] }
 0x30e   : > { %3218 = vmatprep.subr.bf16.mxu0 %v8891_v57  ;;  %3271 = vmatprep.subr.bf16.mxu1 %v8892_v49  ;;  %v8902_v57 = vld [vmem:[#allocation82_spill] sm:$0xff]  ;;  %v8903_v49 = vld [vmem:[#allocation83_spill] sm:$0xff] }
 0x311   : > { %3219 = vmatpush2.bf16.msra.mxu0 %v8893_v42  ;;  %3272 = vmatpush2.bf16.msra.mxu1 %v8894_v25  ;;  %v8904_v42 = vld [vmem:[#allocation84_spill] sm:$0xff]  ;;  %v8905_v25 = vld [vmem:[#allocation85_spill] sm:$0xff] }
 0x312   : > { %3220 = vmatprep.subr.bf16.mxu0 %v8895_v4  ;;  %3273 = vmatprep.subr.bf16.mxu1 %v8896_v24  ;;  %v8906_v4 = vld [vmem:[#allocation86_spill] sm:$0xff]  ;;  %v8907_v24 = vld [vmem:[#allocation87_spill] sm:$0xff] }
 0x315   : > { %3221 = vmatpush2.bf16.msra.mxu0 %v8897_v59  ;;  %3274 = vmatpush2.bf16.msra.mxu1 %v8898_v9  ;;  %v8908_v59 = vld [vmem:[#allocation88_spill] sm:$0xff]  ;;  %v8909_v9 = vld [vmem:[#allocation89_spill] sm:$0xff] }
 0x316   : > { %3222 = vmatprep.subr.bf16.mxu0 %v8899_v3  ;;  %3275 = vmatprep.subr.bf16.mxu1 %v8900_v33  ;;  %v8910_v3 = vld [vmem:[#allocation90_spill] sm:$0xff]  ;;  %v8911_v33 = vld [vmem:[#allocation91_spill] sm:$0xff] }
 0x319   : > { %3223 = vmatpush2.bf16.msra.mxu0 %v8901_v26  ;;  %3276 = vmatpush2.bf16.msra.mxu1 %v8902_v57  ;;  %v8912_v26 = vld [vmem:[#allocation92_spill] sm:$0xff]  ;;  %v8913_v57 = vld [vmem:[#allocation93_spill] sm:$0xff] }
 0x31a   : > { %3224 = vmatprep.subr.bf16.mxu0 %v8903_v49  ;;  %3277 = vmatprep.subr.bf16.mxu1 %v8904_v42  ;;  %v8914_v49 = vld [vmem:[#allocation94_spill] sm:$0xff]  ;;  %v8915_v42 = vld [vmem:[#allocation95_spill] sm:$0xff] }
 0x31d   : > { %3225 = vmatpush2.bf16.msra.mxu0 %v8905_v25  ;;  %3278 = vmatpush2.bf16.msra.mxu1 %v8906_v4  ;;  %v8916_v25 = vld [vmem:[#allocation96_spill] sm:$0xff]  ;;  %v8917_v4 = vld [vmem:[#allocation97_spill] sm:$0xff] }
 0x31e   : > { %3226 = vmatprep.subr.bf16.mxu0 %v8907_v24  ;;  %3279 = vmatprep.subr.bf16.mxu1 %v8908_v59  ;;  %v8918_v24 = vld [vmem:[#allocation98_spill] sm:$0xff]  ;;  %v8919_v59 = vld [vmem:[#allocation99_spill] sm:$0xff] }
 0x321   : > { %3227 = vmatpush2.bf16.msra.mxu0 %v8909_v9  ;;  %3280 = vmatpush2.bf16.msra.mxu1 %v8910_v3  ;;  %v8920_v3 = vld [vmem:[#allocation100_spill] sm:$0xff] }
 0x322   : > { %3228 = vmatprep.subr.bf16.mxu0 %v8911_v33  ;;  %3281 = vmatprep.subr.bf16.mxu1 %v8912_v26  ;;  %v6179_v33 = vld [vmem:[%s8431_s3 + $0x78] sm:$0xff]  }
 0x325   : > { %3229 = vmatpush2.bf16.msra.mxu0 %v8913_v57  ;;  %3282 = vmatpush2.bf16.msra.mxu1 %v8914_v49  ;;  %v6180_v49 = vld [vmem:[%s8431_s3 + $0xf8] sm:$0xff]  }
 0x326   : > { %3230 = vmatprep.subr.bf16.mxu0 %v8915_v42  ;;  %3283 = vmatprep.subr.bf16.mxu1 %v8916_v25  ;;  %v8921_v57 = vld [vmem:[#allocation101_spill] sm:$0xff]  ;;  %v8922_v42 = vld [vmem:[#allocation102_spill] sm:$0xff] }
 0x329   : > { %3231 = vmatpush2.bf16.msra.mxu0 %v8917_v4  ;;  %3284 = vmatpush2.bf16.msra.mxu1 %v8918_v24  ;;  %v6181_v24 = vld [vmem:[%s8431_s3 + $0x38] sm:$0xff]  }
 0x32a   : > { %3232 = vmatprep.subr.bf16.mxu0 %v8919_v59  ;;  %3285 = vmatprep.subr.bf16.mxu1 %v8920_v3  ;;  %v6182_v59 = vld [vmem:[%s8431_s3 + $0xb8] sm:$0xff]   ;;  %v6183_v3 = vld [vmem:[%s8431_s3 + $0x70] sm:$0xff]  }
 0x32d   : > { %3233 = vmatpush2.bf16.msra.mxu0 %v8921_v57  ;;  %3286 = vmatpush2.bf16.msra.mxu1 %v8922_v42  ;;  %v6184_v42 = vld [vmem:[%s8431_s3 + $0xf0] sm:$0xff]   ;;  %v6187_v57 = vld [vmem:[%s8431_s3 + $0x68] sm:$0xff]  }
 0x32e   : > { %5798 = vmatprep.subr.bf16.mxu0 %v6179_v33  ;;  %5826 = vmatprep.subr.bf16.mxu1 %v6180_v49  ;;  %v6185_v49 = vld [vmem:[%s8431_s3 + $0x30] sm:$0xff]  }
 0x32f   : > { %v6186_v33 = vld [vmem:[%s8431_s3 + $0xb0] sm:$0xff]  }
 0x330   : > { %3235 = vmatmul.mubr.bf16.vlgmr.msra.gmra.mxu0 %v7677_v41  ;;  %3288 = vmatmul.mubr.bf16.vlgmr.msra.gmra.mxu1 %v7677_v41  ;;  %v6194_v41 = vld [vmem:[%s8431_s3 + $0xa0] sm:$0xff]  }
 0x331   : > { %3244 = vmatprep.mubr.bf16.mxu0 %v7686_v34  ;;  %3297 = vmatprep.mubr.bf16.mxu1 %v7686_v34  ;;  %v6188_v34 = vld [vmem:[%s8431_s3 + $0xe8] sm:$0xff]  }
 0x332   : > { %5799 = vmatpush3.bf16.msra.mxu0 %v6181_v24  ;;  %5827 = vmatpush3.bf16.msra.mxu1 %v6182_v59  ;;  %v6189_v24 = vld [vmem:[%s8431_s3 + $0x28] sm:$0xff]   ;;  %v6191_v59 = vld [vmem:[%s8431_s3 + $0x60] sm:$0xff]  }
 0x333   : > { %5800 = vmatprep.subr.bf16.mxu0 %v6183_v3  ;;  %5828 = vmatprep.subr.bf16.mxu1 %v6184_v42  ;;  %v6190_v3 = vld [vmem:[%s8431_s3 + $0xa8] sm:$0xff]   ;;  %v6192_v42 = vld [vmem:[%s8431_s3 + $0xe0] sm:$0xff]  }
 0x336   : > { %5801 = vmatpush3.bf16.msra.mxu0 %v6185_v49  ;;  %5829 = vmatpush3.bf16.msra.mxu1 %v6186_v33  ;;  %v6195_v49 = vld [vmem:[%s8431_s3 + $0x58] sm:$0xff]  }
 0x337   : > { %5802 = vmatprep.subr.bf16.mxu0 %v6187_v57  ;;  %5830 = vmatprep.subr.bf16.mxu1 %v6188_v34  ;;  %v6193_v57 = vld [vmem:[%s8431_s3 + $0x20] sm:$0xff]   ;;  %v6197_v33 = vld [vmem:[%s8431_s3 + $0x18] sm:$0xff]  }
 0x338   : > { %3245 = vmatmul.mubr.bf16.gmra.mxu0 %v7699_v0  ;;  %3298 = vmatmul.mubr.bf16.gmra.mxu1 %v7699_v0  ;;  %v6196_v0 = vld [vmem:[%s8431_s3 + $0xd8] sm:$0xff]  }
 0x339   : > { %v6198_v34 = vld [vmem:[%s8431_s3 + $0x98] sm:$0xff]  }
 0x33a   : > { %5803 = vmatpush3.bf16.msra.mxu0 %v6189_v24  ;;  %5831 = vmatpush3.bf16.msra.mxu1 %v6190_v3  ;;  %v6199_v24 = vld [vmem:[%s8431_s3 + $0x50] sm:$0xff]  }
 0x33b   : > { %5804 = vmatprep.subr.bf16.mxu0 %v6191_v59  ;;  %5832 = vmatprep.subr.bf16.mxu1 %v6192_v42  ;;  %v6200_v3 = vld [vmem:[%s8431_s3 + $0xd0] sm:$0xff]  }
 0x33c   : > { %v6201_v59 = vld [vmem:[%s8431_s3 + $0x10] sm:$0xff]  }
 0x33d   : > { %v6202_v42 = vld [vmem:[%s8431_s3 + $0x90] sm:$0xff]  }
 0x33e   : > { %5805 = vmatpush3.bf16.msra.mxu0 %v6193_v57  ;;  %5833 = vmatpush3.bf16.msra.mxu1 %v6194_v41  ;;  %v6203_v57 = vld [vmem:[%s8431_s3 + $0x48] sm:$0xff]  }
 0x33f   : > { %5806 = vmatprep.subr.bf16.mxu0 %v6195_v49  ;;  %5834 = vmatprep.subr.bf16.mxu1 %v6196_v0  ;;  %v6204_v41 = vld [vmem:[%s8431_s3 + $0xc8] sm:$0xff]  }
 0x340   : > { %v6205_v49 = vld [vmem:[%s8431_s3 + $0x8] sm:$0xff]  }
 0x341   : > { %v6206_v0 = vld [vmem:[%s8431_s3 + $0x88] sm:$0xff]  }
 0x342   : > { %5807 = vmatpush3.bf16.msra.mxu0 %v6197_v33  ;;  %5835 = vmatpush3.bf16.msra.mxu1 %v6198_v34  ;;  %v6207_v33 = vld [vmem:[%s8431_s3 + $0x40] sm:$0xff]  }
 0x343   : > { %5808 = vmatprep.subr.bf16.mxu0 %v6199_v24  ;;  %5836 = vmatprep.subr.bf16.mxu1 %v6200_v3  ;;  %v6208_v34 = vld [vmem:[%s8431_s3 + $0xc0] sm:$0xff]  }
 0x344   : > { %v6209_v24 = vld [vmem:[%s8431_s3] sm:$0xff]  }
 0x345   : > { %v6210_v3 = vld [vmem:[%s8431_s3 + $0x80] sm:$0xff]  }
 0x346   : > { %5809 = vmatpush3.bf16.msra.mxu0 %v6201_v59  ;;  %5837 = vmatpush3.bf16.msra.mxu1 %v6202_v42  ;;  %v6211_v59 = vld [vmem:[%s8431_s3 + $0x178] sm:$0xff]  }
 0x347   : > { %5810 = vmatprep.subr.bf16.mxu0 %v6203_v57  ;;  %5838 = vmatprep.subr.bf16.mxu1 %v6204_v41  ;;  %v6212_v42 = vld [vmem:[%s8431_s3 + $0x1f8] sm:$0xff]   ;;  %v5702_v57 = vpop.f32.mrf.mxu0  ;;  %v5730_v41 = vpop.f32.mrf.mxu1 }
 0x34a   : > { %5811 = vmatpush3.bf16.msra.mxu0 %v6205_v49  ;;  %5839 = vmatpush3.bf16.msra.mxu1 %v6206_v0  ;;  %v5703_v49 = vpop.f32.mrf.mxu0  ;;  %v5731_v0 = vpop.f32.mrf.mxu1 }
 0x34b   : > { %5812 = vmatprep.subr.bf16.mxu0 %v6207_v33  ;;  %5840 = vmatprep.subr.bf16.mxu1 %v6208_v34  ;;  %v5704_v14 = vadd.f32 %v5703_v49, %v5702_v57  ;;  %v5732_v18 = vadd.f32 %v5731_v0, %v5730_v41 }
 0x34c   : > { %v5705_v33 = vpop.f32.mrf.mxu0  ;;  %v5733_v4 = vpop.f32.mrf.mxu1 }
 0x34e   : > { %5813 = vmatpush3.bf16.msra.mxu0 %v6209_v24  ;;  %5841 = vmatpush3.bf16.msra.mxu1 %v6210_v3  ;;  %v5706_v25 = vpop.f32.mrf.mxu0  ;;  %v5734_v26 = vpop.f32.mrf.mxu1  ;;  %v5367_v24 = vld [vmem:[%s8432_s4] ss:$0 sm:$0xff] }
 0x34f   : > { %5854 = vmatprep.subr.bf16.mxu0 %v6211_v59  ;;  %5882 = vmatprep.subr.bf16.mxu1 %v6212_v42  ;;  %v5707_v3 = vadd.f32 %v5706_v25, %v5705_v33  ;;  %v2883_v42 = vadd.f32 %v5704_v14, %v5367_v24  ;;  %v5735_v57 = vadd.f32 %v5734_v26, %v5733_v4 }
 0x350   : > { %v5708_v9 = vpop.f32.mrf.mxu0  ;;  %v5736_v27 = vpop.f32.mrf.mxu1 }
 0x351   : > { %v2886_v40 = vadd.f32 %v5707_v3, %v5367_v24  ;;  %v2932_v13 = vadd.f32 %v5732_v18, %v2883_v42 }
 0x352   : > { %v5709_v56 = vpop.f32.mrf.mxu0  ;;  %v5737_v34 = vpop.f32.mrf.mxu1 }
 0x353   : > { %v5710_v32 = vadd.f32 %v5709_v56, %v5708_v9  ;;  %v2935_v8 = vadd.f32 %v5735_v57, %v2886_v40  ;;  %v5738_v3 = vadd.f32 %v5737_v34, %v5736_v27  ;;  %v7878_v57 = vpop.permute.xlu0 %3058 }
 0x354   : > { %v5711_v58 = vpop.f32.mrf.mxu0  ;;  %v5739_v17 = vpop.f32.mrf.mxu1 }
 0x355   : > { %v2891_v33 = vadd.f32 %v5710_v32, %v5367_v24 }
 0x356   : > { %v5712_v59 = vpop.f32.mrf.mxu0  ;;  %v5740_v5 = vpop.f32.mrf.mxu1 }
 0x357   : > { %v5713_v14 = vadd.f32 %v5712_v59, %v5711_v58  ;;  %v2940_v26 = vadd.f32 %v5738_v3, %v2891_v33 }
 0x370   : > { %v5758_v43 = vpop.f32.mrf.mxu0  ;;  %v5786_v16 = vpop.f32.mrf.mxu1 }
 0x372   : > { %v5759_v35 = vpop.f32.mrf.mxu0  ;;  %v5787_v12 = vpop.f32.mrf.mxu1 }
 0x373   : > { %v5760_v1 = vadd.f32 %v5759_v35, %v5758_v43  ;;  %v5788_v50 = vadd.f32 %v5787_v12, %v5786_v16  ;;  %v5741_v16 = vadd.f32 %v5740_v5, %v5739_v17  ;;  %v7880_v17 = vpop.permute.xlu1 %3063 }
 0x374   : > { %v5761_v49 = vpop.f32.mrf.mxu0  ;;  %v5789_v2 = vpop.f32.mrf.mxu1 }
 0x375   : > { %v2981_v48 = vadd.f32 %v5760_v1, %v2932_v13  ;;  %v2894_v1 = vadd.f32 %v5713_v14, %v5367_v24 }
 0x376   : > { %v5762_v25 = vpop.f32.mrf.mxu0  ;;  %v5790_v41 = vpop.f32.mrf.mxu1 }
 0x377   : > { %v3030_v7 = vadd.f32 %v5788_v50, %v2981_v48  ;;  %v5763_v63 = vadd.f32 %v5762_v25, %v5761_v49  ;;  %v5791_v35 = vadd.f32 %v5790_v41, %v5789_v2  ;;  %v2943_v27 = vadd.f32 %v5741_v16, %v2894_v1 }
 0x378   : > { %v5764_v0 = vpop.f32.mrf.mxu0  ;;  %v5792_v43 = vpop.f32.mrf.mxu1 }
 0x379   : > { %3044 = vst [vmem:[%s7469_s20 + $0x20] sm:$0xff] %v3030_v7  ;;  %v2984_v18 = vadd.f32 %v5763_v63, %v2935_v8 }
 0x37a   : > { %v5765_v56 = vpop.f32.mrf.mxu0  ;;  %v5793_v40 = vpop.f32.mrf.mxu1 }
 0x37b   : > { %v3033_v12 = vadd.f32 %v5791_v35, %v2984_v18  ;;  %v5766_v13 = vadd.f32 %v5765_v56, %v5764_v0  ;;  %v5794_v48 = vadd.f32 %v5793_v40, %v5792_v43 }
 0x37c   : > { %v5767_v32 = vpop.f32.mrf.mxu0  ;;  %v5795_v58 = vpop.f32.mrf.mxu1 }
 0x37d   : > { %3045 = vst [vmem:[%s7469_s20 + $0x28] sm:$0xff] %v3033_v12  ;;  %v2989_v50 = vadd.f32 %v5766_v13, %v2940_v26 }
 0x37e   : > { %v5768_v9 = vpop.f32.mrf.mxu0  ;;  %v5796_v8 = vpop.f32.mrf.mxu1 }
 0x37f   : > { %v3038_v7 = vadd.f32 %v5794_v48, %v2989_v50  ;;  %v5769_v63 = vadd.f32 %v5768_v9, %v5767_v32  ;;  %v5797_v4 = vadd.f32 %v5796_v8, %v5795_v58 }
 0x381   : > { %3046 = vst [vmem:[%s7469_s20 + $0x30] sm:$0xff] %v3038_v7  ;;  %v2992_v2 = vadd.f32 %v5769_v63, %v2943_v27  ;;  %v7890_v27 = vpop.permute.xlu0 %3068 }
 0x383   : > { %v3041_v34 = vadd.f32 %v5797_v4, %v2992_v2  ;;  %v6213_v2 = vld [vmem:[%s8431_s3 + $0x138] sm:$0xff]   ;;  %v7895_v4 = vpop.permute.xlu1 %3073 }
 0x385   : > { %3047 = vst [vmem:[%s7469_s20 + $0x38] sm:$0xff] %v3041_v34 }
 0x3b0   : > { %v3130_v24 = vpop.f32.mrf.mxu0  ;;  %v3183_v59 = vpop.f32.mrf.mxu1 }
 0x3b1   : > { %v3131_v41 = vadd.f32 %v3130_v24, %v7878_v57  ;;  %v3184_v35 = vadd.f32 %v3183_v59, %v7878_v57 }
 0x3b2   : > { %v3132_v42 = vpop.f32.mrf.mxu0  ;;  %v3185_v5 = vpop.f32.mrf.mxu1 }
 0x3b3   : > { %v3133_v25 = vadd.f32 %v3132_v42, %v7878_v57  ;;  %v3186_v0 = vadd.f32 %v3185_v5, %v7878_v57  ;;  %v3308_v50 = vmax.f32 %v3131_v41, 0.0  ;;  %v3310_v7 = vmax.f32 %v3184_v35, 0.0  ;;  %v6214_v42 = vld [vmem:[%s8431_s3 + $0x1b8] sm:$0xff]   ;;  %v6215_v5 = vld [vmem:[%s8431_s3 + $0x170] sm:$0xff]  }
 0x3b4   : > { %v3134_v49 = vpop.f32.mrf.mxu0  ;;  %v3187_v14 = vpop.f32.mrf.mxu1  ;;  %v6216_v41 = vld [vmem:[%s8431_s3 + $0x1f0] sm:$0xff]  }
 0x3b5   : > { %v3135_v33 = vadd.f32 %v3134_v49, %v7880_v17  ;;  %v3188_v3 = vadd.f32 %v3187_v14, %v7880_v17  ;;  %v3309_v13 = vmax.f32 %v3133_v25, 0.0  ;;  %v3311_v48 = vmax.f32 %v3186_v0, 0.0 }
 0x3b6   : > { %v3136_v18 = vpop.f32.mrf.mxu0  ;;  %v3189_v56 = vpop.f32.mrf.mxu1 }
 0x3b7   : > { %v3137_v43 = vadd.f32 %v3136_v18, %v7880_v17  ;;  %v3316_v26 = vmax.f32 %v3135_v33, 0.0  ;;  %v3190_v1 = vadd.f32 %v3189_v56, %v7880_v17  ;;  %v3318_v40 = vmax.f32 %v3188_v3, 0.0 }
 0x3b8   : > { %v3140_v12 = vpop.f32.mrf.mxu0  ;;  %v3193_v16 = vpop.f32.mrf.mxu1 }
 0x3b9   : > { %v3317_v32 = vmax.f32 %v3137_v43, 0.0  ;;  %v3319_v58 = vmax.f32 %v3190_v1, 0.0  ;;  %v3340_v34 = vpack.c.bf16 %v3316_v26, %v3308_v50  ;;  %v3342_v49 = vpack.c.bf16 %v3318_v40, %v3310_v7  ;;  %v6217_v1 = vld [vmem:[%s8431_s3 + $0x130] sm:$0xff]  }
 0x3ba   : > { %v3142_v9 = vpop.f32.mrf.mxu0  ;;  %v3195_v8 = vpop.f32.mrf.mxu1  ;;  %v3141_v0 = vadd.f32 %v3140_v12, %v7890_v27  ;;  %v3194_v43 = vadd.f32 %v3193_v16, %v7890_v27  ;;  %v6218_v40 = vld [vmem:[%s8431_s3 + $0x1b0] sm:$0xff]  }
 0x3bb   : > { %v3341_v63 = vpack.c.bf16 %v3317_v32, %v3309_v13  ;;  %v3343_v24 = vpack.c.bf16 %v3319_v58, %v3311_v48  ;;  %v3143_v25 = vadd.f32 %v3142_v9, %v7890_v27  ;;  %v3196_v3 = vadd.f32 %v3195_v8, %v7890_v27  ;;  %v6219_v32 = vld [vmem:[%s8431_s3 + $0x168] sm:$0xff]  }
 0x3bc   : > { %v3144_v59 = vpop.f32.mrf.mxu0  ;;  %v3197_v14 = vpop.f32.mrf.mxu1  ;;  %v6220_v58 = vld [vmem:[%s8431_s3 + $0x1e8] sm:$0xff]   ;;  %v3324_v9 = vmax.f32 %v3141_v0, 0.0  ;;  %v3326_v8 = vmax.f32 %v3194_v43, 0.0  ;;  %v6228_v0 = vld [vmem:[%s8431_s3 + $0x1d8] sm:$0xff]   ;;  %v6232_v43 = vld [vmem:[%s8431_s3 + $0x1d0] sm:$0xff]  }
 0x3bd   : > { %v3145_v33 = vadd.f32 %v3144_v59, %v7895_v4  ;;  %3907 = vmatprep.mubr.bf16.mxu0 %v3341_v63  ;;  %v3198_v18 = vadd.f32 %v3197_v14, %v7895_v4  ;;  %3956 = vmatprep.mubr.bf16.mxu1 %v3343_v24  ;;  %v3325_v16 = vmax.f32 %v3143_v25, 0.0  ;;  %v3327_v7 = vmax.f32 %v3196_v3, 0.0  ;;  %v6224_v25 = vld [vmem:[%s8431_s3 + $0x1e0] sm:$0xff]   ;;  %v6229_v3 = vld [vmem:[%s8431_s3 + $0x118] sm:$0xff]  }
 0x3be   : > { %v3146_v35 = vpop.f32.mrf.mxu0  ;;  %3908 = vmatmul.mubr.bf16.vlgmr.msra.gmra.mxu0 %v3340_v34  ;;  %v3199_v26 = vpop.f32.mrf.mxu1  ;;  %3957 = vmatmul.mubr.bf16.vlgmr.msra.gmra.mxu1 %v3342_v49  ;;  %v6221_v34 = vld [vmem:[%s8431_s3 + $0x128] sm:$0xff]   ;;  %v6226_v14 = vld [vmem:[%s8431_s3 + $0x1a0] sm:$0xff]  }
 0x3bf   : > { %v3147_v56 = vadd.f32 %v3146_v35, %v7895_v4  ;;  %5855 = vmatpush3.bf16.msra.mxu0 %v6213_v2  ;;  %v3332_v13 = vmax.f32 %v3145_v33, 0.0  ;;  %v3200_v12 = vadd.f32 %v3199_v26, %v7895_v4  ;;  %5883 = vmatpush3.bf16.msra.mxu1 %v6214_v42  ;;  %v3334_v50 = vmax.f32 %v3198_v18, 0.0  ;;  %v6222_v42 = vld [vmem:[%s8431_s3 + $0x1a8] sm:$0xff]   ;;  %v6225_v33 = vld [vmem:[%s8431_s3 + $0x120] sm:$0xff]   ;;  %v6230_v18 = vld [vmem:[%s8431_s3 + $0x198] sm:$0xff]  }
 0x3c0   : > { %5856 = vmatprep.subr.bf16.mxu0 %v6215_v5  ;;  %5884 = vmatprep.subr.bf16.mxu1 %v6216_v41  ;;  %v6223_v5 = vld [vmem:[%s8431_s3 + $0x160] sm:$0xff]   ;;  %v6227_v41 = vld [vmem:[%s8431_s3 + $0x158] sm:$0xff]   ;;  %v6231_v35 = vld [vmem:[%s8431_s3 + $0x150] sm:$0xff]  }
 0x3c1   : > { %v3333_v48 = vmax.f32 %v3147_v56, 0.0  ;;  %v3335_v63 = vmax.f32 %v3200_v12, 0.0  ;;  %v3348_v24 = vpack.c.bf16 %v3332_v13, %v3324_v9  ;;  %v3350_v49 = vpack.c.bf16 %v3334_v50, %v3326_v8  ;;  %v6233_v56 = vld [vmem:[%s8431_s3 + $0x110] sm:$0xff]   ;;  %v6236_v13 = vld [vmem:[%s8431_s3 + $0x1c8] sm:$0xff]   ;;  %v6241_v50 = vld [vmem:[%s8431_s3 + $0x100] sm:$0xff]  }
 0x3c2   : > { %v6234_v26 = vld [vmem:[%s8431_s3 + $0x190] sm:$0xff]   ;;  %v6237_v12 = vld [vmem:[%s8431_s3 + $0x108] sm:$0xff]  }
 0x3c3   : > { %v3349_v2 = vpack.c.bf16 %v3333_v48, %v3325_v16  ;;  %5857 = vmatpush3.bf16.msra.mxu0 %v6217_v1  ;;  %v3351_v59 = vpack.c.bf16 %v3335_v63, %v3327_v7  ;;  %5885 = vmatpush3.bf16.msra.mxu1 %v6218_v40  ;;  %v6235_v1 = vld [vmem:[%s8431_s3 + $0x148] sm:$0xff]   ;;  %v6240_v16 = vld [vmem:[%s8431_s3 + $0x1c0] sm:$0xff]  }
 0x3c4   : > { %5858 = vmatprep.subr.bf16.mxu0 %v6219_v32  ;;  %5886 = vmatprep.subr.bf16.mxu1 %v6220_v58  ;;  %v6238_v40 = vld [vmem:[%s8431_s3 + $0x188] sm:$0xff]   ;;  %v6239_v32 = vld [vmem:[%s8431_s3 + $0x140] sm:$0xff]  }
 0x3c5   : > { %3915 = vmatprep.mubr.bf16.mxu0 %v3349_v2  ;;  %3964 = vmatprep.mubr.bf16.mxu1 %v3351_v59  ;;  %v6242_v48 = vld [vmem:[%s8431_s3 + $0x180] sm:$0xff]  }
 0x3c6   : > { %3916 = vmatmul.mubr.bf16.gmra.mxu0 %v3348_v24  ;;  %3965 = vmatmul.mubr.bf16.gmra.mxu1 %v3350_v49 }
 0x3c7   : > { %5859 = vmatpush3.bf16.msra.mxu0 %v6221_v34  ;;  %5887 = vmatpush3.bf16.msra.mxu1 %v6222_v42 }
 0x3c8   : > { %5860 = vmatprep.subr.bf16.mxu0 %v6223_v5  ;;  %5888 = vmatprep.subr.bf16.mxu1 %v6224_v25 }
 0x3cb   : > { %5861 = vmatpush3.bf16.msra.mxu0 %v6225_v33  ;;  %5889 = vmatpush3.bf16.msra.mxu1 %v6226_v14 }
 0x3cc   : > { %5862 = vmatprep.subr.bf16.mxu0 %v6227_v41  ;;  %5890 = vmatprep.subr.bf16.mxu1 %v6228_v0 }
 0x3cf   : > { %5863 = vmatpush3.bf16.msra.mxu0 %v6229_v3  ;;  %5891 = vmatpush3.bf16.msra.mxu1 %v6230_v18 }
 0x3d0   : > { %5864 = vmatprep.subr.bf16.mxu0 %v6231_v35  ;;  %5892 = vmatprep.subr.bf16.mxu1 %v6232_v43 }
 0x3d3   : > { %5865 = vmatpush3.bf16.msra.mxu0 %v6233_v56  ;;  %5893 = vmatpush3.bf16.msra.mxu1 %v6234_v26 }
 0x3d4   : > { %5866 = vmatprep.subr.bf16.mxu0 %v6235_v1  ;;  %5894 = vmatprep.subr.bf16.mxu1 %v6236_v13 }
 0x3d7   : > { %5867 = vmatpush3.bf16.msra.mxu0 %v6237_v12  ;;  %5895 = vmatpush3.bf16.msra.mxu1 %v6238_v40 }
 0x3d8   : > { %5868 = vmatprep.subr.bf16.mxu0 %v6239_v32  ;;  %5896 = vmatprep.subr.bf16.mxu1 %v6240_v16 }
 0x3db   : > { %5869 = vmatpush3.bf16.msra.mxu0 %v6241_v50  ;;  %5897 = vmatpush3.bf16.msra.mxu1 %v6242_v48 }
 0x3dc   : > { %4123 = vmatprep.subr.bf16.mxu0 %v8825_v51  ;;  %4176 = vmatprep.subr.bf16.mxu1 %v8826_v23 }
 0x3f0   : > { %v3236_v58 = vpop.f32.mrf.mxu0  ;;  %v3289_v9 = vpop.f32.mrf.mxu1 }
 0x3f1   : > { %v3237_v59 = vadd.f32 %v3236_v58, %v7878_v57  ;;  %v3290_v51 = vadd.f32 %v3289_v9, %v7878_v57 }
 0x3f2   : > { %v3238_v7 = vpop.f32.mrf.mxu0  ;;  %v3291_v63 = vpop.f32.mrf.mxu1 }
 0x3f3   : > { %v3239_v2 = vadd.f32 %v3238_v7, %v7878_v57  ;;  %v3292_v42 = vadd.f32 %v3291_v63, %v7878_v57  ;;  %v3312_v43 = vmax.f32 %v3237_v59, 0.0  ;;  %v3314_v13 = vmax.f32 %v3290_v51, 0.0 }
 0x3f4   : > { %v3240_v8 = vpop.f32.mrf.mxu0  ;;  %v3293_v24 = vpop.f32.mrf.mxu1 }
 0x3f5   : > { %v3241_v34 = vadd.f32 %v3240_v8, %v7880_v17  ;;  %v3294_v5 = vadd.f32 %v3293_v24, %v7880_v17  ;;  %v3313_v0 = vmax.f32 %v3239_v2, 0.0  ;;  %v3315_v56 = vmax.f32 %v3292_v42, 0.0 }
 0x3f6   : > { %v3242_v49 = vpop.f32.mrf.mxu0  ;;  %v3295_v25 = vpop.f32.mrf.mxu1 }
 0x3f7   : > { %v3243_v23 = vadd.f32 %v3242_v49, %v7880_v17  ;;  %v3320_v33 = vmax.f32 %v3241_v34, 0.0  ;;  %v3296_v14 = vadd.f32 %v3295_v25, %v7880_v17  ;;  %v3322_v3 = vmax.f32 %v3294_v5, 0.0 }
 0x3f8   : > { %v3246_v41 = vpop.f32.mrf.mxu0  ;;  %v3299_v35 = vpop.f32.mrf.mxu1 }
 0x3f9   : > { %v3321_v18 = vmax.f32 %v3243_v23, 0.0  ;;  %v3323_v26 = vmax.f32 %v3296_v14, 0.0  ;;  %v3344_v32 = vpack.c.bf16 %v3320_v33, %v3312_v43  ;;  %v3346_v50 = vpack.c.bf16 %v3322_v3, %v3314_v13  ;;  %v8949_v3 = vld [vmem:[#allocation30_spill] sm:$0xff]  ;;  %v8952_v43 = vld [vmem:[#allocation33_spill] sm:$0xff] }
 0x3fa   : > { %v3248_v1 = vpop.f32.mrf.mxu0  ;;  %v3301_v40 = vpop.f32.mrf.mxu1  ;;  %v3247_v9 = vadd.f32 %v3246_v41, %v7890_v27  ;;  %v3300_v2 = vadd.f32 %v3299_v35, %v7890_v27  ;;  %v8951_v35 = vld [vmem:[#allocation32_spill] sm:$0xff]  ;;  %v8080_v13 = vld [vmem:[%s8429_s1 + $0x60] ss:$8 sps:$4 sm:$0xff]  }
 0x3fb   : > { %v3345_v12 = vpack.c.bf16 %v3321_v18, %v3313_v0  ;;  %v3347_v57 = vpack.c.bf16 %v3323_v26, %v3315_v56  ;;  %v3249_v48 = vadd.f32 %v3248_v1, %v7890_v27  ;;  %v3302_v7 = vadd.f32 %v3301_v40, %v7890_v27  ;;  %v8948_v0 = vld [vmem:[#allocation29_spill] sm:$0xff]  ;;  %v8950_v18 = vld [vmem:[#allocation31_spill] sm:$0xff]  ;;  %v8953_v56 = vld [vmem:[#allocation34_spill] sm:$0xff] }
 0x3fc   : > { %v3250_v16 = vpop.f32.mrf.mxu0  ;;  %v3303_v58 = vpop.f32.mrf.mxu1  ;;  %v3328_v23 = vmax.f32 %v3247_v9, 0.0  ;;  %v3330_v33 = vmax.f32 %v3300_v2, 0.0  ;;  %v8954_v26 = vld [vmem:[#allocation35_spill] sm:$0xff]  ;;  %v8955_v1 = vld [vmem:[#allocation36_spill] sm:$0xff]  ;;  %v8957_v40 = vld [vmem:[#allocation38_spill] sm:$0xff] }
 0x3fd   : > { %v3251_v17 = vadd.f32 %v3250_v16, %v7895_v4  ;;  %4005 = vmatprep.mubr.bf16.mxu0 %v3345_v12  ;;  %v3304_v63 = vadd.f32 %v3303_v58, %v7895_v4  ;;  %4054 = vmatprep.mubr.bf16.mxu1 %v3347_v57  ;;  %v3329_v5 = vmax.f32 %v3249_v48, 0.0  ;;  %v3331_v27 = vmax.f32 %v3302_v7, 0.0  ;;  %v8956_v12 = vld [vmem:[#allocation37_spill] sm:$0xff]  ;;  %v8959_v57 = vld [vmem:[#allocation40_spill] sm:$0xff]  ;;  %v8961_v48 = vld [vmem:[#allocation42_spill] sm:$0xff] }
 0x3fe   : > { %v3252_v8 = vpop.f32.mrf.mxu0  ;;  %4006 = vmatmul.mubr.bf16.vlgmr.msra.gmra.mxu0 %v3344_v32  ;;  %v3305_v24 = vpop.f32.mrf.mxu1  ;;  %4055 = vmatmul.mubr.bf16.vlgmr.msra.gmra.mxu1 %v3346_v50  ;;  %v8958_v32 = vld [vmem:[#allocation39_spill] sm:$0xff]  ;;  %v8089_v16 = vld [vmem:[%s8429_s1 + $0x74] ss:$8 sps:$4 sm:$0xff]   ;;  %v8102_v9 = vld [vmem:[%s8429_s1 + $0x70] ss:$8 sps:$4 sm:$0xff]  }
 0x3ff   : > { %v3253_v34 = vadd.f32 %v3252_v8, %v7895_v4  ;;  %4124 = vmatpush1.bf16.msra.mxu0 %v6381_v6  ;;  %v3336_v59 = vmax.f32 %v3251_v17, 0.0  ;;  %v3306_v42 = vadd.f32 %v3305_v24, %v7895_v4  ;;  %4177 = vmatpush1.bf16.msra.mxu1 %v6387_v10  ;;  %v3338_v49 = vmax.f32 %v3304_v63, 0.0  ;;  %v8947_v4 = vld [vmem:[#allocation28_spill] sm:$0xff]  ;;  %v8960_v50 = vld [vmem:[#allocation41_spill] sm:$0xff]  ;;  %v8962_v17 = vld [vmem:[#allocation43_spill] sm:$0xff] }
 0x400   : > { %4125 = vmatprep.subr.bf16.mxu0 %v6389_v11  ;;  %4178 = vmatprep.subr.bf16.mxu1 %v6395_v15  ;;  %v8021_v11 = vld [vmem:[%s8429_s1 + $0x64] ss:$8 sps:$4 sm:$0xff]   ;;  %v8923_v15 = vld [vmem:[#allocation4_spill] sm:$0xff]  ;;  %v8964_v7 = vld [vmem:[#allocation45_spill] sm:$0xff] }
 0x401   : > { %v3337_v51 = vmax.f32 %v3253_v34, 0.0  ;;  %v3339_v25 = vmax.f32 %v3306_v42, 0.0  ;;  %v3352_v6 = vpack.c.bf16 %v3336_v59, %v3328_v23  ;;  %v3354_v10 = vpack.c.bf16 %v3338_v49, %v3330_v33  ;;  %v8963_v58 = vld [vmem:[#allocation44_spill] sm:$0xff]  ;;  %v8965_v63 = vld [vmem:[#allocation46_spill] sm:$0xff]  ;;  %v8966_v8 = vld [vmem:[#allocation47_spill] sm:$0xff] }
 0x402   : > { %v8967_v2 = vld [vmem:[#allocation48_spill] sm:$0xff]  ;;  %v8968_v34 = vld [vmem:[#allocation49_spill] sm:$0xff]  ;;  %v8969_v24 = vld [vmem:[#allocation50_spill] sm:$0xff] }
 0x403   : > { %v3353_v14 = vpack.c.bf16 %v3337_v51, %v3329_v5  ;;  %4126 = vmatpush1.bf16.msra.mxu0 %v6402_v19  ;;  %v3355_v41 = vpack.c.bf16 %v3339_v25, %v3331_v27  ;;  %4179 = vmatpush1.bf16.msra.mxu1 %v6406_v20  ;;  %v8924_v19 = vld [vmem:[#allocation5_spill] sm:$0xff]  ;;  %v8925_v20 = vld [vmem:[#allocation6_spill] sm:$0xff]  ;;  %v8970_v59 = vld [vmem:[#allocation51_spill] sm:$0xff] }
 0x404   : > { %4127 = vmatprep.subr.bf16.mxu0 %v6408_v21  ;;  %4180 = vmatprep.subr.bf16.mxu1 %v6411_v22  ;;  %v8926_v21 = vld [vmem:[#allocation7_spill] sm:$0xff]  ;;  %v8927_v22 = vld [vmem:[#allocation8_spill] sm:$0xff]  ;;  %v8972_v5 = vld [vmem:[#allocation53_spill] sm:$0xff] }
 0x405   : > { %4013 = vmatprep.mubr.bf16.mxu0 %v3353_v14  ;;  %4062 = vmatprep.mubr.bf16.mxu1 %v3355_v41  ;;  %v8971_v42 = vld [vmem:[#allocation52_spill] sm:$0xff]  ;;  %v8973_v49 = vld [vmem:[#allocation54_spill] sm:$0xff]  ;;  %v8974_v51 = vld [vmem:[#allocation55_spill] sm:$0xff] }
 0x406   : > { %4014 = vmatmul.mubr.bf16.gmra.mxu0 %v3352_v6  ;;  %4063 = vmatmul.mubr.bf16.gmra.mxu1 %v3354_v10  ;;  %v8975_v23 = vld [vmem:[#allocation56_spill] sm:$0xff]  ;;  %v8976_v27 = vld [vmem:[#allocation57_spill] sm:$0xff]  ;;  %v8977_v25 = vld [vmem:[#allocation58_spill] sm:$0xff] }
 0x407   : > { %4128 = vmatpush1.bf16.msra.mxu0 %v6418_v28  ;;  %4181 = vmatpush1.bf16.msra.mxu1 %v6422_v29  ;;  %v8928_v28 = vld [vmem:[#allocation9_spill] sm:$0xff]  ;;  %v8929_v29 = vld [vmem:[#allocation10_spill] sm:$0xff]  ;;  %v8978_v33 = vld [vmem:[#allocation59_spill] sm:$0xff] }
 0x408   : > { %4129 = vmatprep.subr.bf16.mxu0 %v6424_v30  ;;  %4182 = vmatprep.subr.bf16.mxu1 %v6427_v31  ;;  %v8930_v30 = vld [vmem:[#allocation11_spill] sm:$0xff]  ;;  %v8931_v31 = vld [vmem:[#allocation12_spill] sm:$0xff]  ;;  %v8980_v6 = vld [vmem:[#allocation61_spill] sm:$0xff] }
 0x409   : > { %4155 = vmatprep.mubr.bf16.mxu0 %v8021_v11  ;;  %4208 = vmatprep.mubr.bf16.mxu1 %v8021_v11  ;;  %v8979_v14 = vld [vmem:[#allocation60_spill] sm:$0xff]  ;;  %v8981_v41 = vld [vmem:[#allocation62_spill] sm:$0xff]  ;;  %v8982_v10 = vld [vmem:[#allocation63_spill] sm:$0xff] }
 0x40b   : > { %4130 = vmatpush1.bf16.msra.mxu0 %v6434_v36  ;;  %4183 = vmatpush1.bf16.msra.mxu1 %v6438_v37  ;;  %v8932_v36 = vld [vmem:[#allocation13_spill] sm:$0xff]  ;;  %v8933_v37 = vld [vmem:[#allocation14_spill] sm:$0xff] }
 0x40c   : > { %4131 = vmatprep.subr.bf16.mxu0 %v6440_v38  ;;  %4184 = vmatprep.subr.bf16.mxu1 %v6443_v39  ;;  %v8934_v38 = vld [vmem:[#allocation15_spill] sm:$0xff]  ;;  %v8935_v39 = vld [vmem:[#allocation16_spill] sm:$0xff] }
 0x40f   : > { %4132 = vmatpush1.bf16.msra.mxu0 %v6450_v44  ;;  %4185 = vmatpush1.bf16.msra.mxu1 %v6454_v45  ;;  %v8936_v44 = vld [vmem:[#allocation17_spill] sm:$0xff]  ;;  %v8937_v45 = vld [vmem:[#allocation18_spill] sm:$0xff] }
 0x410   : > { %4133 = vmatprep.subr.bf16.mxu0 %v6456_v46  ;;  %4186 = vmatprep.subr.bf16.mxu1 %v6459_v47  ;;  %v8938_v46 = vld [vmem:[#allocation19_spill] sm:$0xff]  ;;  %v8939_v47 = vld [vmem:[#allocation20_spill] sm:$0xff] }
 0x413   : > { %4134 = vmatpush1.bf16.msra.mxu0 %v6466_v52  ;;  %4187 = vmatpush1.bf16.msra.mxu1 %v6470_v53  ;;  %v8940_v52 = vld [vmem:[#allocation21_spill] sm:$0xff]  ;;  %v8941_v53 = vld [vmem:[#allocation22_spill] sm:$0xff] }
 0x414   : > { %4135 = vmatprep.subr.bf16.mxu0 %v6472_v54  ;;  %4188 = vmatprep.subr.bf16.mxu1 %v6475_v55  ;;  %v8942_v54 = vld [vmem:[#allocation23_spill] sm:$0xff]  ;;  %v8943_v55 = vld [vmem:[#allocation24_spill] sm:$0xff] }
 0x417   : > { %4136 = vmatpush1.bf16.msra.mxu0 %v6482_v60  ;;  %4189 = vmatpush1.bf16.msra.mxu1 %v6486_v61  ;;  %v8944_v60 = vld [vmem:[#allocation25_spill] sm:$0xff]  ;;  %v8945_v61 = vld [vmem:[#allocation26_spill] sm:$0xff] }
 0x418   : > { %4137 = vmatprep.subr.bf16.mxu0 %v6488_v62  ;;  %4190 = vmatprep.subr.bf16.mxu1 %v8923_v15  ;;  %v8946_v62 = vld [vmem:[#allocation27_spill] sm:$0xff]  ;;  %v8984_v15 = vld [vmem:[#allocation65_spill] sm:$0xff] }
 0x41b   : > { %4138 = vmatpush1.bf16.msra.mxu0 %v8924_v19  ;;  %4191 = vmatpush1.bf16.msra.mxu1 %v8925_v20  ;;  %v8985_v19 = vld [vmem:[#allocation66_spill] sm:$0xff]  ;;  %v8986_v20 = vld [vmem:[#allocation67_spill] sm:$0xff] }
 0x41c   : > { %4139 = vmatprep.subr.bf16.mxu0 %v8926_v21  ;;  %4192 = vmatprep.subr.bf16.mxu1 %v8927_v22  ;;  %v8987_v21 = vld [vmem:[#allocation68_spill] sm:$0xff]  ;;  %v8988_v22 = vld [vmem:[#allocation69_spill] sm:$0xff] }
 0x41f   : > { %4140 = vmatpush2.bf16.msra.mxu0 %v8928_v28  ;;  %4193 = vmatpush2.bf16.msra.mxu1 %v8929_v29  ;;  %v8989_v28 = vld [vmem:[#allocation70_spill] sm:$0xff]  ;;  %v8990_v29 = vld [vmem:[#allocation71_spill] sm:$0xff] }
 0x420   : > { %4141 = vmatprep.subr.bf16.mxu0 %v8930_v30  ;;  %4194 = vmatprep.subr.bf16.mxu1 %v8931_v31  ;;  %v8991_v30 = vld [vmem:[#allocation72_spill] sm:$0xff]  ;;  %v8992_v31 = vld [vmem:[#allocation73_spill] sm:$0xff] }
 0x423   : > { %4142 = vmatpush2.bf16.msra.mxu0 %v8932_v36  ;;  %4195 = vmatpush2.bf16.msra.mxu1 %v8933_v37  ;;  %v8993_v36 = vld [vmem:[#allocation74_spill] sm:$0xff]  ;;  %v8994_v37 = vld [vmem:[#allocation75_spill] sm:$0xff] }
 0x424   : > { %4143 = vmatprep.subr.bf16.mxu0 %v8934_v38  ;;  %4196 = vmatprep.subr.bf16.mxu1 %v8935_v39  ;;  %v8995_v38 = vld [vmem:[#allocation76_spill] sm:$0xff]  ;;  %v8996_v39 = vld [vmem:[#allocation77_spill] sm:$0xff] }
 0x427   : > { %4144 = vmatpush2.bf16.msra.mxu0 %v8936_v44  ;;  %4197 = vmatpush2.bf16.msra.mxu1 %v8937_v45  ;;  %v8997_v44 = vld [vmem:[#allocation78_spill] sm:$0xff]  ;;  %v8998_v45 = vld [vmem:[#allocation79_spill] sm:$0xff] }
 0x428   : > { %4145 = vmatprep.subr.bf16.mxu0 %v8938_v46  ;;  %4198 = vmatprep.subr.bf16.mxu1 %v8939_v47  ;;  %v8999_v46 = vld [vmem:[#allocation80_spill] sm:$0xff]  ;;  %v9000_v47 = vld [vmem:[#allocation81_spill] sm:$0xff] }
 0x42b   : > { %4146 = vmatpush2.bf16.msra.mxu0 %v8940_v52  ;;  %4199 = vmatpush2.bf16.msra.mxu1 %v8941_v53  ;;  %v9001_v52 = vld [vmem:[#allocation82_spill] sm:$0xff]  ;;  %v9002_v53 = vld [vmem:[#allocation83_spill] sm:$0xff] }
 0x42c   : > { %4147 = vmatprep.subr.bf16.mxu0 %v8942_v54  ;;  %4200 = vmatprep.subr.bf16.mxu1 %v8943_v55  ;;  %v9003_v54 = vld [vmem:[#allocation84_spill] sm:$0xff]  ;;  %v9004_v55 = vld [vmem:[#allocation85_spill] sm:$0xff] }
 0x42f   : > { %4148 = vmatpush2.bf16.msra.mxu0 %v8944_v60  ;;  %4201 = vmatpush2.bf16.msra.mxu1 %v8945_v61  ;;  %v9005_v60 = vld [vmem:[#allocation86_spill] sm:$0xff]  ;;  %v9006_v61 = vld [vmem:[#allocation87_spill] sm:$0xff] }
 0x430   : > { %4149 = vmatprep.subr.bf16.mxu0 %v8946_v62  ;;  %4202 = vmatprep.subr.bf16.mxu1 %v8947_v4  ;;  %v9007_v62 = vld [vmem:[#allocation88_spill] sm:$0xff]  ;;  %v9008_v4 = vld [vmem:[#allocation89_spill] sm:$0xff] }
 0x433   : > { %4150 = vmatpush2.bf16.msra.mxu0 %v8948_v0  ;;  %4203 = vmatpush2.bf16.msra.mxu1 %v8949_v3  ;;  %v9009_v0 = vld [vmem:[#allocation90_spill] sm:$0xff]  ;;  %v9010_v3 = vld [vmem:[#allocation91_spill] sm:$0xff] }
 0x434   : > { %4151 = vmatprep.subr.bf16.mxu0 %v8950_v18  ;;  %4204 = vmatprep.subr.bf16.mxu1 %v8951_v35  ;;  %v9011_v18 = vld [vmem:[#allocation92_spill] sm:$0xff]  ;;  %v9012_v35 = vld [vmem:[#allocation93_spill] sm:$0xff] }
 0x437   : > { %4152 = vmatpush2.bf16.msra.mxu0 %v8952_v43  ;;  %4205 = vmatpush2.bf16.msra.mxu1 %v8953_v56  ;;  %v9013_v43 = vld [vmem:[#allocation94_spill] sm:$0xff]  ;;  %v9014_v56 = vld [vmem:[#allocation95_spill] sm:$0xff] }
 0x438   : > { %4153 = vmatprep.subr.bf16.mxu0 %v8954_v26  ;;  %4206 = vmatprep.subr.bf16.mxu1 %v8955_v1  ;;  %v9015_v26 = vld [vmem:[#allocation96_spill] sm:$0xff]  ;;  %v9016_v1 = vld [vmem:[#allocation97_spill] sm:$0xff] }
 0x43b   : > { %4154 = vmatpush2.bf16.msra.mxu0 %v8956_v12  ;;  %4207 = vmatpush2.bf16.msra.mxu1 %v8957_v40  ;;  %v9017_v12 = vld [vmem:[#allocation98_spill] sm:$0xff]  ;;  %v9018_v40 = vld [vmem:[#allocation99_spill] sm:$0xff] }
 0x43c   : > { %4229 = vmatprep.subr.bf16.mxu0 %v8958_v32  ;;  %4282 = vmatprep.subr.bf16.mxu1 %v8959_v57  ;;  %v6249_v32 = vld [vmem:[%s8431_s3 + $0x78] sm:$0xff]   ;;  %v9019_v57 = vld [vmem:[#allocation100_spill] sm:$0xff] }
 0x43e   : > { %4156 = vmatmul.mubr.bf16.vlgmr.msra.gmra.mxu0 %v8080_v13  ;;  %4209 = vmatmul.mubr.bf16.vlgmr.msra.gmra.mxu1 %v8080_v13 }
 0x43f   : > { %4230 = vmatpush1.bf16.msra.mxu0 %v8960_v50  ;;  %4283 = vmatpush1.bf16.msra.mxu1 %v8961_v48  ;;  %v6250_v50 = vld [vmem:[%s8431_s3 + $0xf8] sm:$0xff]  }
 0x440   : > { %4231 = vmatprep.subr.bf16.mxu0 %v8962_v17  ;;  %4284 = vmatprep.subr.bf16.mxu1 %v8963_v58  ;;  %v9020_v48 = vld [vmem:[#allocation101_spill] sm:$0xff]  ;;  %v9021_v17 = vld [vmem:[#allocation102_spill] sm:$0xff] }
 0x441   : > { %4165 = vmatprep.mubr.bf16.mxu0 %v8089_v16  ;;  %4218 = vmatprep.mubr.bf16.mxu1 %v8089_v16  ;;  %v6251_v58 = vld [vmem:[%s8431_s3 + $0x38] sm:$0xff]  }
 0x443   : > { %4232 = vmatpush1.bf16.msra.mxu0 %v8964_v7  ;;  %4285 = vmatpush1.bf16.msra.mxu1 %v8965_v63  ;;  %v6252_v7 = vld [vmem:[%s8431_s3 + $0xb8] sm:$0xff]   ;;  %v6253_v63 = vld [vmem:[%s8431_s3 + $0x70] sm:$0xff]  }
 0x444   : > { %4233 = vmatprep.subr.bf16.mxu0 %v8966_v8  ;;  %4286 = vmatprep.subr.bf16.mxu1 %v8967_v2  ;;  %v6254_v8 = vld [vmem:[%s8431_s3 + $0xf0] sm:$0xff]  }
 0x445   : > { %v6255_v2 = vld [vmem:[%s8431_s3 + $0x30] sm:$0xff]  }
 0x446   : > { %4166 = vmatmul.mubr.bf16.gmra.mxu0 %v8102_v9  ;;  %4219 = vmatmul.mubr.bf16.gmra.mxu1 %v8102_v9 }
 0x447   : > { %4234 = vmatpush1.bf16.msra.mxu0 %v8968_v34  ;;  %4287 = vmatpush1.bf16.msra.mxu1 %v8969_v24  ;;  %v6256_v34 = vld [vmem:[%s8431_s3 + $0xb0] sm:$0xff]   ;;  %v6257_v24 = vld [vmem:[%s8431_s3 + $0x68] sm:$0xff]  }
 0x448   : > { %4235 = vmatprep.subr.bf16.mxu0 %v8970_v59  ;;  %4288 = vmatprep.subr.bf16.mxu1 %v8971_v42  ;;  %v6260_v59 = vld [vmem:[%s8431_s3 + $0xa8] sm:$0xff]   ;;  %v6261_v42 = vld [vmem:[%s8431_s3 + $0x60] sm:$0xff]  }
 0x449   : > { %4261 = vmatprep.mubr.bf16.mxu0 %v8021_v11  ;;  %4314 = vmatprep.mubr.bf16.mxu1 %v8021_v11  ;;  %v8983_v11 = vld [vmem:[#allocation64_spill] sm:$0xff] }
 0x44b   : > { %4236 = vmatpush1.bf16.msra.mxu0 %v8972_v5  ;;  %4289 = vmatpush1.bf16.msra.mxu1 %v8973_v49  ;;  %v6262_v5 = vld [vmem:[%s8431_s3 + $0xe0] sm:$0xff]  }
 0x44c   : > { %4237 = vmatprep.subr.bf16.mxu0 %v8974_v51  ;;  %4290 = vmatprep.subr.bf16.mxu1 %v8975_v23  ;;  %v6263_v49 = vld [vmem:[%s8431_s3 + $0x20] sm:$0xff]   ;;  %v6265_v23 = vld [vmem:[%s8431_s3 + $0x58] sm:$0xff]  }
 0x44d   : > { %v6264_v51 = vld [vmem:[%s8431_s3 + $0xa0] sm:$0xff]  }
 0x44f   : > { %4238 = vmatpush1.bf16.msra.mxu0 %v8976_v27  ;;  %4291 = vmatpush1.bf16.msra.mxu1 %v8977_v25  ;;  %v6267_v27 = vld [vmem:[%s8431_s3 + $0x18] sm:$0xff]  }
 0x450   : > { %4239 = vmatprep.subr.bf16.mxu0 %v8978_v33  ;;  %4292 = vmatprep.subr.bf16.mxu1 %v8979_v14  ;;  %v6268_v25 = vld [vmem:[%s8431_s3 + $0x98] sm:$0xff]   ;;  %v6269_v33 = vld [vmem:[%s8431_s3 + $0x50] sm:$0xff]  }
 0x451   : > { %v6270_v14 = vld [vmem:[%s8431_s3 + $0xd0] sm:$0xff]  }
 0x453   : > { %4240 = vmatpush1.bf16.msra.mxu0 %v8980_v6  ;;  %4293 = vmatpush1.bf16.msra.mxu1 %v8981_v41  ;;  %v6271_v6 = vld [vmem:[%s8431_s3 + $0x10] sm:$0xff]  }
 0x454   : > { %4241 = vmatprep.subr.bf16.mxu0 %v8982_v10  ;;  %4294 = vmatprep.subr.bf16.mxu1 %v8983_v11  ;;  %v6272_v41 = vld [vmem:[%s8431_s3 + $0x90] sm:$0xff]   ;;  %v6273_v10 = vld [vmem:[%s8431_s3 + $0x48] sm:$0xff]  }
 0x455   : > { %v6274_v11 = vld [vmem:[%s8431_s3 + $0xc8] sm:$0xff]  }
 0x457   : > { %4242 = vmatpush1.bf16.msra.mxu0 %v8984_v15  ;;  %4295 = vmatpush1.bf16.msra.mxu1 %v8985_v19  ;;  %v6275_v15 = vld [vmem:[%s8431_s3 + $0x8] sm:$0xff]  }
 0x458   : > { %4243 = vmatprep.subr.bf16.mxu0 %v8986_v20  ;;  %4296 = vmatprep.subr.bf16.mxu1 %v8987_v21  ;;  %v6276_v19 = vld [vmem:[%s8431_s3 + $0x88] sm:$0xff]   ;;  %v6277_v20 = vld [vmem:[%s8431_s3 + $0x40] sm:$0xff]  }
 0x459   : > { %v6278_v21 = vld [vmem:[%s8431_s3 + $0xc0] sm:$0xff]  }
 0x45b   : > { %4244 = vmatpush1.bf16.msra.mxu0 %v8988_v22  ;;  %4297 = vmatpush1.bf16.msra.mxu1 %v8989_v28  ;;  %v6279_v22 = vld [vmem:[%s8431_s3] sm:$0xff]  }
 0x45c   : > { %4245 = vmatprep.subr.bf16.mxu0 %v8990_v29  ;;  %4298 = vmatprep.subr.bf16.mxu1 %v8991_v30  ;;  %v6280_v28 = vld [vmem:[%s8431_s3 + $0x80] sm:$0xff]   ;;  %v6281_v29 = vld [vmem:[%s8431_s3 + $0x178] sm:$0xff]  }
 0x45d   : > { %v6282_v30 = vld [vmem:[%s8431_s3 + $0x1f8] sm:$0xff]  }
 0x45f   : > { %4246 = vmatpush2.bf16.msra.mxu0 %v8992_v31  ;;  %4299 = vmatpush2.bf16.msra.mxu1 %v8993_v36 }
 0x460   : > { %4247 = vmatprep.subr.bf16.mxu0 %v8994_v37  ;;  %4300 = vmatprep.subr.bf16.mxu1 %v8995_v38 }
 0x463   : > { %4248 = vmatpush2.bf16.msra.mxu0 %v8996_v39  ;;  %4301 = vmatpush2.bf16.msra.mxu1 %v8997_v44 }
 0x464   : > { %4249 = vmatprep.subr.bf16.mxu0 %v8998_v45  ;;  %4302 = vmatprep.subr.bf16.mxu1 %v8999_v46 }
 0x467   : > { %4250 = vmatpush2.bf16.msra.mxu0 %v9000_v47  ;;  %4303 = vmatpush2.bf16.msra.mxu1 %v9001_v52 }
 0x468   : > { %4251 = vmatprep.subr.bf16.mxu0 %v9002_v53  ;;  %4304 = vmatprep.subr.bf16.mxu1 %v9003_v54 }
 0x46b   : > { %4252 = vmatpush2.bf16.msra.mxu0 %v9004_v55  ;;  %4305 = vmatpush2.bf16.msra.mxu1 %v9005_v60 }
 0x46c   : > { %4253 = vmatprep.subr.bf16.mxu0 %v9006_v61  ;;  %4306 = vmatprep.subr.bf16.mxu1 %v9007_v62  ;;  %v8277_v62 = vld [vmem:[%s8432_s4] ss:$0 sm:$0xff] }
 0x46f   : > { %4254 = vmatpush2.bf16.msra.mxu0 %v9008_v4  ;;  %4307 = vmatpush2.bf16.msra.mxu1 %v9009_v0 }
 0x470   : > { %4255 = vmatprep.subr.bf16.mxu0 %v9010_v3  ;;  %4308 = vmatprep.subr.bf16.mxu1 %v9011_v18 }
 0x473   : > { %4256 = vmatpush2.bf16.msra.mxu0 %v9012_v35  ;;  %4309 = vmatpush2.bf16.msra.mxu1 %v9013_v43 }
 0x474   : > { %4257 = vmatprep.subr.bf16.mxu0 %v9014_v56  ;;  %4310 = vmatprep.subr.bf16.mxu1 %v9015_v26 }
 0x477   : > { %4258 = vmatpush2.bf16.msra.mxu0 %v9016_v1  ;;  %4311 = vmatpush2.bf16.msra.mxu1 %v9017_v12 }
 0x478   : > { %4259 = vmatprep.subr.bf16.mxu0 %v9018_v40  ;;  %4312 = vmatprep.subr.bf16.mxu1 %v9019_v57 }
 0x47b   : > { %4260 = vmatpush2.bf16.msra.mxu0 %v9020_v48  ;;  %4313 = vmatpush2.bf16.msra.mxu1 %v9021_v17 }
 0x47c   : > { %5910 = vmatprep.subr.bf16.mxu0 %v6249_v32  ;;  %5938 = vmatprep.subr.bf16.mxu1 %v6250_v50 }
 0x47e   : > { %4262 = vmatmul.mubr.bf16.vlgmr.msra.gmra.mxu0 %v8080_v13  ;;  %4315 = vmatmul.mubr.bf16.vlgmr.msra.gmra.mxu1 %v8080_v13  ;;  %v6258_v13 = vld [vmem:[%s8431_s3 + $0xe8] sm:$0xff]   ;;  %v5814_v31 = vpop.f32.mrf.mxu0  ;;  %v5842_v36 = vpop.f32.mrf.mxu1 }
 0x47f   : > { %4271 = vmatprep.mubr.bf16.mxu0 %v8089_v16  ;;  %4324 = vmatprep.mubr.bf16.mxu1 %v8089_v16  ;;  %v6259_v16 = vld [vmem:[%s8431_s3 + $0x28] sm:$0xff]  }
 0x480   : > { %5911 = vmatpush3.bf16.msra.mxu0 %v6251_v58  ;;  %5939 = vmatpush3.bf16.msra.mxu1 %v6252_v7  ;;  %v5815_v37 = vpop.f32.mrf.mxu0  ;;  %v5843_v38 = vpop.f32.mrf.mxu1 }
 0x481   : > { %5912 = vmatprep.subr.bf16.mxu0 %v6253_v63  ;;  %5940 = vmatprep.subr.bf16.mxu1 %v6254_v8  ;;  %v5816_v60 = vadd.f32 %v5815_v37, %v5814_v31  ;;  %v5844_v43 = vadd.f32 %v5843_v38, %v5842_v36 }
 0x482   : > { %v5817_v39 = vpop.f32.mrf.mxu0  ;;  %v5845_v44 = vpop.f32.mrf.mxu1 }
 0x483   : > { %v3910_v3 = vadd.f32 %v5816_v60, %v8277_v62 }
 0x484   : > { %5913 = vmatpush3.bf16.msra.mxu0 %v6255_v2  ;;  %5941 = vmatpush3.bf16.msra.mxu1 %v6256_v34  ;;  %v5818_v45 = vpop.f32.mrf.mxu0  ;;  %v5846_v46 = vpop.f32.mrf.mxu1 }
 0x485   : > { %5914 = vmatprep.subr.bf16.mxu0 %v6257_v24  ;;  %5942 = vmatprep.subr.bf16.mxu1 %v6258_v13  ;;  %v5819_v4 = vadd.f32 %v5818_v45, %v5817_v39  ;;  %v3959_v12 = vadd.f32 %v5844_v43, %v3910_v3  ;;  %v5847_v50 = vadd.f32 %v5846_v46, %v5845_v44  ;;  %v8287_v39 = vpop.permute.xlu0 %4085  ;;  %v8289_v45 = vpop.permute.xlu1 %4090 }
 0x486   : > { %4272 = vmatmul.mubr.bf16.gmra.mxu0 %v8102_v9  ;;  %4325 = vmatmul.mubr.bf16.gmra.mxu1 %v8102_v9  ;;  %v6266_v9 = vld [vmem:[%s8431_s3 + $0xd8] sm:$0xff]   ;;  %v5820_v47 = vpop.f32.mrf.mxu0  ;;  %v5848_v52 = vpop.f32.mrf.mxu1 }
 0x487   : > { %v3913_v26 = vadd.f32 %v5819_v4, %v8277_v62 }
 0x488   : > { %5915 = vmatpush3.bf16.msra.mxu0 %v6259_v16  ;;  %5943 = vmatpush3.bf16.msra.mxu1 %v6260_v59  ;;  %v5821_v53 = vpop.f32.mrf.mxu0  ;;  %v5849_v54 = vpop.f32.mrf.mxu1 }
 0x489   : > { %5916 = vmatprep.subr.bf16.mxu0 %v6261_v42  ;;  %5944 = vmatprep.subr.bf16.mxu1 %v6262_v5  ;;  %v5822_v40 = vadd.f32 %v5821_v53, %v5820_v47  ;;  %v3962_v63 = vadd.f32 %v5847_v50, %v3913_v26  ;;  %v5850_v42 = vadd.f32 %v5849_v54, %v5848_v52 }
 0x48a   : > { %v5823_v55 = vpop.f32.mrf.mxu0  ;;  %v5851_v61 = vpop.f32.mrf.mxu1 }
 0x48b   : > { %v3918_v2 = vadd.f32 %v5822_v40, %v8277_v62 }
 0x48c   : > { %5917 = vmatpush3.bf16.msra.mxu0 %v6263_v49  ;;  %5945 = vmatpush3.bf16.msra.mxu1 %v6264_v51  ;;  %v5824_v0 = vpop.f32.mrf.mxu0  ;;  %v5852_v18 = vpop.f32.mrf.mxu1 }
 0x48d   : > { %5918 = vmatprep.subr.bf16.mxu0 %v6265_v23  ;;  %5946 = vmatprep.subr.bf16.mxu1 %v6266_v9  ;;  %v5825_v34 = vadd.f32 %v5824_v0, %v5823_v55  ;;  %v3967_v9 = vadd.f32 %v5850_v42, %v3918_v2 }
 0x490   : > { %5919 = vmatpush3.bf16.msra.mxu0 %v6267_v27  ;;  %5947 = vmatpush3.bf16.msra.mxu1 %v6268_v25  ;;  %v3921_v27 = vadd.f32 %v5825_v34, %v8277_v62 }
 0x491   : > { %5920 = vmatprep.subr.bf16.mxu0 %v6269_v33  ;;  %5948 = vmatprep.subr.bf16.mxu1 %v6270_v14 }
 0x494   : > { %5921 = vmatpush3.bf16.msra.mxu0 %v6271_v6  ;;  %5949 = vmatpush3.bf16.msra.mxu1 %v6272_v41  ;;  %v5853_v41 = vadd.f32 %v5852_v18, %v5851_v61 }
 0x495   : > { %5922 = vmatprep.subr.bf16.mxu0 %v6273_v10  ;;  %5950 = vmatprep.subr.bf16.mxu1 %v6274_v11 }
 0x498   : > { %5923 = vmatpush3.bf16.msra.mxu0 %v6275_v15  ;;  %5951 = vmatpush3.bf16.msra.mxu1 %v6276_v19 }
 0x499   : > { %5924 = vmatprep.subr.bf16.mxu0 %v6277_v20  ;;  %5952 = vmatprep.subr.bf16.mxu1 %v6278_v21  ;;  %v3970_v20 = vadd.f32 %v5853_v41, %v3921_v27  ;;  %v6287_v41 = vld [vmem:[%s8431_s3 + $0x130] sm:$0xff]  }
 0x49c   : > { %5925 = vmatpush3.bf16.msra.mxu0 %v6279_v22  ;;  %5953 = vmatpush3.bf16.msra.mxu1 %v6280_v28 }
 0x49d   : > { %5966 = vmatprep.subr.bf16.mxu0 %v6281_v29  ;;  %5994 = vmatprep.subr.bf16.mxu1 %v6282_v30 }
 0x4be   : > { %v5870_v35 = vpop.f32.mrf.mxu0  ;;  %v5898_v56 = vpop.f32.mrf.mxu1 }
 0x4c0   : > { %v5871_v1 = vpop.f32.mrf.mxu0  ;;  %v5899_v57 = vpop.f32.mrf.mxu1 }
 0x4c1   : > { %v5872_v32 = vadd.f32 %v5871_v1, %v5870_v35  ;;  %v5900_v58 = vadd.f32 %v5899_v57, %v5898_v56 }
 0x4c2   : > { %v5873_v48 = vpop.f32.mrf.mxu0  ;;  %v5901_v7 = vpop.f32.mrf.mxu1 }
 0x4c3   : > { %v4008_v17 = vadd.f32 %v5872_v32, %v3959_v12 }
 0x4c4   : > { %v5874_v8 = vpop.f32.mrf.mxu0  ;;  %v5902_v16 = vpop.f32.mrf.mxu1 }
 0x4c5   : > { %v4057_v24 = vadd.f32 %v5900_v58, %v4008_v17  ;;  %v5875_v13 = vadd.f32 %v5874_v8, %v5873_v48  ;;  %v5903_v49 = vadd.f32 %v5902_v16, %v5901_v7  ;;  %v8299_v48 = vpop.permute.xlu0 %4095  ;;  %v8304_v8 = vpop.permute.xlu1 %4100  ;;  %v6285_v16 = vld [vmem:[%s8431_s3 + $0x170] sm:$0xff]  }
 0x4c6   : > { %v5876_v59 = vpop.f32.mrf.mxu0  ;;  %v5904_v51 = vpop.f32.mrf.mxu1 }
 0x4c7   : > { %4071 = vst [vmem:[%s7469_s20 + $0x40] sm:$0xff] %v4057_v24  ;;  %v4011_v5 = vadd.f32 %v5875_v13, %v3962_v63  ;;  %v6283_v63 = vld [vmem:[%s8431_s3 + $0x138] sm:$0xff]  }
 0x4c8   : > { %v5877_v23 = vpop.f32.mrf.mxu0  ;;  %v5905_v14 = vpop.f32.mrf.mxu1  ;;  %v6284_v13 = vld [vmem:[%s8431_s3 + $0x1b8] sm:$0xff]  }
 0x4c9   : > { %v4060_v25 = vadd.f32 %v5903_v49, %v4011_v5  ;;  %v5878_v33 = vadd.f32 %v5877_v23, %v5876_v59  ;;  %v5906_v11 = vadd.f32 %v5905_v14, %v5904_v51  ;;  %v6286_v51 = vld [vmem:[%s8431_s3 + $0x1f0] sm:$0xff]  }
 0x4ca   : > { %v5879_v6 = vpop.f32.mrf.mxu0  ;;  %v5907_v15 = vpop.f32.mrf.mxu1 }
 0x4cb   : > { %4072 = vst [vmem:[%s7469_s20 + $0x48] sm:$0xff] %v4060_v25  ;;  %v4016_v10 = vadd.f32 %v5878_v33, %v3967_v9 }
 0x4cc   : > { %v5880_v19 = vpop.f32.mrf.mxu0  ;;  %v5908_v28 = vpop.f32.mrf.mxu1 }
 0x4cd   : > { %v4065_v21 = vadd.f32 %v5906_v11, %v4016_v10  ;;  %v5881_v22 = vadd.f32 %v5880_v19, %v5879_v6  ;;  %v5909_v30 = vadd.f32 %v5908_v28, %v5907_v15  ;;  %v6288_v15 = vld [vmem:[%s8431_s3 + $0x1b0] sm:$0xff]   ;;  %v6289_v19 = vld [vmem:[%s8431_s3 + $0x168] sm:$0xff]  }
 0x4ce   : > { %v6290_v28 = vld [vmem:[%s8431_s3 + $0x1e8] sm:$0xff]  }
 0x4cf   : > { %4073 = vst [vmem:[%s7469_s20 + $0x50] sm:$0xff] %v4065_v21  ;;  %v4019_v29 = vadd.f32 %v5881_v22, %v3970_v20 }
 0x4d1   : > { %v4068_v31 = vadd.f32 %v5909_v30, %v4019_v29 }
 0x4d3   : > { %4074 = vst [vmem:[%s7469_s20 + $0x58] sm:$0xff] %v4068_v31 }
 0x4fe   : > { %v4157_v36 = vpop.f32.mrf.mxu0  ;;  %v4210_v37 = vpop.f32.mrf.mxu1 }
 0x4ff   : > { %v4158_v54 = vadd.f32 %v4157_v36, %v8287_v39  ;;  %v4211_v4 = vadd.f32 %v4210_v37, %v8287_v39 }
 0x500   : > { %v4159_v38 = vpop.f32.mrf.mxu0  ;;  %v4212_v44 = vpop.f32.mrf.mxu1 }
 0x501   : > { %v4160_v47 = vadd.f32 %v4159_v38, %v8287_v39  ;;  %v4213_v55 = vadd.f32 %v4212_v44, %v8287_v39  ;;  %v4335_v40 = vmax.f32 %v4158_v54, 0.0  ;;  %v4337_v17 = vmax.f32 %v4211_v4, 0.0  ;;  %v6291_v38 = vld [vmem:[%s8431_s3 + $0x128] sm:$0xff]   ;;  %v6294_v54 = vld [vmem:[%s8431_s3 + $0x1e0] sm:$0xff]   ;;  %v6298_v4 = vld [vmem:[%s8431_s3 + $0x1d8] sm:$0xff]  }
 0x502   : > { %v4161_v46 = vpop.f32.mrf.mxu0  ;;  %v4214_v53 = vpop.f32.mrf.mxu1 }
 0x503   : > { %v4162_v52 = vadd.f32 %v4161_v46, %v8289_v45  ;;  %v4215_v60 = vadd.f32 %v4214_v53, %v8289_v45  ;;  %v4336_v56 = vmax.f32 %v4160_v47, 0.0  ;;  %v4338_v32 = vmax.f32 %v4213_v55, 0.0  ;;  %v6292_v47 = vld [vmem:[%s8431_s3 + $0x1a8] sm:$0xff]   ;;  %v6295_v55 = vld [vmem:[%s8431_s3 + $0x120] sm:$0xff]  }
 0x504   : > { %v4163_v61 = vpop.f32.mrf.mxu0  ;;  %v4216_v3 = vpop.f32.mrf.mxu1 }
 0x505   : > { %v4164_v0 = vadd.f32 %v4163_v61, %v8289_v45  ;;  %v4343_v18 = vmax.f32 %v4162_v52, 0.0  ;;  %v4217_v35 = vadd.f32 %v4216_v3, %v8289_v45  ;;  %v4345_v26 = vmax.f32 %v4215_v60, 0.0  ;;  %v6293_v52 = vld [vmem:[%s8431_s3 + $0x160] sm:$0xff]   ;;  %v6297_v61 = vld [vmem:[%s8431_s3 + $0x158] sm:$0xff]  }
 0x506   : > { %v4167_v43 = vpop.f32.mrf.mxu0  ;;  %v4220_v12 = vpop.f32.mrf.mxu1  ;;  %v6296_v60 = vld [vmem:[%s8431_s3 + $0x1a0] sm:$0xff]   ;;  %v6300_v3 = vld [vmem:[%s8431_s3 + $0x198] sm:$0xff]  }
 0x507   : > { %v4344_v1 = vmax.f32 %v4164_v0, 0.0  ;;  %v4346_v57 = vmax.f32 %v4217_v35, 0.0  ;;  %v4367_v2 = vpack.c.bf16 %v4343_v18, %v4335_v40  ;;  %v4369_v59 = vpack.c.bf16 %v4345_v26, %v4337_v17  ;;  %v6299_v0 = vld [vmem:[%s8431_s3 + $0x118] sm:$0xff]   ;;  %v6301_v18 = vld [vmem:[%s8431_s3 + $0x150] sm:$0xff]   ;;  %v6305_v26 = vld [vmem:[%s8431_s3 + $0x148] sm:$0xff]  }
 0x508   : > { %v4169_v50 = vpop.f32.mrf.mxu0  ;;  %v4222_v7 = vpop.f32.mrf.mxu1  ;;  %v4168_v23 = vadd.f32 %v4167_v43, %v8299_v48  ;;  %v4221_v33 = vadd.f32 %v4220_v12, %v8299_v48  ;;  %v6302_v35 = vld [vmem:[%s8431_s3 + $0x1d0] sm:$0xff]   ;;  %v6307_v12 = vld [vmem:[%s8431_s3 + $0x108] sm:$0xff]   ;;  %v6312_v17 = vld [vmem:[%s8431_s3 + $0x180] sm:$0xff]  }
 0x509   : > { %v4368_v58 = vpack.c.bf16 %v4344_v1, %v4336_v56  ;;  %v4370_v34 = vpack.c.bf16 %v4346_v57, %v4338_v32  ;;  %v4170_v42 = vadd.f32 %v4169_v50, %v8299_v48  ;;  %v4223_v9 = vadd.f32 %v4222_v7, %v8299_v48  ;;  %v6303_v43 = vld [vmem:[%s8431_s3 + $0x110] sm:$0xff]   ;;  %v6306_v1 = vld [vmem:[%s8431_s3 + $0x1c8] sm:$0xff]   ;;  %v6309_v32 = vld [vmem:[%s8431_s3 + $0x140] sm:$0xff]  }
 0x50a   : > { %v4171_v24 = vpop.f32.mrf.mxu0  ;;  %v4224_v49 = vpop.f32.mrf.mxu1  ;;  %v4351_v29 = vmax.f32 %v4168_v23, 0.0  ;;  %v4353_v36 = vmax.f32 %v4221_v33, 0.0  ;;  %v6304_v56 = vld [vmem:[%s8431_s3 + $0x190] sm:$0xff]   ;;  %v6308_v40 = vld [vmem:[%s8431_s3 + $0x188] sm:$0xff]   ;;  %v6310_v57 = vld [vmem:[%s8431_s3 + $0x1c0] sm:$0xff]  }
 0x50b   : > { %v4172_v5 = vadd.f32 %v4171_v24, %v8304_v8  ;;  %4934 = vmatprep.mubr.bf16.mxu0 %v4368_v58  ;;  %v4225_v27 = vadd.f32 %v4224_v49, %v8304_v8  ;;  %4983 = vmatprep.mubr.bf16.mxu1 %v4370_v34  ;;  %v4352_v20 = vmax.f32 %v4170_v42, 0.0  ;;  %v4354_v30 = vmax.f32 %v4223_v9, 0.0  ;;  %v6311_v50 = vld [vmem:[%s8431_s3 + $0x100] sm:$0xff]  }
 0x50c   : > { %v4173_v25 = vpop.f32.mrf.mxu0  ;;  %4935 = vmatmul.mubr.bf16.vlgmr.msra.gmra.mxu0 %v4367_v2  ;;  %v4226_v6 = vpop.f32.mrf.mxu1  ;;  %4984 = vmatmul.mubr.bf16.vlgmr.msra.gmra.mxu1 %v4369_v59 }
 0x50d   : > { %v4174_v14 = vadd.f32 %v4173_v25, %v8304_v8  ;;  %5967 = vmatpush3.bf16.msra.mxu0 %v6283_v63  ;;  %v4359_v10 = vmax.f32 %v4172_v5, 0.0  ;;  %v4227_v11 = vadd.f32 %v4226_v6, %v8304_v8  ;;  %5995 = vmatpush3.bf16.msra.mxu1 %v6284_v13  ;;  %v4361_v21 = vmax.f32 %v4225_v27, 0.0 }
 0x50e   : > { %5968 = vmatprep.subr.bf16.mxu0 %v6285_v16  ;;  %5996 = vmatprep.subr.bf16.mxu1 %v6286_v51 }
 0x50f   : > { %v4360_v22 = vmax.f32 %v4174_v14, 0.0  ;;  %v4362_v31 = vmax.f32 %v4227_v11, 0.0  ;;  %v4375_v44 = vpack.c.bf16 %v4359_v10, %v4351_v29  ;;  %v4377_v53 = vpack.c.bf16 %v4361_v21, %v4353_v36 }
 0x511   : > { %v4376_v37 = vpack.c.bf16 %v4360_v22, %v4352_v20  ;;  %5969 = vmatpush3.bf16.msra.mxu0 %v6287_v41  ;;  %v4378_v46 = vpack.c.bf16 %v4362_v31, %v4354_v30  ;;  %5997 = vmatpush3.bf16.msra.mxu1 %v6288_v15 }
 0x512   : > { %5970 = vmatprep.subr.bf16.mxu0 %v6289_v19  ;;  %5998 = vmatprep.subr.bf16.mxu1 %v6290_v28 }
 0x513   : > { %4942 = vmatprep.mubr.bf16.mxu0 %v4376_v37  ;;  %4991 = vmatprep.mubr.bf16.mxu1 %v4378_v46 }
 0x514   : > { %4943 = vmatmul.mubr.bf16.gmra.mxu0 %v4375_v44  ;;  %4992 = vmatmul.mubr.bf16.gmra.mxu1 %v4377_v53 }
 0x515   : > { %5971 = vmatpush3.bf16.msra.mxu0 %v6291_v38  ;;  %5999 = vmatpush3.bf16.msra.mxu1 %v6292_v47 }
 0x516   : > { %5972 = vmatprep.subr.bf16.mxu0 %v6293_v52  ;;  %6000 = vmatprep.subr.bf16.mxu1 %v6294_v54 }
 0x519   : > { %5973 = vmatpush3.bf16.msra.mxu0 %v6295_v55  ;;  %6001 = vmatpush3.bf16.msra.mxu1 %v6296_v60 }
 0x51a   : > { %5974 = vmatprep.subr.bf16.mxu0 %v6297_v61  ;;  %6002 = vmatprep.subr.bf16.mxu1 %v6298_v4 }
 0x51d   : > { %5975 = vmatpush3.bf16.msra.mxu0 %v6299_v0  ;;  %6003 = vmatpush3.bf16.msra.mxu1 %v6300_v3 }
 0x51e   : > { %5976 = vmatprep.subr.bf16.mxu0 %v6301_v18  ;;  %6004 = vmatprep.subr.bf16.mxu1 %v6302_v35 }
 0x521   : > { %5977 = vmatpush3.bf16.msra.mxu0 %v6303_v43  ;;  %6005 = vmatpush3.bf16.msra.mxu1 %v6304_v56 }
 0x522   : > { %5978 = vmatprep.subr.bf16.mxu0 %v6305_v26  ;;  %6006 = vmatprep.subr.bf16.mxu1 %v6306_v1 }
 0x525   : > { %5979 = vmatpush3.bf16.msra.mxu0 %v6307_v12  ;;  %6007 = vmatpush3.bf16.msra.mxu1 %v6308_v40 }
 0x526   : > { %5980 = vmatprep.subr.bf16.mxu0 %v6309_v32  ;;  %6008 = vmatprep.subr.bf16.mxu1 %v6310_v57 }
 0x529   : > { %5981 = vmatpush3.bf16.msra.mxu0 %v6311_v50  ;;  %6009 = vmatpush3.bf16.msra.mxu1 %v6312_v17 }
 0x53e   : > { %v4263_v58 = vpop.f32.mrf.mxu0  ;;  %v4316_v7 = vpop.f32.mrf.mxu1 }
 0x53f   : > { %v4264_v59 = vadd.f32 %v4263_v58, %v8287_v39  ;;  %v4317_v51 = vadd.f32 %v4316_v7, %v8287_v39 }
 0x540   : > { %v4265_v63 = vpop.f32.mrf.mxu0  ;;  %v4318_v2 = vpop.f32.mrf.mxu1 }
 0x541   : > { %v4266_v24 = vadd.f32 %v4265_v63, %v8287_v39  ;;  %v4319_v42 = vadd.f32 %v4318_v2, %v8287_v39  ;;  %v4339_v11 = vmax.f32 %v4264_v59, 0.0  ;;  %v4341_v21 = vmax.f32 %v4317_v51, 0.0 }
 0x542   : > { %v4267_v34 = vpop.f32.mrf.mxu0  ;;  %v4320_v16 = vpop.f32.mrf.mxu1 }
 0x543   : > { %v4268_v13 = vadd.f32 %v4267_v34, %v8289_v45  ;;  %v4321_v5 = vadd.f32 %v4320_v16, %v8289_v45  ;;  %v4340_v14 = vmax.f32 %v4266_v24, 0.0  ;;  %v4342_v15 = vmax.f32 %v4319_v42, 0.0 }
 0x544   : > { %v4269_v49 = vpop.f32.mrf.mxu0  ;;  %v4322_v9 = vpop.f32.mrf.mxu1 }
 0x545   : > { %v4270_v23 = vadd.f32 %v4269_v49, %v8289_v45  ;;  %v4347_v27 = vmax.f32 %v4268_v13, 0.0  ;;  %v4323_v25 = vadd.f32 %v4322_v9, %v8289_v45  ;;  %v4349_v6 = vmax.f32 %v4321_v5, 0.0 }
 0x546   : > { %v4273_v33 = vpop.f32.mrf.mxu0  ;;  %v4326_v10 = vpop.f32.mrf.mxu1 }
 0x547   : > { %v4348_v41 = vmax.f32 %v4270_v23, 0.0  ;;  %v4350_v19 = vmax.f32 %v4323_v25, 0.0  ;;  %v4371_v29 = vpack.c.bf16 %v4347_v27, %v4339_v11  ;;  %v4373_v31 = vpack.c.bf16 %v4349_v6, %v4341_v21 }
 0x548   : > { %v4275_v20 = vpop.f32.mrf.mxu0  ;;  %v4328_v28 = vpop.f32.mrf.mxu1  ;;  %v4274_v38 = vadd.f32 %v4273_v33, %v8299_v48  ;;  %v4327_v52 = vadd.f32 %v4326_v10, %v8299_v48 }
 0x549   : > { %v4372_v22 = vpack.c.bf16 %v4348_v41, %v4340_v14  ;;  %v4374_v39 = vpack.c.bf16 %v4350_v19, %v4342_v15  ;;  %v4276_v36 = vadd.f32 %v4275_v20, %v8299_v48  ;;  %v4329_v44 = vadd.f32 %v4328_v28, %v8299_v48 }
 0x54a   : > { %v4277_v30 = vpop.f32.mrf.mxu0  ;;  %v4330_v37 = vpop.f32.mrf.mxu1  ;;  %v4355_v3 = vmax.f32 %v4274_v38, 0.0  ;;  %v4357_v43 = vmax.f32 %v4327_v52, 0.0 }
 0x54b   : > { %v4278_v45 = vadd.f32 %v4277_v30, %v8304_v8  ;;  %5032 = vmatprep.mubr.bf16.mxu0 %v4372_v22  ;;  %v4331_v46 = vadd.f32 %v4330_v37, %v8304_v8  ;;  %5081 = vmatprep.mubr.bf16.mxu1 %v4374_v39  ;;  %v4356_v61 = vmax.f32 %v4276_v36, 0.0  ;;  %v4358_v18 = vmax.f32 %v4329_v44, 0.0 }
 0x54c   : > { %v4279_v47 = vpop.f32.mrf.mxu0  ;;  %5033 = vmatmul.mubr.bf16.vlgmr.msra.gmra.mxu0 %v4371_v29  ;;  %v4332_v54 = vpop.f32.mrf.mxu1  ;;  %5082 = vmatmul.mubr.bf16.vlgmr.msra.gmra.mxu1 %v4373_v31 }
 0x54d   : > { %v4280_v53 = vadd.f32 %v4279_v47, %v8304_v8  ;;  %v4363_v55 = vmax.f32 %v4278_v45, 0.0  ;;  %v4333_v60 = vadd.f32 %v4332_v54, %v8304_v8  ;;  %v4365_v4 = vmax.f32 %v4331_v46, 0.0 }
 0x54f   : > { %v4364_v0 = vmax.f32 %v4280_v53, 0.0  ;;  %v4366_v35 = vmax.f32 %v4333_v60, 0.0  ;;  %v4379_v26 = vpack.c.bf16 %v4363_v55, %v4355_v3  ;;  %v4381_v12 = vpack.c.bf16 %v4365_v4, %v4357_v43 }
 0x551   : > { %v4380_v56 = vpack.c.bf16 %v4364_v0, %v4356_v61  ;;  %v4382_v1 = vpack.c.bf16 %v4366_v35, %v4358_v18 }
 0x553   : > { %5040 = vmatprep.mubr.bf16.mxu0 %v4380_v56  ;;  %5089 = vmatprep.mubr.bf16.mxu1 %v4382_v1 }
 0x554   : > { %5041 = vmatmul.mubr.bf16.gmra.mxu0 %v4379_v26  ;;  %5090 = vmatmul.mubr.bf16.gmra.mxu1 %v4381_v12 }
 0x5cc   : > { %v5926_v48 = vpop.f32.mrf.mxu0  ;;  %v5954_v40 = vpop.f32.mrf.mxu1 }
 0x5ce   : > { %v5927_v32 = vpop.f32.mrf.mxu0  ;;  %v5955_v57 = vpop.f32.mrf.mxu1 }
 0x5cf   : > { %v5928_v13 = vadd.f32 %v5927_v32, %v5926_v48  ;;  %v5956_v23 = vadd.f32 %v5955_v57, %v5954_v40 }
 0x5d0   : > { %v5929_v8 = vpop.f32.mrf.mxu0  ;;  %v5957_v50 = vpop.f32.mrf.mxu1 }
 0x5d1   : > { %v4937_v5 = vadd.f32 %v5928_v13, %v8277_v62 }
 0x5d2   : > { %v5930_v17 = vpop.f32.mrf.mxu0  ;;  %v5958_v58 = vpop.f32.mrf.mxu1 }
 0x5d3   : > { %v5931_v59 = vadd.f32 %v5930_v17, %v5929_v8  ;;  %v4986_v33 = vadd.f32 %v5956_v23, %v4937_v5  ;;  %v5959_v10 = vadd.f32 %v5958_v58, %v5957_v50 }
 0x5d4   : > { %v5932_v7 = vpop.f32.mrf.mxu0  ;;  %v5960_v63 = vpop.f32.mrf.mxu1 }
 0x5d5   : > { %v4940_v27 = vadd.f32 %v5931_v59, %v8277_v62 }
 0x5d6   : > { %v5933_v2 = vpop.f32.mrf.mxu0  ;;  %v5961_v34 = vpop.f32.mrf.mxu1 }
 0x5d7   : > { %v5934_v14 = vadd.f32 %v5933_v2, %v5932_v7  ;;  %v4989_v21 = vadd.f32 %v5959_v10, %v4940_v27  ;;  %v5962_v45 = vadd.f32 %v5961_v34, %v5960_v63 }
 0x5d8   : > { %v5935_v24 = vpop.f32.mrf.mxu0  ;;  %v5963_v16 = vpop.f32.mrf.mxu1 }
 0x5d9   : > { %v4945_v28 = vadd.f32 %v5934_v14, %v8277_v62 }
 0x5da   : > { %v5936_v42 = vpop.f32.mrf.mxu0  ;;  %v5964_v49 = vpop.f32.mrf.mxu1 }
 0x5db   : > { %v5937_v29 = vadd.f32 %v5936_v42, %v5935_v24  ;;  %v4994_v47 = vadd.f32 %v5962_v45, %v4945_v28  ;;  %v5965_v61 = vadd.f32 %v5964_v49, %v5963_v16 }
 0x5dd   : > { %v4948_v52 = vadd.f32 %v5937_v29, %v8277_v62 }
 0x5df   : > { %v4997_v35 = vadd.f32 %v5965_v61, %v4948_v52 }
 0x60c   : > { %v5982_v51 = vpop.f32.mrf.mxu0  ;;  %v6010_v9 = vpop.f32.mrf.mxu1 }
 0x60e   : > { %v5983_v25 = vpop.f32.mrf.mxu0  ;;  %v6011_v41 = vpop.f32.mrf.mxu1 }
 0x60f   : > { %v5984_v6 = vadd.f32 %v5983_v25, %v5982_v51  ;;  %v6012_v19 = vadd.f32 %v6011_v41, %v6010_v9 }
 0x610   : > { %v5985_v11 = vpop.f32.mrf.mxu0  ;;  %v6013_v20 = vpop.f32.mrf.mxu1 }
 0x611   : > { %v5035_v15 = vadd.f32 %v5984_v6, %v4986_v33 }
 0x612   : > { %v5986_v22 = vpop.f32.mrf.mxu0  ;;  %v6014_v31 = vpop.f32.mrf.mxu1 }
 0x613   : > { %v5084_v39 = vadd.f32 %v6012_v19, %v5035_v15  ;;  %v5987_v30 = vadd.f32 %v5986_v22, %v5985_v11  ;;  %v6015_v38 = vadd.f32 %v6014_v31, %v6013_v20 }
 0x614   : > { %v5988_v36 = vpop.f32.mrf.mxu0  ;;  %v6016_v44 = vpop.f32.mrf.mxu1 }
 0x615   : > { %5098 = vst [vmem:[%s7469_s20 + $0x60] sm:$0xff] %v5084_v39  ;;  %v5038_v37 = vadd.f32 %v5987_v30, %v4989_v21 }
 0x616   : > { %v5989_v46 = vpop.f32.mrf.mxu0  ;;  %v6017_v55 = vpop.f32.mrf.mxu1 }
 0x617   : > { %v5087_v53 = vadd.f32 %v6015_v38, %v5038_v37  ;;  %v5990_v54 = vadd.f32 %v5989_v46, %v5988_v36  ;;  %v6018_v0 = vadd.f32 %v6017_v55, %v6016_v44 }
 0x618   : > { %v5991_v60 = vpop.f32.mrf.mxu0  ;;  %v6019_v3 = vpop.f32.mrf.mxu1 }
 0x619   : > { %5099 = vst [vmem:[%s7469_s20 + $0x68] sm:$0xff] %v5087_v53  ;;  %v5043_v4 = vadd.f32 %v5990_v54, %v4994_v47 }
 0x61a   : > { %v5992_v18 = vpop.f32.mrf.mxu0  ;;  %v6020_v26 = vpop.f32.mrf.mxu1 }
 0x61b   : > { %v5092_v43 = vadd.f32 %v6018_v0, %v5043_v4  ;;  %v5993_v56 = vadd.f32 %v5992_v18, %v5991_v60  ;;  %v6021_v12 = vadd.f32 %v6020_v26, %v6019_v3 }
 0x61d   : > { %5100 = vst [vmem:[%s7469_s20 + $0x70] sm:$0xff] %v5092_v43  ;;  %v5046_v1 = vadd.f32 %v5993_v56, %v4997_v35 }
 0x61f   : > { %v5095_v48 = vadd.f32 %v6021_v12, %v5046_v1 }
 0x621   : > { %5101 = vst [vmem:[%s7469_s20 + $0x78] sm:$0xff] %v5095_v48 }
 0x622 PF: > { %s15_s18 = sadd.s32 1, %s6319_s18  }
 0x623   : > { %p12_p4 = scmp.ge.s32.totalorder %s15_s18, 4  }
 0x625   :  { %14 = sbr.rel (!%p12_p4) target bundleno = 1 (0x1), region = 70 }

</bundles_post_ra>
